<compile_context>
chip_gen: v7x
topology: tpu7x:2x2x1
jax: 0.10.0
libtpu: 0.0.40
codegen_flags: <defaults>
</compile_context>

<pallas_src>
import functools

import jax
import jax.numpy as jnp
from jax import lax
from jax.experimental import pallas as pl
from jax.experimental.pallas import tpu as pltpu
import numpy as np

EPS = 1e-5


# ----------------------------------------------------------------------------
# Fused kernel (one grid step = one batch element)
#   x_ref  : (1, Cin, H*W)        input, native NCHW layout flattened (channel-major)
#   s1/b1  : (1, Cin)             folded BN1 scale / shift
#   w1_ref : (Cin, Cmid)          1x1 conv weight with BN2 scale folded in
#   b2_ref : (1, Cmid)            BN2 shift
#   w2_ref : (9, Cmid, Cout)      3x3 conv taps, k = 3*dy + dx
#   o_ref  : (1, Cout, H*W)       output, spatial in lanes (lane-dense stores)
#   mp_ref : (H+3, Wp, Cmid)      VMEM scratch holding the zero-padded intermediate
# ----------------------------------------------------------------------------
def fused_dense_layer_kernel(x_ref, s1_ref, b1_ref, w1_ref, b2_ref, w2_ref,
                             o_ref, mp_ref, *, H, W):
    Wp = mp_ref.shape[1]            # padded width, multiple of 8, >= W + 2
    Cmid = mp_ref.shape[2]
    Cout = o_ref.shape[1]
    HW = H * W
    L = H * Wp

    # ---- stage 1: BN1 + ReLU + 1x1 conv (BN2 scale pre-folded) + shift2 + ReLU ----
    # x arrives channel-major (native NCHW slice); transpose in VMEM (XLU) instead of a
    # separate wrapper-side HBM transpose pass.
    x = x_ref[0].T                                                   # (HW, Cin)
    y = jnp.maximum(x * s1_ref[...] + b1_ref[...], 0.0)             # BN1 + ReLU
    m = jnp.maximum(
        jnp.dot(y, w1_ref[...], preferred_element_type=jnp.float32) + b2_ref[...],
        0.0)                                                         # (HW, Cmid)

    # ---- write the intermediate into the zero-padded scratch (conv2 padding = 1) ----
    # Zero only the padding region (every step -> safe under megacore grid sharding),
    # then overwrite the interior.  Together these cover the whole scratch.
    mp_ref[0:1, :, :] = jnp.zeros((1, Wp, Cmid), jnp.float32)                 # top pad row
    mp_ref[H + 1:H + 3, :, :] = jnp.zeros((2, Wp, Cmid), jnp.float32)         # bottom pad + slack
    mp_ref[1:H + 1, 0:1, :] = jnp.zeros((H, 1, Cmid), jnp.float32)            # left pad col
    mp_ref[1:H + 1, W + 1:Wp, :] = jnp.zeros((H, Wp - (W + 1), Cmid), jnp.float32)  # right pad cols
    mp_ref[1:H + 1, 1:W + 1, :] = m.reshape(H, W, Cmid)                       # interior

    # ---- 3x3 conv as 9 contiguous-slab matmuls over the padded flatten ----
    # mp2[a*Wp + b, c] == padded_intermediate[a, b, c]; because Wp % 8 == 0 the flatten is
    # layout-preserving and each tap's slab is a plain sublane-offset slice (shift 0/1/2).
    mp2 = mp_ref[...].reshape((H + 3) * Wp, Cmid)
    acc = jnp.dot(mp2[0:L, :], w2_ref[0], preferred_element_type=jnp.float32)
    for k in range(1, 9):
        dy, dx = divmod(k, 3)
        off = dy * Wp + dx
        acc = acc + jnp.dot(mp2[off:off + L, :], w2_ref[k],
                            preferred_element_type=jnp.float32)

    # ---- drop the padded columns, transpose to (Cout, H*W) for lane-dense stores ----
    out_hwc = acc.reshape(H, Wp, Cout)[:, :W, :].reshape(HW, Cout)   # (HW, Cout)
    o_ref[0] = out_hwc.T                                             # (Cout, HW)


# ----------------------------------------------------------------------------
# Wrapper: PyTorch-style NCHW in / NCHW out, eval-mode BatchNorm folding.
# ----------------------------------------------------------------------------
def dense_layer_forward(x_nchw, params):
    """x_nchw: (N, Cin, H, W) float32.  Returns (N, growth_rate, H, W)."""
    (g1, b1, m1, v1, w1, g2, b2, m2, v2, w2) = params
    N, Cin, H, W = x_nchw.shape
    Cmid = w1.shape[0]              # w1: (inter, in, 1, 1) PyTorch layout
    Cout = w2.shape[0]              # w2: (growth, inter, 3, 3)
    HW = H * W
    Wp = ((W + 2 + 7) // 8) * 8     # padded width for the scratch (multiple of 8)

    # ---- glue: BN folding + weight relayout (tiny, plain JAX).  The input itself is only
    # reshaped (free): the kernel consumes it in native NCHW channel-major layout. ----
    x2d = x_nchw.reshape(N, Cin, HW)                                 # (N, Cin, HW), no copy

    inv1 = 1.0 / jnp.sqrt(v1 + EPS)
    scale1 = (g1 * inv1).reshape(1, Cin)
    shift1 = (b1 - m1 * g1 * inv1).reshape(1, Cin)
    inv2 = 1.0 / jnp.sqrt(v2 + EPS)
    scale2 = g2 * inv2                                               # (Cmid,)
    shift2 = (b2 - m2 * g2 * inv2).reshape(1, Cmid)

    # 1x1 conv weight with BN2 scale folded into the output channels (exact: linear op).
    W1s = jnp.transpose(w1[:, :, 0, 0], (1, 0)) * scale2.reshape(1, Cmid)    # (Cin, Cmid)
    # 3x3 conv taps: (kH, kW, Cmid, Cout) -> (9, Cmid, Cout), k = 3*dy + dx.
    W2k = jnp.transpose(w2, (2, 3, 1, 0)).reshape(9, Cmid, Cout)

    kernel = functools.partial(fused_dense_layer_kernel, H=H, W=W)

    out_flat = pl.pallas_call(
        kernel,
        out_shape=jax.ShapeDtypeStruct((N, Cout, HW), jnp.float32),
        grid_spec=pltpu.PrefetchScalarGridSpec(
            num_scalar_prefetch=0,
            grid=(N,),
            in_specs=[
                pl.BlockSpec((1, Cin, HW), lambda n: (n, 0, 0)),
                pl.BlockSpec((1, Cin), lambda n: (0, 0)),
                pl.BlockSpec((1, Cin), lambda n: (0, 0)),
                pl.BlockSpec((Cin, Cmid), lambda n: (0, 0)),
                pl.BlockSpec((1, Cmid), lambda n: (0, 0)),
                pl.BlockSpec((9, Cmid, Cout), lambda n: (0, 0, 0)),
            ],
            out_specs=pl.BlockSpec((1, Cout, HW), lambda n: (n, 0, 0)),
            scratch_shapes=[pltpu.VMEM((H + 3, Wp, Cmid), jnp.float32)],
        ),
        compiler_params=pltpu.CompilerParams(
            dimension_semantics=("parallel",),
        ),
    )(x2d, scale1, shift1, W1s, shift2, W2k)

    # NCHW is now just a metadata reshape (no HBM transpose pass).
    return out_flat.reshape(N, Cout, H, W)


# ----------------------------------------------------------------------------
# Pure-JAX reference (for correctness check)
# ----------------------------------------------------------------------------
def dense_layer_ref(x_nchw, params):
    (g1, b1, m1, v1, w1, g2, b2, m2, v2, w2) = params
    x = jnp.transpose(x_nchw, (0, 2, 3, 1))
    y = jnp.maximum((x - m1) / jnp.sqrt(v1 + EPS) * g1 + b1, 0.0)
    W1 = jnp.transpose(w1[:, :, 0, 0], (1, 0))
    z = jnp.einsum("nhwc,co->nhwo", y, W1)
    z = jnp.maximum((z - m2) / jnp.sqrt(v2 + EPS) * g2 + b2, 0.0)
    W2 = jnp.transpose(w2, (2, 3, 1, 0))  # HWIO
    out = lax.conv_general_dilated(z, W2, window_strides=(1, 1), padding="SAME",
                                   dimension_numbers=("NHWC", "HWIO", "NHWC"))
    return jnp.transpose(out, (0, 3, 1, 2))


if __name__ == "__main__":
    # Small shapes consistent with the module: N=2, in_feature=4, growth_rate=8 -> inter=32
    N, Cin, H, W = 2, 4, 16, 16
    growth = 8
    Cmid = 4 * growth

    key = jax.random.PRNGKey(0)
    ks = jax.random.split(key, 8)
    x = jax.random.normal(ks[0], (N, Cin, H, W), jnp.float32)

    # Deterministic parameter init (eval-mode BatchNorm stats)
    gamma1 = 1.0 + 0.1 * jax.random.normal(ks[1], (Cin,), jnp.float32)
    beta1 = 0.1 * jax.random.normal(ks[2], (Cin,), jnp.float32)
    mean1 = 0.05 * jnp.arange(Cin, dtype=jnp.float32)
    var1 = 1.0 + 0.01 * jnp.arange(Cin, dtype=jnp.float32)
    conv1_w = jax.random.normal(ks[3], (Cmid, Cin, 1, 1), jnp.float32) * 0.1

    gamma2 = 1.0 + 0.1 * jax.random.normal(ks[4], (Cmid,), jnp.float32)
    beta2 = 0.1 * jax.random.normal(ks[5], (Cmid,), jnp.float32)
    mean2 = 0.02 * jnp.arange(Cmid, dtype=jnp.float32)
    var2 = 1.0 + 0.005 * jnp.arange(Cmid, dtype=jnp.float32)
    conv2_w = jax.random.normal(ks[6], (growth, Cmid, 3, 3), jnp.float32) * 0.05

    params = (gamma1, beta1, mean1, var1, conv1_w,
              gamma2, beta2, mean2, var2, conv2_w)

    out = dense_layer_forward(x, params)
    out = jax.block_until_ready(out)

    ref = jax.block_until_ready(dense_layer_ref(x, params))
    assert out.shape == (N, growth, H, W)
    np.testing.assert_allclose(np.asarray(out), np.asarray(ref), atol=1e-4, rtol=1e-4)

    print("KERNEL_OK")
</pallas_src>

<mosaic_0001>
module attributes {stable_mosaic.version = 11 : i64} {
  func.func @fused_dense_layer_kernel(%arg0: i32, %arg1: memref<1x4x256xf32, #tpu.memory_space<vmem>>, %arg2: memref<1x4xf32, #tpu.memory_space<vmem>>, %arg3: memref<1x4xf32, #tpu.memory_space<vmem>>, %arg4: memref<4x32xf32, #tpu.memory_space<vmem>>, %arg5: memref<1x32xf32, #tpu.memory_space<vmem>>, %arg6: memref<9x32x8xf32, #tpu.memory_space<vmem>>, %arg7: memref<1x8x256xf32, #tpu.memory_space<vmem>>, %arg8: memref<19x24x32xf32, #tpu.memory_space<vmem>>) attributes {dimension_semantics = [#tpu.dimension_semantics<parallel>], iteration_bounds = array<i64: 2>, scalar_prefetch = 0 : i64, scratch_operands = 1 : i64, tpu.core_type = #tpu.core_type<tc>, window_params = [{transform_indices = @transform_0, window_bounds = array<i64: 1, 4, 256>}, {pipeline_mode = #tpu.pipeline_mode<synchronous>, transform_indices = @transform_1, window_bounds = array<i64: 1, 4>}, {pipeline_mode = #tpu.pipeline_mode<synchronous>, transform_indices = @transform_2, window_bounds = array<i64: 1, 4>}, {pipeline_mode = #tpu.pipeline_mode<synchronous>, transform_indices = @transform_3, window_bounds = array<i64: 4, 32>}, {pipeline_mode = #tpu.pipeline_mode<synchronous>, transform_indices = @transform_4, window_bounds = array<i64: 1, 32>}, {pipeline_mode = #tpu.pipeline_mode<synchronous>, transform_indices = @transform_5, window_bounds = array<i64: 9, 32, 8>}, {transform_indices = @transform_6, window_bounds = array<i64: 1, 8, 256>}]} {
    %c0 = arith.constant 0 : index
    %c0_0 = arith.constant 0 : index
    %c0_1 = arith.constant 0 : index
    %0 = vector.load %arg1[%c0, %c0_0, %c0_1] : memref<1x4x256xf32, #tpu.memory_space<vmem>>, vector<1x4x256xf32>
    %1 = vector.shape_cast %0 : vector<1x4x256xf32> to vector<4x256xf32>
    %2 = tpu.transpose %1, [1, 0] : vector<4x256xf32> -> vector<256x4xf32>
    %c0_2 = arith.constant 0 : index
    %c0_3 = arith.constant 0 : index
    %3 = vector.load %arg2[%c0_2, %c0_3] : memref<1x4xf32, #tpu.memory_space<vmem>>, vector<1x4xf32>
    %4 = vector.broadcast %3 : vector<1x4xf32> to vector<256x4xf32>
    %5 = arith.mulf %2, %4 : vector<256x4xf32>
    %c0_4 = arith.constant 0 : index
    %c0_5 = arith.constant 0 : index
    %6 = vector.load %arg3[%c0_4, %c0_5] : memref<1x4xf32, #tpu.memory_space<vmem>>, vector<1x4xf32>
    %7 = vector.broadcast %6 : vector<1x4xf32> to vector<256x4xf32>
    %8 = arith.addf %5, %7 : vector<256x4xf32>
    %cst = arith.constant 0.000000e+00 : f32
    %9 = vector.broadcast %cst : f32 to vector<256x4xf32>
    %10 = arith.maximumf %8, %9 : vector<256x4xf32>
    %c0_6 = arith.constant 0 : index
    %c0_7 = arith.constant 0 : index
    %11 = vector.load %arg4[%c0_6, %c0_7] : memref<4x32xf32, #tpu.memory_space<vmem>>, vector<4x32xf32>
    %cst_8 = arith.constant dense<0.000000e+00> : vector<256x32xf32>
    %12 = tpu.matmul %10, %11, %cst_8 {dimension_numbers = #tpu.dot_dimension_numbers<[1], [0], [0], [1], [0, 0, 1, 1], [], []>} : vector<256x4xf32>, vector<4x32xf32>, vector<256x32xf32> -> vector<256x32xf32>
    %c0_9 = arith.constant 0 : index
    %c0_10 = arith.constant 0 : index
    %13 = vector.load %arg5[%c0_9, %c0_10] : memref<1x32xf32, #tpu.memory_space<vmem>>, vector<1x32xf32>
    %14 = vector.broadcast %13 : vector<1x32xf32> to vector<256x32xf32>
    %15 = arith.addf %12, %14 : vector<256x32xf32>
    %cst_11 = arith.constant 0.000000e+00 : f32
    %16 = vector.broadcast %cst_11 : f32 to vector<256x32xf32>
    %17 = arith.maximumf %15, %16 : vector<256x32xf32>
    %cst_12 = arith.constant 0.000000e+00 : f32
    %18 = vector.broadcast %cst_12 : f32 to vector<1x24x32xf32>
    %c0_13 = arith.constant 0 : index
    %c0_14 = arith.constant 0 : index
    %c0_15 = arith.constant 0 : index
    %19 = vector.load %arg8[%c0_13, %c0_14, %c0_15] : memref<19x24x32xf32, #tpu.memory_space<vmem>>, vector<1x24x32xf32>
    tpu.vector_store %arg8[%c0_13, %c0_14, %c0_15], %18 {strides = array<i32>} : memref<19x24x32xf32, #tpu.memory_space<vmem>>, vector<1x24x32xf32>,
    %cst_16 = arith.constant 0.000000e+00 : f32
    %20 = vector.broadcast %cst_16 : f32 to vector<2x24x32xf32>
    %c17 = arith.constant 17 : index
    %c0_17 = arith.constant 0 : index
    %c0_18 = arith.constant 0 : index
    %21 = vector.load %arg8[%c17, %c0_17, %c0_18] : memref<19x24x32xf32, #tpu.memory_space<vmem>>, vector<2x24x32xf32>
    tpu.vector_store %arg8[%c17, %c0_17, %c0_18], %20 {strides = array<i32>} : memref<19x24x32xf32, #tpu.memory_space<vmem>>, vector<2x24x32xf32>,
    %cst_19 = arith.constant 0.000000e+00 : f32
    %22 = vector.broadcast %cst_19 : f32 to vector<16x1x32xf32>
    %c1 = arith.constant 1 : index
    %c0_20 = arith.constant 0 : index
    %c0_21 = arith.constant 0 : index
    %23 = vector.load %arg8[%c1, %c0_20, %c0_21] : memref<19x24x32xf32, #tpu.memory_space<vmem>>, vector<16x1x32xf32>
    tpu.vector_store %arg8[%c1, %c0_20, %c0_21], %22 {strides = array<i32>} : memref<19x24x32xf32, #tpu.memory_space<vmem>>, vector<16x1x32xf32>,
    %cst_22 = arith.constant 0.000000e+00 : f32
    %24 = vector.broadcast %cst_22 : f32 to vector<16x7x32xf32>
    %c1_23 = arith.constant 1 : index
    %c17_24 = arith.constant 17 : index
    %c0_25 = arith.constant 0 : index
    %25 = vector.load %arg8[%c1_23, %c17_24, %c0_25] : memref<19x24x32xf32, #tpu.memory_space<vmem>>, vector<16x7x32xf32>
    tpu.vector_store %arg8[%c1_23, %c17_24, %c0_25], %24 {strides = array<i32>} : memref<19x24x32xf32, #tpu.memory_space<vmem>>, vector<16x7x32xf32>,
    %26 = vector.shape_cast %17 : vector<256x32xf32> to vector<16x16x32xf32>
    %c1_26 = arith.constant 1 : index
    %c1_27 = arith.constant 1 : index
    %c0_28 = arith.constant 0 : index
    %27 = vector.load %arg8[%c1_26, %c1_27, %c0_28] : memref<19x24x32xf32, #tpu.memory_space<vmem>>, vector<16x16x32xf32>
    tpu.vector_store %arg8[%c1_26, %c1_27, %c0_28], %26 {strides = array<i32>} : memref<19x24x32xf32, #tpu.memory_space<vmem>>, vector<16x16x32xf32>,
    %c0_29 = arith.constant 0 : index
    %c0_30 = arith.constant 0 : index
    %c0_31 = arith.constant 0 : index
    %28 = vector.load %arg8[%c0_29, %c0_30, %c0_31] : memref<19x24x32xf32, #tpu.memory_space<vmem>>, vector<19x24x32xf32>
    %29 = vector.shape_cast %28 : vector<19x24x32xf32> to vector<456x32xf32>
    %30 = vector.extract_strided_slice %29 {offsets = [0, 0], sizes = [384, 32], strides = [1, 1]} : vector<456x32xf32> to vector<384x32xf32>
    %c0_32 = arith.constant 0 : index
    %c0_33 = arith.constant 0 : index
    %c0_34 = arith.constant 0 : index
    %31 = vector.load %arg6[%c0_32, %c0_33, %c0_34] : memref<9x32x8xf32, #tpu.memory_space<vmem>>, vector<1x32x8xf32>
    %32 = vector.shape_cast %31 : vector<1x32x8xf32> to vector<32x8xf32>
    %cst_35 = arith.constant dense<0.000000e+00> : vector<384x8xf32>
    %33 = tpu.matmul %30, %32, %cst_35 {dimension_numbers = #tpu.dot_dimension_numbers<[1], [0], [0], [1], [0, 0, 1, 1], [], []>} : vector<384x32xf32>, vector<32x8xf32>, vector<384x8xf32> -> vector<384x8xf32>
    %34 = vector.extract_strided_slice %29 {offsets = [1, 0], sizes = [384, 32], strides = [1, 1]} : vector<456x32xf32> to vector<384x32xf32>
    %c1_36 = arith.constant 1 : index
    %c0_37 = arith.constant 0 : index
    %c0_38 = arith.constant 0 : index
    %35 = vector.load %arg6[%c1_36, %c0_37, %c0_38] : memref<9x32x8xf32, #tpu.memory_space<vmem>>, vector<1x32x8xf32>
    %36 = vector.shape_cast %35 : vector<1x32x8xf32> to vector<32x8xf32>
    %cst_39 = arith.constant dense<0.000000e+00> : vector<384x8xf32>
    %37 = tpu.matmul %34, %36, %cst_39 {dimension_numbers = #tpu.dot_dimension_numbers<[1], [0], [0], [1], [0, 0, 1, 1], [], []>} : vector<384x32xf32>, vector<32x8xf32>, vector<384x8xf32> -> vector<384x8xf32>
    %38 = arith.addf %33, %37 : vector<384x8xf32>
    %39 = vector.extract_strided_slice %29 {offsets = [2, 0], sizes = [384, 32], strides = [1, 1]} : vector<456x32xf32> to vector<384x32xf32>
    %c2 = arith.constant 2 : index
    %c0_40 = arith.constant 0 : index
    %c0_41 = arith.constant 0 : index
    %40 = vector.load %arg6[%c2, %c0_40, %c0_41] : memref<9x32x8xf32, #tpu.memory_space<vmem>>, vector<1x32x8xf32>
    %41 = vector.shape_cast %40 : vector<1x32x8xf32> to vector<32x8xf32>
    %cst_42 = arith.constant dense<0.000000e+00> : vector<384x8xf32>
    %42 = tpu.matmul %39, %41, %cst_42 {dimension_numbers = #tpu.dot_dimension_numbers<[1], [0], [0], [1], [0, 0, 1, 1], [], []>} : vector<384x32xf32>, vector<32x8xf32>, vector<384x8xf32> -> vector<384x8xf32>
    %43 = arith.addf %38, %42 : vector<384x8xf32>
    %44 = vector.extract_strided_slice %29 {offsets = [24, 0], sizes = [384, 32], strides = [1, 1]} : vector<456x32xf32> to vector<384x32xf32>
    %c3 = arith.constant 3 : index
    %c0_43 = arith.constant 0 : index
    %c0_44 = arith.constant 0 : index
    %45 = vector.load %arg6[%c3, %c0_43, %c0_44] : memref<9x32x8xf32, #tpu.memory_space<vmem>>, vector<1x32x8xf32>
    %46 = vector.shape_cast %45 : vector<1x32x8xf32> to vector<32x8xf32>
    %cst_45 = arith.constant dense<0.000000e+00> : vector<384x8xf32>
    %47 = tpu.matmul %44, %46, %cst_45 {dimension_numbers = #tpu.dot_dimension_numbers<[1], [0], [0], [1], [0, 0, 1, 1], [], []>} : vector<384x32xf32>, vector<32x8xf32>, vector<384x8xf32> -> vector<384x8xf32>
    %48 = arith.addf %43, %47 : vector<384x8xf32>
    %49 = vector.extract_strided_slice %29 {offsets = [25, 0], sizes = [384, 32], strides = [1, 1]} : vector<456x32xf32> to vector<384x32xf32>
    %c4 = arith.constant 4 : index
    %c0_46 = arith.constant 0 : index
    %c0_47 = arith.constant 0 : index
    %50 = vector.load %arg6[%c4, %c0_46, %c0_47] : memref<9x32x8xf32, #tpu.memory_space<vmem>>, vector<1x32x8xf32>
    %51 = vector.shape_cast %50 : vector<1x32x8xf32> to vector<32x8xf32>
    %cst_48 = arith.constant dense<0.000000e+00> : vector<384x8xf32>
    %52 = tpu.matmul %49, %51, %cst_48 {dimension_numbers = #tpu.dot_dimension_numbers<[1], [0], [0], [1], [0, 0, 1, 1], [], []>} : vector<384x32xf32>, vector<32x8xf32>, vector<384x8xf32> -> vector<384x8xf32>
    %53 = arith.addf %48, %52 : vector<384x8xf32>
    %54 = vector.extract_strided_slice %29 {offsets = [26, 0], sizes = [384, 32], strides = [1, 1]} : vector<456x32xf32> to vector<384x32xf32>
    %c5 = arith.constant 5 : index
    %c0_49 = arith.constant 0 : index
    %c0_50 = arith.constant 0 : index
    %55 = vector.load %arg6[%c5, %c0_49, %c0_50] : memref<9x32x8xf32, #tpu.memory_space<vmem>>, vector<1x32x8xf32>
    %56 = vector.shape_cast %55 : vector<1x32x8xf32> to vector<32x8xf32>
    %cst_51 = arith.constant dense<0.000000e+00> : vector<384x8xf32>
    %57 = tpu.matmul %54, %56, %cst_51 {dimension_numbers = #tpu.dot_dimension_numbers<[1], [0], [0], [1], [0, 0, 1, 1], [], []>} : vector<384x32xf32>, vector<32x8xf32>, vector<384x8xf32> -> vector<384x8xf32>
    %58 = arith.addf %53, %57 : vector<384x8xf32>
    %59 = vector.extract_strided_slice %29 {offsets = [48, 0], sizes = [384, 32], strides = [1, 1]} : vector<456x32xf32> to vector<384x32xf32>
    %c6 = arith.constant 6 : index
    %c0_52 = arith.constant 0 : index
    %c0_53 = arith.constant 0 : index
    %60 = vector.load %arg6[%c6, %c0_52, %c0_53] : memref<9x32x8xf32, #tpu.memory_space<vmem>>, vector<1x32x8xf32>
    %61 = vector.shape_cast %60 : vector<1x32x8xf32> to vector<32x8xf32>
    %cst_54 = arith.constant dense<0.000000e+00> : vector<384x8xf32>
    %62 = tpu.matmul %59, %61, %cst_54 {dimension_numbers = #tpu.dot_dimension_numbers<[1], [0], [0], [1], [0, 0, 1, 1], [], []>} : vector<384x32xf32>, vector<32x8xf32>, vector<384x8xf32> -> vector<384x8xf32>
    %63 = arith.addf %58, %62 : vector<384x8xf32>
    %64 = vector.extract_strided_slice %29 {offsets = [49, 0], sizes = [384, 32], strides = [1, 1]} : vector<456x32xf32> to vector<384x32xf32>
    %c7 = arith.constant 7 : index
    %c0_55 = arith.constant 0 : index
    %c0_56 = arith.constant 0 : index
    %65 = vector.load %arg6[%c7, %c0_55, %c0_56] : memref<9x32x8xf32, #tpu.memory_space<vmem>>, vector<1x32x8xf32>
    %66 = vector.shape_cast %65 : vector<1x32x8xf32> to vector<32x8xf32>
    %cst_57 = arith.constant dense<0.000000e+00> : vector<384x8xf32>
    %67 = tpu.matmul %64, %66, %cst_57 {dimension_numbers = #tpu.dot_dimension_numbers<[1], [0], [0], [1], [0, 0, 1, 1], [], []>} : vector<384x32xf32>, vector<32x8xf32>, vector<384x8xf32> -> vector<384x8xf32>
    %68 = arith.addf %63, %67 : vector<384x8xf32>
    %69 = vector.extract_strided_slice %29 {offsets = [50, 0], sizes = [384, 32], strides = [1, 1]} : vector<456x32xf32> to vector<384x32xf32>
    %c8 = arith.constant 8 : index
    %c0_58 = arith.constant 0 : index
    %c0_59 = arith.constant 0 : index
    %70 = vector.load %arg6[%c8, %c0_58, %c0_59] : memref<9x32x8xf32, #tpu.memory_space<vmem>>, vector<1x32x8xf32>
    %71 = vector.shape_cast %70 : vector<1x32x8xf32> to vector<32x8xf32>
    %cst_60 = arith.constant dense<0.000000e+00> : vector<384x8xf32>
    %72 = tpu.matmul %69, %71, %cst_60 {dimension_numbers = #tpu.dot_dimension_numbers<[1], [0], [0], [1], [0, 0, 1, 1], [], []>} : vector<384x32xf32>, vector<32x8xf32>, vector<384x8xf32> -> vector<384x8xf32>
    %73 = arith.addf %68, %72 : vector<384x8xf32>
    %74 = vector.shape_cast %73 : vector<384x8xf32> to vector<16x24x8xf32>
    %75 = vector.extract_strided_slice %74 {offsets = [0, 0, 0], sizes = [16, 16, 8], strides = [1, 1, 1]} : vector<16x24x8xf32> to vector<16x16x8xf32>
    %76 = vector.shape_cast %75 : vector<16x16x8xf32> to vector<256x8xf32>
    %77 = tpu.transpose %76, [1, 0] : vector<256x8xf32> -> vector<8x256xf32>
    %c0_61 = arith.constant 0 : index
    %c0_62 = arith.constant 0 : index
    %c0_63 = arith.constant 0 : index
    %78 = vector.load %arg7[%c0_61, %c0_62, %c0_63] : memref<1x8x256xf32, #tpu.memory_space<vmem>>, vector<1x8x256xf32>
    %79 = vector.shape_cast %78 : vector<1x8x256xf32> to vector<8x256xf32>
    %80 = vector.shape_cast %77 : vector<8x256xf32> to vector<1x8x256xf32>
    tpu.vector_store %arg7[%c0_61, %c0_62, %c0_63], %80 {strides = array<i32>} : memref<1x8x256xf32, #tpu.memory_space<vmem>>, vector<1x8x256xf32>,
    return
  }
  func.func @transform_0(%arg0: i32) -> (i32, i32, i32) {
    %c0_i32 = arith.constant 0 : i32
    %c0_i32_0 = arith.constant 0 : i32
    %c0_i32_1 = arith.constant 0 : i32
    return %arg0, %c0_i32, %c0_i32_0 : i32, i32, i32
  }
  func.func @transform_1(%arg0: i32) -> (i32, i32) {
    %c0_i32 = arith.constant 0 : i32
    %c0_i32_0 = arith.constant 0 : i32
    %c0_i32_1 = arith.constant 0 : i32
    return %c0_i32, %c0_i32_0 : i32, i32
  }
  func.func @transform_2(%arg0: i32) -> (i32, i32) {
    %c0_i32 = arith.constant 0 : i32
    %c0_i32_0 = arith.constant 0 : i32
    %c0_i32_1 = arith.constant 0 : i32
    return %c0_i32, %c0_i32_0 : i32, i32
  }
  func.func @transform_3(%arg0: i32) -> (i32, i32) {
    %c0_i32 = arith.constant 0 : i32
    %c0_i32_0 = arith.constant 0 : i32
    %c0_i32_1 = arith.constant 0 : i32
    return %c0_i32, %c0_i32_0 : i32, i32
  }
  func.func @transform_4(%arg0: i32) -> (i32, i32) {
    %c0_i32 = arith.constant 0 : i32
    %c0_i32_0 = arith.constant 0 : i32
    %c0_i32_1 = arith.constant 0 : i32
    return %c0_i32, %c0_i32_0 : i32, i32
  }
  func.func @transform_5(%arg0: i32) -> (i32, i32, i32) {
    %c0_i32 = arith.constant 0 : i32
    %c0_i32_0 = arith.constant 0 : i32
    %c0_i32_1 = arith.constant 0 : i32
    %c0_i32_2 = arith.constant 0 : i32
    return %c0_i32, %c0_i32_0, %c0_i32_1 : i32, i32, i32
  }
  func.func @transform_6(%arg0: i32) -> (i32, i32, i32) {
    %c0_i32 = arith.constant 0 : i32
    %c0_i32_0 = arith.constant 0 : i32
    %c0_i32_1 = arith.constant 0 : i32
    return %arg0, %c0_i32, %c0_i32_0 : i32, i32, i32
  }
}

</mosaic_0001>

<bundles_post_ra>
// kernel: tpu_custom_call.1
= control target key start
LH: loop header
LB: loop body
LE: loop exit
PB: predicated region body
PF: predicated region fallthrough
CT: control target
= control target key end

     0   :  { %11 = vsyncpa [#allocation4], 0  ;;  %s8865_s0 = inlined_call_operand.vmem [shape: f32[2,4,256], index: 0, kind: input, shape index: {}]   ;;  %s8866_s1 = inlined_call_operand.vmem [shape: f32[1,4], index: 1, kind: input, shape index: {}]   ;;  %s8867_s2 = inlined_call_operand.vmem [shape: f32[1,4], index: 2, kind: input, shape index: {}]   ;;  %s8868_s3 = inlined_call_operand.vmem [shape: f32[4,32], index: 3, kind: input, shape index: {}]   ;;  %s8869_s4 = inlined_call_operand.vmem [shape: f32[1,32], index: 4, kind: input, shape index: {}]   ;;  %s8870_s5 = inlined_call_operand.vmem [shape: f32[9,32,8], index: 5, kind: input, shape index: {}]   ;;  %s8871_s6 = inlined_call_operand.hbm [shape: f32[2,8,256], index: 6, kind: output, shape index: {}]  }
   0x1   :  { %13 = vsyncpa [#allocation4 + $0x1], 0  ;;  %s6943_s21 = smov 0   ;;  %s6945_s22 = smov 0  }
   0x2   :  { %s6947_s23 = smov 0   ;;  %s6949_s24 = smov 0  }
   0x3 LB: > { %s6964_s25 = sadd.s32 4294967295, %s6904_s24   ;;  %s4535_s26 = sadd.s32 4294967294, %s6904_s24   ;;  %s6904_s24 = sphi %s6949_s24, %s9197_s24   ;;  %s6900_s23 = sphi %s6947_s23, %s9196_s23   ;;  %s6896_s22 = sphi %s6945_s22, %s9195_s22   ;;  %s6892_s21 = sphi %s6943_s21, %s9194_s21  }
   0x4   : > { %s6968_s27 = sadd.s32 1, %s6904_s24   ;;  %s157_s28 = sadd.s32 1, %s6900_s23 }
   0x5   : > { %s154_s29 = ssub.s32 %s6904_s24, %s6968_s27  ;;  %p167_p0 = scmp.ne.s32.totalorder %s6900_s23, %s6896_s22 }
   0x6   : > { %p155_p1 = scmp.eq.s32.totalorder %s154_s29, 0  ;;  %p168_p2 = scmp.eq.s32.totalorder %s6964_s25, 1 }
   0x7   : > { %p173_p3 = scmp.ne.s32.totalorder %s6896_s22, %s6892_s21  ;;  %p174_p4 = scmp.eq.s32.totalorder %s4535_s26, 1 }
   0x8   : > { %s6979_s30 = scalar_select %p155_p1, %s6900_s23, %s157_s28  }
   0x9   : > { %p6981_p5 = por %p168_p2, %p167_p0  ;;  %p6985_p6 = por %p174_p4, %p173_p3 }
   0xa   : > { %p4538_p7 = scmp.ge.s32.totalorder %s6904_s24, 1  ;;  %p215_p8 = scmp.lt.s32.totalorder %s6904_s24, 3 }
   0xc   : > { %p216_p9 = pnand %p4538_p7, %p215_p8 }
   0xe   : > { %219 = sbr.rel (%p216_p9) target bundleno = 1234 (0x4d2), region = 44 }
  0x15   : > { %p245_p10 = scmp.lt.s32.totalorder %s6964_s25, 1  ;;  %v428_v1 = vld [vmem:[%s8868_s3] sm:$0xf]  ;;  %vm533_vm0 = vcmask 1043456   ;;  %v4579_v9 = vld [vmem:[%s8870_s5 + $0x28] sm:$0xff]  ;;  %vm436_vm1 = vcmask 31744  }
  0x16   : > { %5550 = vmatprep.subr.msk.mxu0 %vm533_vm0, %v428_v1  ;;  %v7002_v3 = vld [vmem:[%s8866_s1] ss:$0 sm:$0xff]  ;;  %vm794_vm2 = vcmask 261120   ;;  %vm823_vm3 = vcmask 260096   ;;  %vm806_vm4 = vcmask 253952   ;;  %vm985_vm5 = vcmask 1046528  }
  0x17   : > { %s246_s9 = scalar_select %p245_p10, %s6964_s25, 1  ;;  %5551 = vmatpush3.msk.msra.mxu0 %vm533_vm0, %v428_v1  ;;  %v7007_v5 = vld [vmem:[%s8867_s2] ss:$0 sm:$0xff]  ;;  %vm1858_vm6 = vcmask 1045504  }
  0x18   : > { %v4578_v8 = vld [vmem:[%s8870_s5 + $0x20] sm:$0xff]  ;;  %s242_s19 = sand.u32 1, %s6896_s22   ;;  %s5048_s29 = sshll.u32 %s6964_s25, 8 }
  0x19   : > { %s5047_s10 = sshll.u32 %s246_s9, 3  ;;  %v6320_v11 = vpack.c.bf16 %v4579_v9, %v4578_v8  ;;  %s4539_s20 = sshll.u32 %s242_s19, 4 }
  0x1a   : > { %s249_s13 = scalar_lea.vmem %s8865_s0, %s5047_s10  ;;  %s244_s26 = scalar_lea.vmem [#allocation3], %s4539_s20 }
  0x1b   : > { %v250_v0 = vld [vmem:[%s249_s13] sm:$0xff]  ;;  %6321 = vmatprep.subr.bf16.mxu0 %v6320_v11  ;;  %s4476_s28 = sshll.u32 %s244_s26, 4  ;;  %s8825_s11 = scalar_lea.hbm %s8871_s6, %s5048_s29  ;;  %s8820_s28 = int_to_ptr.vmem [resolvable:$true] %s4476_s28 }
  0x1c   : > { %254 = vxpose.xlu0.b32.start.end [1/1] (short) %v250_v0, 128  ;;  %v252_v2 = vcombine.high %v250_v0, %v250_v0  ;;  %s4462_s12 = scalar_lea.sflag [#allocation4], %s242_s19  ;;  %s6842_s13 = scalar_lea.vmem %s8820_s28, 256 }
  0x1d   : > { %p6843_p11 = scmp.ne.s32.totalorder %s8820_s28, %s6842_s13  ;;  %s6907_s14 = smov [#allocation3]  }
  0x1e   : > { %s6846_s25 = sshll.u32 %s6907_s14, 4  ;;  %s6847_s25 = int_to_ptr.vmem [resolvable:$false] %s6846_s25 }
  0x1f   : > { %p6844_p12 = pnand %p6843_p11, %p6981_p5  ;;  %s6848_s15 = scalar_lea.vmem %s6847_s25, 512 }
  0x20   : > { %p6849_p0 = scmp.lt.s32.totalorder %s8820_s28, %s6847_s25  ;;  %p6850_p1 = scmp.lt.s32.totalorder %s6848_s15, %s6842_s13 }
  0x21   : > { %p6845_p13 = pneg %p6844_p12 }
  0x22   : > { %p6851_p2 = por %p6850_p1, %p6849_p0 }
  0x24   : > { %p6852_p3 = pnand %p6851_p2, %p6845_p13 }
  0x59   : > { %286 = vxpose.xlu0.b32.start.end [1/1] (short) %v252_v2, 128 }
  0x9c   : > { %v270_v4 = vpop.trf.xlu0 }
  0x9d   : > { %v325_v6 = vmul.f32 %v7002_v3, %v270_v4 }
  0x9f   : > { %v364_v7 = vadd.f32 %v7007_v5, %v325_v6 }
  0xa0   : > { %v271_v10 = vpop.trf.xlu0 }
  0xa1   : > { %v326_v12 = vmul.f32 %v7002_v3, %v271_v10  ;;  %v396_v13 = vmax.f32 %v364_v7, 0.0 }
  0xa3   : > { %v365_v14 = vadd.f32 %v7007_v5, %v326_v12  ;;  %5552 = vmatprep.mubr.msk.f32.mxu0 %vm436_vm1, %v396_v13 }
  0xa4   : > { %v272_v15 = vpop.trf.xlu0 }
  0xa5   : > { %v397_v16 = vmax.f32 %v365_v14, 0.0  ;;  %v327_v17 = vmul.f32 %v7002_v3, %v272_v15 }
  0xa7   : > { %v366_v18 = vadd.f32 %v7007_v5, %v327_v17  ;;  %5553 = vmatmul.mubr.msk.f32.vlgmr.msra.gmra.mrb[0].mxu0 %vm436_vm1, %v397_v16 }
  0xa8   : > { %v273_v19 = vpop.trf.xlu0  ;;  %6323 = vmatpush3.bf16.msra.mxu0 %v6320_v11 }
  0xa9   : > { %v398_v20 = vmax.f32 %v366_v18, 0.0  ;;  %v328_v21 = vmul.f32 %v7002_v3, %v273_v19 }
  0xab   : > { %v367_v22 = vadd.f32 %v7007_v5, %v328_v21  ;;  %5555 = vmatprep.mubr.msk.f32.mxu0 %vm436_vm1, %v398_v20 }
  0xac   : > { %v274_v23 = vpop.trf.xlu0 }
  0xad   : > { %v399_v24 = vmax.f32 %v367_v22, 0.0  ;;  %v329_v25 = vmul.f32 %v7002_v3, %v274_v23 }
  0xaf   : > { %v368_v26 = vadd.f32 %v7007_v5, %v329_v25  ;;  %5556 = vmatmul.mubr.msk.f32.gmra.mrb[2].mxu0 %vm436_vm1, %v399_v24 }
  0xb0   : > { %v275_v27 = vpop.trf.xlu0 }
  0xb1   : > { %v400_v28 = vmax.f32 %v368_v26, 0.0  ;;  %v330_v29 = vmul.f32 %v7002_v3, %v275_v27 }
  0xb3   : > { %v369_v30 = vadd.f32 %v7007_v5, %v330_v29  ;;  %5558 = vmatprep.mubr.msk.f32.mxu0 %vm436_vm1, %v400_v28 }
  0xb4   : > { %v276_v31 = vpop.trf.xlu0 }
  0xb5   : > { %v401_v32 = vmax.f32 %v369_v30, 0.0  ;;  %v331_v33 = vmul.f32 %v7002_v3, %v276_v31 }
  0xb7   : > { %v370_v34 = vadd.f32 %v7007_v5, %v331_v33  ;;  %5559 = vmatmul.mubr.msk.f32.gmra.mrb[4].mxu0 %vm436_vm1, %v401_v32 }
  0xb8   : > { %v277_v35 = vpop.trf.xlu0 }
  0xb9   : > { %v402_v36 = vmax.f32 %v370_v34, 0.0  ;;  %v332_v37 = vmul.f32 %v7002_v3, %v277_v35 }
  0xbb   : > { %v371_v38 = vadd.f32 %v7007_v5, %v332_v37  ;;  %5561 = vmatprep.mubr.msk.f32.mxu0 %vm436_vm1, %v402_v36 }
  0xbc   : > { %v278_v39 = vpop.trf.xlu0 }
  0xbd   : > { %v403_v40 = vmax.f32 %v371_v38, 0.0  ;;  %v333_v41 = vmul.f32 %v7002_v3, %v278_v39 }
  0xbf   : > { %v372_v42 = vadd.f32 %v7007_v5, %v333_v41  ;;  %5562 = vmatmul.mubr.msk.f32.gmra.mrb[6].mxu0 %vm436_vm1, %v403_v40 }
  0xc0   : > { %v279_v43 = vpop.trf.xlu0 }
  0xc1   : > { %v404_v44 = vmax.f32 %v372_v42, 0.0  ;;  %v334_v45 = vmul.f32 %v7002_v3, %v279_v43  ;;  %v6906_v42 = vmov 0.0  }
  0xc2   : > { %795 = vst.msk [vmem:[#allocation2] sm:$0xff] %vm794_vm2, %v6906_v42  ;;  %796 = vst.msk [vmem:[#allocation2 + $0x8] sm:$0xff] %vm794_vm2, %v6906_v42 }
  0xc3   : > { %v373_v46 = vadd.f32 %v7007_v5, %v334_v45  ;;  %5564 = vmatprep.mubr.msk.f32.mxu0 %vm436_vm1, %v404_v44  ;;  %797 = vst.msk [vmem:[#allocation2 + $0x10] sm:$0xff] %vm794_vm2, %v6906_v42  ;;  %799 = vst.msk [vmem:[#allocation2 + $0x198] sm:$0xff] %vm794_vm2, %v6906_v42 }
  0xc4   : > { %v280_v47 = vpop.trf.xlu0  ;;  %800 = vst.msk [vmem:[#allocation2 + $0x1a0] sm:$0xff] %vm794_vm2, %v6906_v42  ;;  %801 = vst.msk [vmem:[#allocation2 + $0x1a8] sm:$0xff] %vm794_vm2, %v6906_v42 }
  0xc5   : > { %v405_v48 = vmax.f32 %v373_v46, 0.0  ;;  %v335_v49 = vmul.f32 %v7002_v3, %v280_v47  ;;  %802 = vst.msk [vmem:[#allocation2 + $0x1b0] sm:$0xff] %vm794_vm2, %v6906_v42 }
  0xc6   : > { %824 = vst.msk [vmem:[#allocation2 + $0x29] sm:$0x7f] %vm823_vm3, %v6906_v42  ;;  %825 = vst.msk [vmem:[#allocation2 + $0x41] sm:$0x7f] %vm823_vm3, %v6906_v42 }
  0xc7   : > { %v374_v50 = vadd.f32 %v7007_v5, %v335_v49  ;;  %5565 = vmatmul.mubr.msk.f32.gmra.mrb[8].mxu0 %vm436_vm1, %v405_v48  ;;  %826 = vst.msk [vmem:[#allocation2 + $0x59] sm:$0x7f] %vm823_vm3, %v6906_v42  ;;  %827 = vst.msk [vmem:[#allocation2 + $0x71] sm:$0x7f] %vm823_vm3, %v6906_v42  ;;  %v4580_v49 = vld [vmem:[%s8870_s5 + $0x30] sm:$0xff] }
  0xc8   : > { %v281_v51 = vpop.trf.xlu0  ;;  %828 = vst.msk [vmem:[#allocation2 + $0x89] sm:$0x7f] %vm823_vm3, %v6906_v42  ;;  %829 = vst.msk [vmem:[#allocation2 + $0xa1] sm:$0x7f] %vm823_vm3, %v6906_v42 }
  0xc9   : > { %v406_v52 = vmax.f32 %v374_v50, 0.0  ;;  %v336_v53 = vmul.f32 %v7002_v3, %v281_v51  ;;  %830 = vst.msk [vmem:[#allocation2 + $0xb9] sm:$0x7f] %vm823_vm3, %v6906_v42  ;;  %831 = vst.msk [vmem:[#allocation2 + $0xd1] sm:$0x7f] %vm823_vm3, %v6906_v42  ;;  %v4581_v50 = vld [vmem:[%s8870_s5 + $0x38] sm:$0xff] }
  0xca   : > { %832 = vst.msk [vmem:[#allocation2 + $0xe9] sm:$0x7f] %vm823_vm3, %v6906_v42  ;;  %833 = vst.msk [vmem:[#allocation2 + $0x101] sm:$0x7f] %vm823_vm3, %v6906_v42  ;;  %v6324_v51 = vpack.c.bf16 %v4581_v50, %v4580_v49 }
  0xcb   : > { %v375_v54 = vadd.f32 %v7007_v5, %v336_v53  ;;  %5567 = vmatprep.mubr.msk.f32.mxu0 %vm436_vm1, %v406_v52  ;;  %834 = vst.msk [vmem:[#allocation2 + $0x119] sm:$0x7f] %vm823_vm3, %v6906_v42  ;;  %835 = vst.msk [vmem:[#allocation2 + $0x131] sm:$0x7f] %vm823_vm3, %v6906_v42 }
  0xcc   : > { %v282_v55 = vpop.trf.xlu0  ;;  %836 = vst.msk [vmem:[#allocation2 + $0x149] sm:$0x7f] %vm823_vm3, %v6906_v42  ;;  %837 = vst.msk [vmem:[#allocation2 + $0x161] sm:$0x7f] %vm823_vm3, %v6906_v42  ;;  %6325 = vmatprep.subr.bf16.mxu0 %v6324_v51 }
  0xcd   : > { %v407_v56 = vmax.f32 %v375_v54, 0.0  ;;  %v337_v57 = vmul.f32 %v7002_v3, %v282_v55  ;;  %838 = vst.msk [vmem:[#allocation2 + $0x179] sm:$0x7f] %vm823_vm3, %v6906_v42  ;;  %839 = vst.msk [vmem:[#allocation2 + $0x191] sm:$0x7f] %vm823_vm3, %v6906_v42  ;;  %6327 = vmatpush3.bf16.msra.mxu0 %v6324_v51 }
  0xce   : > { %807 = vst.msk [vmem:[#allocation2 + $0x18] sm:$0x1] %vm806_vm4, %v6906_v42  ;;  %808 = vst.msk [vmem:[#allocation2 + $0x30] sm:$0x1] %vm806_vm4, %v6906_v42 }
  0xcf   : > { %v376_v58 = vadd.f32 %v7007_v5, %v337_v57  ;;  %5568 = vmatmul.mubr.msk.f32.gmra.mrb[10].mxu0 %vm436_vm1, %v407_v56  ;;  %809 = vst.msk [vmem:[#allocation2 + $0x48] sm:$0x1] %vm806_vm4, %v6906_v42  ;;  %810 = vst.msk [vmem:[#allocation2 + $0x60] sm:$0x1] %vm806_vm4, %v6906_v42 }
  0xd0   : > { %v283_v59 = vpop.trf.xlu0  ;;  %811 = vst.msk [vmem:[#allocation2 + $0x78] sm:$0x1] %vm806_vm4, %v6906_v42  ;;  %812 = vst.msk [vmem:[#allocation2 + $0x90] sm:$0x1] %vm806_vm4, %v6906_v42 }
  0xd1   : > { %v408_v60 = vmax.f32 %v376_v58, 0.0  ;;  %v338_v61 = vmul.f32 %v7002_v3, %v283_v59  ;;  %813 = vst.msk [vmem:[#allocation2 + $0xa8] sm:$0x1] %vm806_vm4, %v6906_v42  ;;  %814 = vst.msk [vmem:[#allocation2 + $0xc0] sm:$0x1] %vm806_vm4, %v6906_v42 }
  0xd2   : > { %815 = vst.msk [vmem:[#allocation2 + $0xd8] sm:$0x1] %vm806_vm4, %v6906_v42  ;;  %816 = vst.msk [vmem:[#allocation2 + $0xf0] sm:$0x1] %vm806_vm4, %v6906_v42 }
  0xd3   : > { %v377_v62 = vadd.f32 %v7007_v5, %v338_v61  ;;  %5570 = vmatprep.mubr.msk.f32.mxu0 %vm436_vm1, %v408_v60  ;;  %817 = vst.msk [vmem:[#allocation2 + $0x108] sm:$0x1] %vm806_vm4, %v6906_v42  ;;  %818 = vst.msk [vmem:[#allocation2 + $0x120] sm:$0x1] %vm806_vm4, %v6906_v42 }
  0xd4   : > { %v284_v63 = vpop.trf.xlu0  ;;  %819 = vst.msk [vmem:[#allocation2 + $0x138] sm:$0x1] %vm806_vm4, %v6906_v42  ;;  %820 = vst.msk [vmem:[#allocation2 + $0x150] sm:$0x1] %vm806_vm4, %v6906_v42 }
  0xd5   : > { %v409_v0 = vmax.f32 %v377_v62, 0.0  ;;  %v339_v1 = vmul.f32 %v7002_v3, %v284_v63  ;;  %821 = vst.msk [vmem:[#allocation2 + $0x168] sm:$0x1] %vm806_vm4, %v6906_v42  ;;  %822 = vst.msk [vmem:[#allocation2 + $0x180] sm:$0x1] %vm806_vm4, %v6906_v42 }
  0xd7   : > { %v378_v2 = vadd.f32 %v7007_v5, %v339_v1  ;;  %5571 = vmatmul.mubr.msk.f32.gmra.mrb[12].mxu0 %vm436_vm1, %v409_v0 }
  0xd8   : > { %v285_v4 = vpop.trf.xlu0 }
  0xd9   : > { %v410_v6 = vmax.f32 %v378_v2, 0.0  ;;  %v340_v7 = vmul.f32 %v7002_v3, %v285_v4 }
  0xdb   : > { %v379_v8 = vadd.f32 %v7007_v5, %v340_v7  ;;  %5573 = vmatprep.mubr.msk.f32.mxu0 %vm436_vm1, %v410_v6 }
  0xdc   : > { %v302_v9 = vpop.trf.xlu0 }
  0xdd   : > { %v411_v10 = vmax.f32 %v379_v8, 0.0  ;;  %v341_v11 = vmul.f32 %v7002_v3, %v302_v9 }
  0xdf   : > { %v380_v12 = vadd.f32 %v7007_v5, %v341_v11  ;;  %5574 = vmatmul.mubr.msk.f32.gmra.mrb[14].mxu0 %vm436_vm1, %v411_v10  ;;  %v7150_v10 = vld [vmem:[#allocation2] sm:$0xff]  ;;  %v7152_v11 = vld [vmem:[#allocation2 + $0x8] sm:$0xff] }
  0xe0   : > { %v303_v13 = vpop.trf.xlu0 }
  0xe1   : > { %v412_v14 = vmax.f32 %v380_v12, 0.0  ;;  %v342_v15 = vmul.f32 %v7002_v3, %v303_v13 }
  0xe3   : > { %v381_v16 = vadd.f32 %v7007_v5, %v342_v15  ;;  %5576 = vmatprep.mubr.msk.f32.mxu0 %vm436_vm1, %v412_v14 }
  0xe4   : > { %v304_v17 = vpop.trf.xlu0 }
  0xe5   : > { %v413_v18 = vmax.f32 %v381_v16, 0.0  ;;  %v343_v19 = vmul.f32 %v7002_v3, %v304_v17  ;;  %v986_v16 = vrot.slane %v7150_v10, 1  ;;  %v987_v17 = vrot.slane %v7152_v11, 1 }
  0xe7   : > { %v382_v20 = vadd.f32 %v7007_v5, %v343_v19  ;;  %5577 = vmatmul.mubr.msk.f32.gmra.mrb[16].mxu0 %vm436_vm1, %v413_v18  ;;  %v7159_v18 = vld [vmem:[#allocation2 + $0x10] sm:$0xff]  ;;  %v4782_v19 = vld [vmem:[%s8870_s5 + $0x80] sm:$0xff] }
  0xe8   : > { %v305_v21 = vpop.trf.xlu0 }
  0xe9   : > { %v414_v22 = vmax.f32 %v382_v20, 0.0  ;;  %v344_v23 = vmul.f32 %v7002_v3, %v305_v21  ;;  %v4783_v20 = vld [vmem:[%s8870_s5 + $0x88] sm:$0xff] }
  0xea   : > { %v7167_v21 = vpack.c.bf16 %v4783_v20, %v4782_v19 }
  0xeb   : > { %v383_v24 = vadd.f32 %v7007_v5, %v344_v23  ;;  %5579 = vmatprep.mubr.msk.f32.mxu0 %vm436_vm1, %v414_v22 }
  0xec   : > { %v306_v25 = vpop.trf.xlu0  ;;  %9000 = vst [vmem:[#allocation6_spill] sm:$0xff] %v7167_v21  ;;  %6392 = vmatprep.subr.bf16.mxu1 %v7167_v21 }
  0xed   : > { %v415_v26 = vmax.f32 %v383_v24, 0.0  ;;  %v345_v27 = vmul.f32 %v7002_v3, %v306_v25  ;;  %v988_v24 = vsel %vm985_vm5, %v986_v16, %v987_v17  ;;  %6394 = vmatpush3.bf16.msra.mxu1 %v7167_v21  ;;  %v4784_v25 = vld [vmem:[%s8870_s5 + $0x90] sm:$0xff] }
  0xef   : > { %v384_v28 = vadd.f32 %v7007_v5, %v345_v27  ;;  %5580 = vmatmul.mubr.msk.f32.gmra.mrb[18].mxu0 %vm436_vm1, %v415_v26  ;;  %v4785_v26 = vld [vmem:[%s8870_s5 + $0x98] sm:$0xff] }
  0xf0   : > { %v307_v29 = vpop.trf.xlu0 }
  0xf1   : > { %v416_v30 = vmax.f32 %v384_v28, 0.0  ;;  %v346_v31 = vmul.f32 %v7002_v3, %v307_v29  ;;  %v927_v28 = vld [vmem:[%s8870_s5] sm:$0xff]  ;;  %v928_v29 = vld [vmem:[%s8870_s5 + $0x8] sm:$0xff] }
  0xf3   : > { %v385_v32 = vadd.f32 %v7007_v5, %v346_v31  ;;  %5582 = vmatprep.mubr.msk.f32.mxu0 %vm436_vm1, %v416_v30  ;;  %v6328_v30 = vpack.c.bf16 %v928_v29, %v927_v28  ;;  %v4834_v31 = vld [vmem:[%s8870_s5 + $0xa0] sm:$0xff] }
  0xf4   : > { %v308_v33 = vpop.trf.xlu0 }
  0xf5   : > { %v417_v34 = vmax.f32 %v385_v32, 0.0  ;;  %v347_v35 = vmul.f32 %v7002_v3, %v308_v33  ;;  %6329 = vmatprep.subr.bf16.mxu0 %v6328_v30  ;;  %v4835_v32 = vld [vmem:[%s8870_s5 + $0xa8] sm:$0xff] }
  0xf6   : > { %v7201_v33 = vpack.c.bf16 %v4835_v32, %v4834_v31 }
  0xf7   : > { %v386_v36 = vadd.f32 %v7007_v5, %v347_v35  ;;  %5583 = vmatmul.mubr.msk.f32.gmra.mrb[20].mxu0 %vm436_vm1, %v417_v34  ;;  %v929_v34 = vld [vmem:[%s8870_s5 + $0x10] sm:$0xff]  ;;  %v930_v35 = vld [vmem:[%s8870_s5 + $0x18] sm:$0xff] }
  0xf8   : > { %v309_v37 = vpop.trf.xlu0 }
  0xf9   : > { %v418_v38 = vmax.f32 %v386_v36, 0.0  ;;  %v348_v39 = vmul.f32 %v7002_v3, %v309_v37  ;;  %v6332_v36 = vpack.c.bf16 %v930_v35, %v929_v34  ;;  %v7213_v37 = vld [vmem:[%s8869_s4] ss:$0 sm:$0xff] }
  0xfb   : > { %v387_v40 = vadd.f32 %v7007_v5, %v348_v39  ;;  %5585 = vmatprep.mubr.msk.f32.mxu0 %vm436_vm1, %v418_v38 }
  0xfc   : > { %v310_v41 = vpop.trf.xlu0 }
  0xfd   : > { %v419_v43 = vmax.f32 %v387_v40, 0.0  ;;  %v349_v44 = vmul.f32 %v7002_v3, %v310_v41 }
  0xff   : > { %v388_v45 = vadd.f32 %v7007_v5, %v349_v44  ;;  %5586 = vmatmul.mubr.msk.f32.gmra.mrb[22].mxu0 %vm436_vm1, %v419_v43 }
 0x100   : > { %v311_v46 = vpop.trf.xlu0 }
 0x101   : > { %v420_v47 = vmax.f32 %v388_v45, 0.0  ;;  %v350_v48 = vmul.f32 %v7002_v3, %v311_v46 }
 0x103   : > { %v389_v52 = vadd.f32 %v7007_v5, %v350_v48  ;;  %5588 = vmatprep.mubr.msk.f32.mxu0 %vm436_vm1, %v420_v47 }
 0x104   : > { %v312_v53 = vpop.trf.xlu0 }
 0x105   : > { %v421_v54 = vmax.f32 %v389_v52, 0.0  ;;  %v351_v55 = vmul.f32 %v7002_v3, %v312_v53 }
 0x107   : > { %v390_v56 = vadd.f32 %v7007_v5, %v351_v55  ;;  %5589 = vmatmul.mubr.msk.f32.gmra.mrb[24].mxu0 %vm436_vm1, %v421_v54 }
 0x108   : > { %v313_v57 = vpop.trf.xlu0 }
 0x109   : > { %v422_v58 = vmax.f32 %v390_v56, 0.0  ;;  %v352_v59 = vmul.f32 %v7002_v3, %v313_v57 }
 0x10b   : > { %v391_v60 = vadd.f32 %v7007_v5, %v352_v59  ;;  %5591 = vmatprep.mubr.msk.f32.mxu0 %vm436_vm1, %v422_v58 }
 0x10c   : > { %v314_v61 = vpop.trf.xlu0 }
 0x10d   : > { %v423_v62 = vmax.f32 %v391_v60, 0.0  ;;  %v353_v63 = vmul.f32 %v7002_v3, %v314_v61  ;;  %v4678_v61 = vld [vmem:[%s8870_s5 + $0x40] sm:$0xff] }
 0x10f   : > { %v392_v0 = vadd.f32 %v7007_v5, %v353_v63  ;;  %5592 = vmatmul.mubr.msk.f32.gmra.mrb[26].mxu0 %vm436_vm1, %v423_v62  ;;  %v4679_v62 = vld [vmem:[%s8870_s5 + $0x48] sm:$0xff] }
 0x110   : > { %v315_v1 = vpop.trf.xlu0 }
 0x111   : > { %v424_v2 = vmax.f32 %v392_v0, 0.0  ;;  %v354_v4 = vmul.f32 %v7002_v3, %v315_v1  ;;  %v7250_v1 = vpack.c.bf16 %v4679_v62, %v4678_v61 }
 0x113   : > { %v393_v6 = vadd.f32 %v7007_v5, %v354_v4  ;;  %5594 = vmatprep.mubr.msk.f32.mxu0 %vm436_vm1, %v424_v2 }
 0x114   : > { %v316_v7 = vpop.trf.xlu0 }
 0x115   : > { %v425_v8 = vmax.f32 %v393_v6, 0.0  ;;  %v355_v9 = vmul.f32 %v7002_v3, %v316_v7 }
 0x117   : > { %v394_v12 = vadd.f32 %v7007_v5, %v355_v9  ;;  %5595 = vmatmul.mubr.msk.f32.gmra.mrb[28].mxu0 %vm436_vm1, %v425_v8 }
 0x118   : > { %v317_v13 = vpop.trf.xlu0 }
 0x119   : > { %v426_v14 = vmax.f32 %v394_v12, 0.0  ;;  %v356_v15 = vmul.f32 %v7002_v3, %v317_v13  ;;  %v989_v3 = vrot.slane %v7159_v18, 1 }
 0x11b   : > { %v395_v22 = vadd.f32 %v7007_v5, %v356_v15  ;;  %5597 = vmatprep.mubr.msk.f32.mxu0 %vm436_vm1, %v426_v14  ;;  %v7181_v5 = vpack.c.bf16 %v4785_v26, %v4784_v25  ;;  %v990_v27 = vsel %vm985_vm5, %v987_v17, %v989_v3 }
 0x11d   : > { %v427_v23 = vmax.f32 %v395_v22, 0.0  ;;  %9001 = vst [vmem:[#allocation7_spill] sm:$0xff] %v7181_v5  ;;  %6393 = vmatprep.subr.bf16.mxu1 %v7181_v5 }
 0x11e   : > { %6395 = vmatpush3.bf16.msra.mxu1 %v7181_v5  ;;  %v4680_v5 = vld [vmem:[%s8870_s5 + $0x50] sm:$0xff] }
 0x11f   : > { %5598 = vmatmul.mubr.msk.f32.gmra.mrb[30].mxu0 %vm436_vm1, %v427_v23  ;;  %6361 = vmatprep.subr.bf16.mxu1 %v7201_v33 }
 0x120   : > { %5608 = vmatprep.mubr.msk.f32.mxu0 %vm794_vm2, %v988_v24 }
 0x123   : > { %5609 = vmatmul.mubr.msk.f32.vlgmr.msra.gmra.mrb[32].mxu0 %vm794_vm2, %v990_v27 }
 0x124   : > { %6331 = vmatpush3.bf16.msra.mxu0 %v6328_v30 }
 0x125   : > { %6333 = vmatprep.subr.bf16.mxu0 %v6332_v36 }
 0x128   : > { %6335 = vmatpush3.bf16.msra.mxu0 %v6332_v36 }
 0x129   : > { %6337 = vmatprep.subr.bf16.mxu0 %v7250_v1 }
 0x17a   : > { %v5554_v38 = vpop.f32.mrb[0].mxu0 }
 0x17b   : > { %v609_v39 = vadd.f32 %v5554_v38, %v7213_v37  ;;  %v603_v40 = vpop.f32.mrb[1].mxu0 }
 0x17c   : > { %v604_v41 = vadd.f32 %v7213_v37, %v603_v40 }
 0x17d   : > { %v763_v42 = vmax.f32 %v609_v39, 0.0 }
 0x17e   : > { %v762_v43 = vmax.f32 %v604_v41, 0.0 }
 0x17f   : > { %841 = vst.msk [vmem:[#allocation2 + $0x21] sm:$0xff] %vm794_vm2, %v763_v42  ;;  %v4836_v42 = vld [vmem:[%s8870_s5 + $0xb0] sm:$0xff] }
 0x180   : > { %840 = vst.msk [vmem:[#allocation2 + $0x19] sm:$0xff] %vm794_vm2, %v762_v43 }
 0x182   : > { %v5557_v44 = vpop.f32.mrb[2].mxu0 }
 0x183   : > { %v619_v45 = vadd.f32 %v5557_v44, %v7213_v37  ;;  %v613_v46 = vpop.f32.mrb[3].mxu0 }
 0x184   : > { %v614_v47 = vadd.f32 %v7213_v37, %v613_v46 }
 0x185   : > { %v765_v48 = vmax.f32 %v619_v45, 0.0  ;;  %v4837_v45 = vld [vmem:[%s8870_s5 + $0xb8] sm:$0xff] }
 0x186   : > { %v764_v49 = vmax.f32 %v614_v47, 0.0  ;;  %v7221_v50 = vld [vmem:[#allocation2 + $0x28] sm:$0xff] }
 0x187   : > { %843 = vst.msk [vmem:[#allocation2 + $0x39] sm:$0xff] %vm794_vm2, %v765_v48  ;;  %v7224_v51 = vld [vmem:[#allocation2 + $0x18] sm:$0xff]  ;;  %v7226_v52 = vld [vmem:[#allocation2 + $0x20] sm:$0xff]  ;;  %v995_v55 = vrot.slane %v7221_v50, 1  ;;  %v1868_v21 = vrot.slane %v7221_v50, 2 }
 0x188   : > { %842 = vst.msk [vmem:[#allocation2 + $0x31] sm:$0xff] %vm794_vm2, %v764_v49  ;;  %v991_v53 = vrot.slane %v7224_v51, 1  ;;  %v993_v54 = vrot.slane %v7226_v52, 1 }
 0x18a   : > { %v5560_v56 = vpop.f32.mrb[4].mxu0  ;;  %v992_v57 = vsel %vm985_vm5, %v989_v3, %v991_v53  ;;  %v7234_v58 = vsel %vm985_vm5, %v991_v53, %v993_v54  ;;  %v7248_v0 = vsel %vm985_vm5, %v993_v54, %v995_v55 }
 0x18b   : > { %9002 = vst [vmem:[#allocation8_spill] sm:$0xff] %v7234_v58  ;;  %v629_v59 = vadd.f32 %v5560_v56, %v7213_v37  ;;  %v623_v60 = vpop.f32.mrb[5].mxu0  ;;  %5611 = vmatprep.mubr.msk.f32.mxu0 %vm794_vm2, %v992_v57  ;;  %9003 = vst [vmem:[#allocation9_spill] sm:$0xff] %v7248_v0 }
 0x18c   : > { %v624_v63 = vadd.f32 %v7213_v37, %v623_v60  ;;  %5612 = vmatmul.mubr.msk.f32.gmra.mrb[34].mxu0 %vm794_vm2, %v7234_v58  ;;  %v4887_v60 = vld [vmem:[%s8870_s5 + $0xc8] sm:$0xff] }
 0x18d   : > { %v767_v2 = vmax.f32 %v629_v59, 0.0  ;;  %5614 = vmatprep.mubr.msk.f32.mxu0 %vm794_vm2, %v7248_v0  ;;  %v4886_v59 = vld [vmem:[%s8870_s5 + $0xc0] sm:$0xff] }
 0x18e   : > { %v766_v4 = vmax.f32 %v624_v63, 0.0  ;;  %v7260_v8 = vld [vmem:[#allocation2 + $0x40] sm:$0xff] }
 0x18f   : > { %845 = vst.msk [vmem:[#allocation2 + $0x51] sm:$0xff] %vm794_vm2, %v767_v2  ;;  %v7256_v6 = vld [vmem:[#allocation2 + $0x30] sm:$0xff]  ;;  %v7258_v7 = vld [vmem:[#allocation2 + $0x38] sm:$0xff]  ;;  %v1001_v16 = vrot.slane %v7260_v8, 1 }
 0x190   : > { %844 = vst.msk [vmem:[#allocation2 + $0x49] sm:$0xff] %vm794_vm2, %v766_v4  ;;  %v997_v9 = vrot.slane %v7256_v6, 1  ;;  %v999_v12 = vrot.slane %v7258_v7, 1 }
 0x192   : > { %v5563_v13 = vpop.f32.mrb[6].mxu0  ;;  %v7266_v14 = vsel %vm985_vm5, %v995_v55, %v997_v9  ;;  %v7269_v15 = vsel %vm985_vm5, %v997_v9, %v999_v12  ;;  %v7279_v23 = vsel %vm985_vm5, %v999_v12, %v1001_v16  ;;  %v6364_v55 = vpack.c.bf16 %v4837_v45, %v4836_v42 }
 0x193   : > { %9004 = vst [vmem:[#allocation10_spill] sm:$0xff] %v7266_v14  ;;  %9005 = vst [vmem:[#allocation11_spill] sm:$0xff] %v7269_v15  ;;  %v639_v17 = vadd.f32 %v5563_v13, %v7213_v37  ;;  %v633_v19 = vpop.f32.mrb[7].mxu0  ;;  %5615 = vmatmul.mubr.msk.f32.gmra.mrb[36].mxu0 %vm794_vm2, %v7266_v14  ;;  %v7358_v9 = vpack.c.bf16 %v4887_v60, %v4886_v59 }
 0x194   : > { %v634_v20 = vadd.f32 %v7213_v37, %v633_v19  ;;  %5617 = vmatprep.mubr.msk.f32.mxu0 %vm794_vm2, %v7269_v15  ;;  %9006 = vst [vmem:[#allocation12_spill] sm:$0xff] %v7279_v23 }
 0x195   : > { %v769_v22 = vmax.f32 %v639_v17, 0.0 }
 0x196   : > { %v768_v3 = vmax.f32 %v634_v20, 0.0  ;;  %v7281_v24 = vld [vmem:[#allocation2 + $0x58] sm:$0xff] }
 0x197   : > { %847 = vst.msk [vmem:[#allocation2 + $0x69] sm:$0xff] %vm794_vm2, %v769_v22  ;;  %5618 = vmatmul.mubr.msk.f32.gmra.mrb[38].mxu0 %vm794_vm2, %v7279_v23  ;;  %v7286_v25 = vld [vmem:[#allocation2 + $0x48] sm:$0xff]  ;;  %v7288_v26 = vld [vmem:[#allocation2 + $0x50] sm:$0xff]  ;;  %v1007_v29 = vrot.slane %v7281_v24, 1 }
 0x198   : > { %846 = vst.msk [vmem:[#allocation2 + $0x61] sm:$0xff] %vm794_vm2, %v768_v3  ;;  %v1003_v27 = vrot.slane %v7286_v25, 1  ;;  %v1005_v28 = vrot.slane %v7288_v26, 1 }
 0x19a   : > { %v5566_v30 = vpop.f32.mrb[8].mxu0  ;;  %v7295_v31 = vsel %vm985_vm5, %v1001_v16, %v1003_v27  ;;  %v7298_v32 = vsel %vm985_vm5, %v1003_v27, %v1005_v28  ;;  %v7307_v38 = vsel %vm985_vm5, %v1005_v28, %v1007_v29 }
 0x19b   : > { %9007 = vst [vmem:[#allocation13_spill] sm:$0xff] %v7295_v31  ;;  %9008 = vst [vmem:[#allocation14_spill] sm:$0xff] %v7298_v32  ;;  %v649_v34 = vadd.f32 %v5566_v30, %v7213_v37  ;;  %v643_v35 = vpop.f32.mrb[9].mxu0  ;;  %5620 = vmatprep.mubr.msk.f32.mxu0 %vm794_vm2, %v7295_v31 }
 0x19c   : > { %v644_v36 = vadd.f32 %v7213_v37, %v643_v35  ;;  %5621 = vmatmul.mubr.msk.f32.gmra.mrb[40].mxu0 %vm794_vm2, %v7298_v32  ;;  %9009 = vst [vmem:[#allocation15_spill] sm:$0xff] %v7307_v38 }
 0x19d   : > { %v771_v39 = vmax.f32 %v649_v34, 0.0  ;;  %5623 = vmatprep.mubr.msk.f32.mxu0 %vm794_vm2, %v7307_v38 }
 0x19e   : > { %v770_v40 = vmax.f32 %v644_v36, 0.0  ;;  %v7311_v41 = vld [vmem:[#allocation2 + $0x70] sm:$0xff] }
 0x19f   : > { %849 = vst.msk [vmem:[#allocation2 + $0x81] sm:$0xff] %vm794_vm2, %v771_v39  ;;  %v7317_v43 = vld [vmem:[#allocation2 + $0x60] sm:$0xff]  ;;  %v7319_v44 = vld [vmem:[#allocation2 + $0x68] sm:$0xff]  ;;  %v1013_v48 = vrot.slane %v7311_v41, 1 }
 0x1a0   : > { %848 = vst.msk [vmem:[#allocation2 + $0x79] sm:$0xff] %vm794_vm2, %v770_v40  ;;  %v1009_v46 = vrot.slane %v7317_v43, 1  ;;  %v1011_v47 = vrot.slane %v7319_v44, 1 }
 0x1a2   : > { %v5569_v49 = vpop.f32.mrb[10].mxu0  ;;  %v7329_v53 = vsel %vm985_vm5, %v1007_v29, %v1009_v46  ;;  %v7332_v54 = vsel %vm985_vm5, %v1009_v46, %v1011_v47  ;;  %v7351_v62 = vsel %vm985_vm5, %v1011_v47, %v1013_v48 }
 0x1a3   : > { %9010 = vst [vmem:[#allocation16_spill] sm:$0xff] %v7329_v53  ;;  %9011 = vst [vmem:[#allocation17_spill] sm:$0xff] %v7332_v54  ;;  %v659_v56 = vadd.f32 %v5569_v49, %v7213_v37  ;;  %v653_v57 = vpop.f32.mrb[11].mxu0  ;;  %5624 = vmatmul.mubr.msk.f32.gmra.mrb[42].mxu0 %vm794_vm2, %v7329_v53  ;;  %5940 = vmatprep.mubr.msk.f32.mxu1 %vm794_vm2, %v7329_v53 }
 0x1a4   : > { %v654_v61 = vadd.f32 %v7213_v37, %v653_v57  ;;  %5626 = vmatprep.mubr.msk.f32.mxu0 %vm794_vm2, %v7332_v54  ;;  %5941 = vmatmul.mubr.msk.f32.vlgmr.msra.gmra.mrb[0].mxu1 %vm794_vm2, %v7332_v54  ;;  %9012 = vst [vmem:[#allocation18_spill] sm:$0xff] %v7351_v62 }
 0x1a5   : > { %v773_v63 = vmax.f32 %v659_v56, 0.0  ;;  %5943 = vmatprep.mubr.msk.f32.mxu1 %vm794_vm2, %v7351_v62  ;;  %6363 = vmatpush3.bf16.msra.mxu1 %v7201_v33 }
 0x1a6   : > { %v772_v2 = vmax.f32 %v654_v61, 0.0  ;;  %v7356_v4 = vld [vmem:[#allocation2 + $0x88] sm:$0xff]  ;;  %6365 = vmatprep.subr.bf16.mxu1 %v6364_v55 }
 0x1a7   : > { %851 = vst.msk [vmem:[#allocation2 + $0x99] sm:$0xff] %vm794_vm2, %v773_v63  ;;  %5627 = vmatmul.mubr.msk.f32.gmra.mrb[44].mxu0 %vm794_vm2, %v7351_v62  ;;  %v7363_v12 = vld [vmem:[#allocation2 + $0x78] sm:$0xff]  ;;  %v7365_v13 = vld [vmem:[#allocation2 + $0x80] sm:$0xff]  ;;  %v1019_v17 = vrot.slane %v7356_v4, 1 }
 0x1a8   : > { %850 = vst.msk [vmem:[#allocation2 + $0x91] sm:$0xff] %vm794_vm2, %v772_v2  ;;  %v1015_v16 = vrot.slane %v7363_v12, 1  ;;  %v1017_v33 = vrot.slane %v7365_v13, 1 }
 0x1a9   : > { %6367 = vmatpush3.bf16.msra.mxu1 %v6364_v55 }
 0x1aa   : > { %v5572_v19 = vpop.f32.mrb[12].mxu0  ;;  %v7372_v20 = vsel %vm985_vm5, %v1013_v48, %v1015_v16  ;;  %v7375_v22 = vsel %vm985_vm5, %v1015_v16, %v1017_v33  ;;  %6369 = vmatprep.subr.bf16.mxu1 %v7358_v9  ;;  %v7389_v29 = vsel %vm985_vm5, %v1017_v33, %v1019_v17 }
 0x1ab   : > { %9013 = vst [vmem:[#allocation19_spill] sm:$0xff] %v7372_v20  ;;  %9014 = vst [vmem:[#allocation20_spill] sm:$0xff] %v7375_v22  ;;  %v669_v3 = vadd.f32 %v5572_v19, %v7213_v37  ;;  %v663_v27 = vpop.f32.mrb[13].mxu0  ;;  %5629 = vmatprep.mubr.msk.f32.mxu0 %vm794_vm2, %v7372_v20  ;;  %5944 = vmatmul.mubr.msk.f32.gmra.mrb[2].mxu1 %vm794_vm2, %v7372_v20 }
 0x1ac   : > { %v664_v28 = vadd.f32 %v7213_v37, %v663_v27  ;;  %5630 = vmatmul.mubr.msk.f32.gmra.mrb[46].mxu0 %vm794_vm2, %v7375_v22  ;;  %5946 = vmatprep.mubr.msk.f32.mxu1 %vm794_vm2, %v7375_v22  ;;  %9015 = vst [vmem:[#allocation21_spill] sm:$0xff] %v7389_v29 }
 0x1ad   : > { %v775_v30 = vmax.f32 %v669_v3, 0.0  ;;  %5632 = vmatprep.mubr.msk.f32.mxu0 %vm794_vm2, %v7389_v29 }
 0x1ae   : > { %v774_v34 = vmax.f32 %v664_v28, 0.0  ;;  %v7393_v35 = vld [vmem:[#allocation2 + $0xa0] sm:$0xff] }
 0x1af   : > { %853 = vst.msk [vmem:[#allocation2 + $0xb1] sm:$0xff] %vm794_vm2, %v775_v30  ;;  %5947 = vmatmul.mubr.msk.f32.gmra.mrb[4].mxu1 %vm794_vm2, %v7389_v29  ;;  %v7398_v36 = vld [vmem:[#allocation2 + $0x90] sm:$0xff]  ;;  %v7400_v39 = vld [vmem:[#allocation2 + $0x98] sm:$0xff]  ;;  %v1025_v45 = vrot.slane %v7393_v35, 1 }
 0x1b0   : > { %852 = vst.msk [vmem:[#allocation2 + $0xa9] sm:$0xff] %vm794_vm2, %v774_v34  ;;  %v1021_v40 = vrot.slane %v7398_v36, 1  ;;  %v1023_v42 = vrot.slane %v7400_v39, 1 }
 0x1b2   : > { %v5575_v46 = vpop.f32.mrb[14].mxu0  ;;  %v7407_v47 = vsel %vm985_vm5, %v1019_v17, %v1021_v40  ;;  %v7410_v48 = vsel %vm985_vm5, %v1021_v40, %v1023_v42  ;;  %v7423_v57 = vsel %vm985_vm5, %v1023_v42, %v1025_v45 }
 0x1b3   : > { %9016 = vst [vmem:[#allocation22_spill] sm:$0xff] %v7407_v47  ;;  %9017 = vst [vmem:[#allocation23_spill] sm:$0xff] %v7410_v48  ;;  %v679_v49 = vadd.f32 %v5575_v46, %v7213_v37  ;;  %v673_v55 = vpop.f32.mrb[15].mxu0  ;;  %5633 = vmatmul.mubr.msk.f32.gmra.mrb[48].mxu0 %vm794_vm2, %v7407_v47  ;;  %5949 = vmatprep.mubr.msk.f32.mxu1 %vm794_vm2, %v7407_v47 }
 0x1b4   : > { %v674_v56 = vadd.f32 %v7213_v37, %v673_v55  ;;  %5635 = vmatprep.mubr.msk.f32.mxu0 %vm794_vm2, %v7410_v48  ;;  %5950 = vmatmul.mubr.msk.f32.gmra.mrb[6].mxu1 %vm794_vm2, %v7410_v48  ;;  %9018 = vst [vmem:[#allocation24_spill] sm:$0xff] %v7423_v57 }
 0x1b5   : > { %v777_v59 = vmax.f32 %v679_v49, 0.0  ;;  %5952 = vmatprep.mubr.msk.f32.mxu1 %vm794_vm2, %v7423_v57 }
 0x1b6   : > { %v776_v60 = vmax.f32 %v674_v56, 0.0  ;;  %v7427_v61 = vld [vmem:[#allocation2 + $0xb8] sm:$0xff] }
 0x1b7   : > { %855 = vst.msk [vmem:[#allocation2 + $0xc9] sm:$0xff] %vm794_vm2, %v777_v59  ;;  %5636 = vmatmul.mubr.msk.f32.gmra.mrb[50].mxu0 %vm794_vm2, %v7423_v57  ;;  %v7432_v63 = vld [vmem:[#allocation2 + $0xa8] sm:$0xff]  ;;  %v7434_v2 = vld [vmem:[#allocation2 + $0xb0] sm:$0xff]  ;;  %v1031_v17 = vrot.slane %v7427_v61, 1 }
 0x1b8   : > { %854 = vst.msk [vmem:[#allocation2 + $0xc1] sm:$0xff] %vm794_vm2, %v776_v60  ;;  %v1027_v16 = vrot.slane %v7432_v63, 1  ;;  %v1029_v33 = vrot.slane %v7434_v2, 1 }
 0x1ba   : > { %v5578_v19 = vpop.f32.mrb[16].mxu0  ;;  %v7441_v3 = vsel %vm985_vm5, %v1025_v45, %v1027_v16  ;;  %v7444_v27 = vsel %vm985_vm5, %v1027_v16, %v1029_v33  ;;  %v7457_v40 = vsel %vm985_vm5, %v1029_v33, %v1031_v17 }
 0x1bb   : > { %9019 = vst [vmem:[#allocation25_spill] sm:$0xff] %v7441_v3  ;;  %9020 = vst [vmem:[#allocation26_spill] sm:$0xff] %v7444_v27  ;;  %v689_v28 = vadd.f32 %v5578_v19, %v7213_v37  ;;  %v683_v30 = vpop.f32.mrb[17].mxu0  ;;  %5638 = vmatprep.mubr.msk.f32.mxu0 %vm794_vm2, %v7441_v3  ;;  %5953 = vmatmul.mubr.msk.f32.gmra.mrb[8].mxu1 %vm794_vm2, %v7441_v3 }
 0x1bc   : > { %v684_v34 = vadd.f32 %v7213_v37, %v683_v30  ;;  %5639 = vmatmul.mubr.msk.f32.gmra.mrb[52].mxu0 %vm794_vm2, %v7444_v27  ;;  %5955 = vmatprep.mubr.msk.f32.mxu1 %vm794_vm2, %v7444_v27  ;;  %9021 = vst [vmem:[#allocation27_spill] sm:$0xff] %v7457_v40 }
 0x1bd   : > { %v779_v42 = vmax.f32 %v689_v28, 0.0  ;;  %5641 = vmatprep.mubr.msk.f32.mxu0 %vm794_vm2, %v7457_v40 }
 0x1be   : > { %v778_v45 = vmax.f32 %v684_v34, 0.0  ;;  %v7461_v46 = vld [vmem:[#allocation2 + $0xd0] sm:$0xff] }
 0x1bf   : > { %857 = vst.msk [vmem:[#allocation2 + $0xe1] sm:$0xff] %vm794_vm2, %v779_v42  ;;  %5956 = vmatmul.mubr.msk.f32.gmra.mrb[10].mxu1 %vm794_vm2, %v7457_v40  ;;  %v7466_v49 = vld [vmem:[#allocation2 + $0xc0] sm:$0xff]  ;;  %v7468_v55 = vld [vmem:[#allocation2 + $0xc8] sm:$0xff]  ;;  %v1037_v60 = vrot.slane %v7461_v46, 1 }
 0x1c0   : > { %856 = vst.msk [vmem:[#allocation2 + $0xd9] sm:$0xff] %vm794_vm2, %v778_v45  ;;  %v1033_v56 = vrot.slane %v7466_v49, 1  ;;  %v1035_v59 = vrot.slane %v7468_v55, 1 }
 0x1c2   : > { %v5581_v16 = vpop.f32.mrb[18].mxu0  ;;  %v7475_v33 = vsel %vm985_vm5, %v1031_v17, %v1033_v56  ;;  %v7478_v19 = vsel %vm985_vm5, %v1033_v56, %v1035_v59  ;;  %v7491_v17 = vsel %vm985_vm5, %v1035_v59, %v1037_v60 }
 0x1c3   : > { %9022 = vst [vmem:[#allocation28_spill] sm:$0xff] %v7475_v33  ;;  %9023 = vst [vmem:[#allocation29_spill] sm:$0xff] %v7478_v19  ;;  %v699_v28 = vadd.f32 %v5581_v16, %v7213_v37  ;;  %v693_v30 = vpop.f32.mrb[19].mxu0  ;;  %5642 = vmatmul.mubr.msk.f32.gmra.mrb[54].mxu0 %vm794_vm2, %v7475_v33  ;;  %5958 = vmatprep.mubr.msk.f32.mxu1 %vm794_vm2, %v7475_v33 }
 0x1c4   : > { %v694_v34 = vadd.f32 %v7213_v37, %v693_v30  ;;  %5644 = vmatprep.mubr.msk.f32.mxu0 %vm794_vm2, %v7478_v19  ;;  %5959 = vmatmul.mubr.msk.f32.gmra.mrb[12].mxu1 %vm794_vm2, %v7478_v19  ;;  %9024 = vst [vmem:[#allocation30_spill] sm:$0xff] %v7491_v17 }
 0x1c5   : > { %v781_v42 = vmax.f32 %v699_v28, 0.0  ;;  %5961 = vmatprep.mubr.msk.f32.mxu1 %vm794_vm2, %v7491_v17 }
 0x1c6   : > { %v780_v45 = vmax.f32 %v694_v34, 0.0  ;;  %v7495_v56 = vld [vmem:[#allocation2 + $0xe8] sm:$0xff] }
 0x1c7   : > { %859 = vst.msk [vmem:[#allocation2 + $0xf9] sm:$0xff] %vm794_vm2, %v781_v42  ;;  %5645 = vmatmul.mubr.msk.f32.gmra.mrb[56].mxu0 %vm794_vm2, %v7491_v17  ;;  %v7500_v16 = vld [vmem:[#allocation2 + $0xd8] sm:$0xff]  ;;  %v7502_v30 = vld [vmem:[#allocation2 + $0xe0] sm:$0xff]  ;;  %v1043_v14 = vrot.slane %v7495_v56, 1 }
 0x1c8   : > { %858 = vst.msk [vmem:[#allocation2 + $0xf1] sm:$0xff] %vm794_vm2, %v780_v45  ;;  %v1039_v59 = vrot.slane %v7500_v16, 1  ;;  %v1041_v28 = vrot.slane %v7502_v30, 1 }
 0x1ca   : > { %v5584_v34 = vpop.f32.mrb[20].mxu0  ;;  %v7509_v0 = vsel %vm985_vm5, %v1037_v60, %v1039_v59  ;;  %v7512_v42 = vsel %vm985_vm5, %v1039_v59, %v1041_v28  ;;  %v7525_v60 = vsel %vm985_vm5, %v1041_v28, %v1043_v14 }
 0x1cb   : > { %9025 = vst [vmem:[#allocation31_spill] sm:$0xff] %v7509_v0  ;;  %9026 = vst [vmem:[#allocation32_spill] sm:$0xff] %v7512_v42  ;;  %v709_v58 = vadd.f32 %v5584_v34, %v7213_v37  ;;  %v703_v17 = vpop.f32.mrb[21].mxu0  ;;  %5647 = vmatprep.mubr.msk.f32.mxu0 %vm794_vm2, %v7509_v0  ;;  %5962 = vmatmul.mubr.msk.f32.gmra.mrb[14].mxu1 %vm794_vm2, %v7509_v0 }
 0x1cc   : > { %v704_v45 = vadd.f32 %v7213_v37, %v703_v17  ;;  %5648 = vmatmul.mubr.msk.f32.gmra.mrb[58].mxu0 %vm794_vm2, %v7512_v42  ;;  %5964 = vmatprep.mubr.msk.f32.mxu1 %vm794_vm2, %v7512_v42  ;;  %9027 = vst [vmem:[#allocation33_spill] sm:$0xff] %v7525_v60 }
 0x1cd   : > { %v783_v59 = vmax.f32 %v709_v58, 0.0  ;;  %5650 = vmatprep.mubr.msk.f32.mxu0 %vm794_vm2, %v7525_v60 }
 0x1ce   : > { %v782_v34 = vmax.f32 %v704_v45, 0.0  ;;  %v7529_v19 = vld [vmem:[#allocation2 + $0x100] sm:$0xff] }
 0x1cf   : > { %861 = vst.msk [vmem:[#allocation2 + $0x111] sm:$0xff] %vm794_vm2, %v783_v59  ;;  %5965 = vmatmul.mubr.msk.f32.gmra.mrb[16].mxu1 %vm794_vm2, %v7525_v60  ;;  %v7534_v17 = vld [vmem:[#allocation2 + $0xf0] sm:$0xff]  ;;  %v7536_v0 = vld [vmem:[#allocation2 + $0xf8] sm:$0xff]  ;;  %v1049_v42 = vrot.slane %v7529_v19, 1 }
 0x1d0   : > { %860 = vst.msk [vmem:[#allocation2 + $0x109] sm:$0xff] %vm794_vm2, %v782_v34  ;;  %v1045_v28 = vrot.slane %v7534_v17, 1  ;;  %v1047_v58 = vrot.slane %v7536_v0, 1 }
 0x1d2   : > { %v5587_v45 = vpop.f32.mrb[22].mxu0  ;;  %v7543_v33 = vsel %vm985_vm5, %v1043_v14, %v1045_v28  ;;  %v7546_v59 = vsel %vm985_vm5, %v1045_v28, %v1047_v58  ;;  %v7559_v14 = vsel %vm985_vm5, %v1047_v58, %v1049_v42 }
 0x1d3   : > { %9028 = vst [vmem:[#allocation34_spill] sm:$0xff] %v7543_v33  ;;  %9029 = vst [vmem:[#allocation35_spill] sm:$0xff] %v7546_v59  ;;  %v719_v60 = vadd.f32 %v5587_v45, %v7213_v37  ;;  %v713_v40 = vpop.f32.mrb[23].mxu0  ;;  %5651 = vmatmul.mubr.msk.f32.gmra.mrb[60].mxu0 %vm794_vm2, %v7543_v33  ;;  %5967 = vmatprep.mubr.msk.f32.mxu1 %vm794_vm2, %v7543_v33 }
 0x1d4   : > { %v714_v34 = vadd.f32 %v7213_v37, %v713_v40  ;;  %5653 = vmatprep.mubr.msk.f32.mxu0 %vm794_vm2, %v7546_v59  ;;  %5968 = vmatmul.mubr.msk.f32.gmra.mrb[18].mxu1 %vm794_vm2, %v7546_v59  ;;  %9030 = vst [vmem:[#allocation36_spill] sm:$0xff] %v7559_v14 }
 0x1d5   : > { %v785_v28 = vmax.f32 %v719_v60, 0.0  ;;  %5970 = vmatprep.mubr.msk.f32.mxu1 %vm794_vm2, %v7559_v14 }
 0x1d6   : > { %v784_v45 = vmax.f32 %v714_v34, 0.0  ;;  %v7563_v27 = vld [vmem:[#allocation2 + $0x118] sm:$0xff] }
 0x1d7   : > { %863 = vst.msk [vmem:[#allocation2 + $0x129] sm:$0xff] %vm794_vm2, %v785_v28  ;;  %5654 = vmatmul.mubr.msk.f32.gmra.mrb[62].mxu0 %vm794_vm2, %v7559_v14  ;;  %v7568_v40 = vld [vmem:[#allocation2 + $0x108] sm:$0xff]  ;;  %v7570_v33 = vld [vmem:[#allocation2 + $0x110] sm:$0xff]  ;;  %v1055_v59 = vrot.slane %v7563_v27, 1 }
 0x1d8   : > { %862 = vst.msk [vmem:[#allocation2 + $0x121] sm:$0xff] %vm794_vm2, %v784_v45  ;;  %v1051_v58 = vrot.slane %v7568_v40, 1  ;;  %v1053_v60 = vrot.slane %v7570_v33, 1 }
 0x1da   : > { %v5590_v34 = vpop.f32.mrb[24].mxu0  ;;  %v7577_v3 = vsel %vm985_vm5, %v1049_v42, %v1051_v58  ;;  %v7580_v28 = vsel %vm985_vm5, %v1051_v58, %v1053_v60  ;;  %v7593_v42 = vsel %vm985_vm5, %v1053_v60, %v1055_v59 }
 0x1db   : > { %9031 = vst [vmem:[#allocation37_spill] sm:$0xff] %v7577_v3  ;;  %9032 = vst [vmem:[#allocation38_spill] sm:$0xff] %v7580_v28  ;;  %v729_v14 = vadd.f32 %v5590_v34, %v7213_v37  ;;  %v723_v57 = vpop.f32.mrb[25].mxu0  ;;  %5656 = vmatprep.mubr.msk.f32.mxu0 %vm794_vm2, %v7577_v3  ;;  %5971 = vmatmul.mubr.msk.f32.gmra.mrb[20].mxu1 %vm794_vm2, %v7577_v3 }
 0x1dc   : > { %v724_v45 = vadd.f32 %v7213_v37, %v723_v57  ;;  %5657 = vmatmul.mubr.msk.f32.gmra.mrb[64].mxu0 %vm794_vm2, %v7580_v28  ;;  %5973 = vmatprep.mubr.msk.f32.mxu1 %vm794_vm2, %v7580_v28  ;;  %9033 = vst [vmem:[#allocation39_spill] sm:$0xff] %v7593_v42 }
 0x1dd   : > { %v787_v58 = vmax.f32 %v729_v14, 0.0  ;;  %5659 = vmatprep.mubr.msk.f32.mxu0 %vm794_vm2, %v7593_v42 }
 0x1de   : > { %v786_v34 = vmax.f32 %v724_v45, 0.0  ;;  %v7597_v48 = vld [vmem:[#allocation2 + $0x130] sm:$0xff] }
 0x1df   : > { %865 = vst.msk [vmem:[#allocation2 + $0x141] sm:$0xff] %vm794_vm2, %v787_v58  ;;  %5974 = vmatmul.mubr.msk.f32.gmra.mrb[22].mxu1 %vm794_vm2, %v7593_v42  ;;  %v7602_v57 = vld [vmem:[#allocation2 + $0x120] sm:$0xff]  ;;  %v7604_v3 = vld [vmem:[#allocation2 + $0x128] sm:$0xff]  ;;  %v1061_v28 = vrot.slane %v7597_v48, 1 }
 0x1e0   : > { %864 = vst.msk [vmem:[#allocation2 + $0x139] sm:$0xff] %vm794_vm2, %v786_v34  ;;  %v1057_v60 = vrot.slane %v7602_v57, 1  ;;  %v1059_v14 = vrot.slane %v7604_v3, 1 }
 0x1e2   : > { %v5593_v45 = vpop.f32.mrb[26].mxu0  ;;  %v7611_v47 = vsel %vm985_vm5, %v1055_v59, %v1057_v60  ;;  %v7614_v58 = vsel %vm985_vm5, %v1057_v60, %v1059_v14  ;;  %v7627_v59 = vsel %vm985_vm5, %v1059_v14, %v1061_v28 }
 0x1e3   : > { %9034 = vst [vmem:[#allocation40_spill] sm:$0xff] %v7611_v47  ;;  %9035 = vst [vmem:[#allocation41_spill] sm:$0xff] %v7614_v58  ;;  %v739_v42 = vadd.f32 %v5593_v45, %v7213_v37  ;;  %v733_v29 = vpop.f32.mrb[27].mxu0  ;;  %5660 = vmatmul.mubr.msk.f32.gmra.mrb[66].mxu0 %vm794_vm2, %v7611_v47  ;;  %5976 = vmatprep.mubr.msk.f32.mxu1 %vm794_vm2, %v7611_v47 }
 0x1e4   : > { %v734_v34 = vadd.f32 %v7213_v37, %v733_v29  ;;  %5662 = vmatprep.mubr.msk.f32.mxu0 %vm794_vm2, %v7614_v58  ;;  %5977 = vmatmul.mubr.msk.f32.gmra.mrb[24].mxu1 %vm794_vm2, %v7614_v58  ;;  %9036 = vst [vmem:[#allocation42_spill] sm:$0xff] %v7627_v59 }
 0x1e5   : > { %v789_v60 = vmax.f32 %v739_v42, 0.0  ;;  %5979 = vmatprep.mubr.msk.f32.mxu1 %vm794_vm2, %v7627_v59 }
 0x1e6   : > { %v788_v45 = vmax.f32 %v734_v34, 0.0  ;;  %v7631_v22 = vld [vmem:[#allocation2 + $0x148] sm:$0xff] }
 0x1e7   : > { %867 = vst.msk [vmem:[#allocation2 + $0x159] sm:$0xff] %vm794_vm2, %v789_v60  ;;  %5663 = vmatmul.mubr.msk.f32.gmra.mrb[68].mxu0 %vm794_vm2, %v7627_v59  ;;  %v7636_v29 = vld [vmem:[#allocation2 + $0x138] sm:$0xff]  ;;  %v7638_v47 = vld [vmem:[#allocation2 + $0x140] sm:$0xff]  ;;  %v1067_v58 = vrot.slane %v7631_v22, 1 }
 0x1e8   : > { %866 = vst.msk [vmem:[#allocation2 + $0x151] sm:$0xff] %vm794_vm2, %v788_v45  ;;  %v1063_v14 = vrot.slane %v7636_v29, 1  ;;  %v1065_v42 = vrot.slane %v7638_v47, 1 }
 0x1ea   : > { %v5596_v34 = vpop.f32.mrb[28].mxu0  ;;  %v7645_v20 = vsel %vm985_vm5, %v1061_v28, %v1063_v14  ;;  %v7648_v60 = vsel %vm985_vm5, %v1063_v14, %v1065_v42  ;;  %v7661_v28 = vsel %vm985_vm5, %v1065_v42, %v1067_v58 }
 0x1eb   : > { %9037 = vst [vmem:[#allocation43_spill] sm:$0xff] %v7645_v20  ;;  %9038 = vst [vmem:[#allocation44_spill] sm:$0xff] %v7648_v60  ;;  %v749_v59 = vadd.f32 %v5596_v34, %v7213_v37  ;;  %v743_v62 = vpop.f32.mrb[29].mxu0  ;;  %5665 = vmatprep.mubr.msk.f32.mxu0 %vm794_vm2, %v7645_v20  ;;  %5980 = vmatmul.mubr.msk.f32.gmra.mrb[26].mxu1 %vm794_vm2, %v7645_v20 }
 0x1ec   : > { %v744_v45 = vadd.f32 %v7213_v37, %v743_v62  ;;  %5666 = vmatmul.mubr.msk.f32.gmra.mrb[70].mxu0 %vm794_vm2, %v7648_v60  ;;  %5982 = vmatprep.mubr.msk.f32.mxu1 %vm794_vm2, %v7648_v60  ;;  %9039 = vst [vmem:[#allocation45_spill] sm:$0xff] %v7661_v28 }
 0x1ed   : > { %v791_v14 = vmax.f32 %v749_v59, 0.0  ;;  %5668 = vmatprep.mubr.msk.f32.mxu0 %vm794_vm2, %v7661_v28 }
 0x1ee   : > { %v790_v34 = vmax.f32 %v744_v45, 0.0  ;;  %v7665_v54 = vld [vmem:[#allocation2 + $0x160] sm:$0xff] }
 0x1ef   : > { %9040 = vst [vmem:[#allocation46_spill] sm:$0xff] %v7665_v54  ;;  %869 = vst.msk [vmem:[#allocation2 + $0x171] sm:$0xff] %vm794_vm2, %v791_v14  ;;  %5983 = vmatmul.mubr.msk.f32.gmra.mrb[28].mxu1 %vm794_vm2, %v7661_v28  ;;  %v7670_v62 = vld [vmem:[#allocation2 + $0x150] sm:$0xff]  ;;  %v7672_v20 = vld [vmem:[#allocation2 + $0x158] sm:$0xff]  ;;  %v1073_v60 = vrot.slane %v7665_v54, 1 }
 0x1f0   : > { %9041 = vst [vmem:[#allocation47_spill] sm:$0xff] %v7670_v62  ;;  %9042 = vst [vmem:[#allocation48_spill] sm:$0xff] %v7672_v20  ;;  %v1069_v42 = vrot.slane %v7670_v62, 1  ;;  %v1071_v59 = vrot.slane %v7672_v20, 1 }
 0x1f1   : > { %868 = vst.msk [vmem:[#allocation2 + $0x169] sm:$0xff] %vm794_vm2, %v790_v34 }
 0x1f2   : > { %v5599_v45 = vpop.f32.mrb[30].mxu0  ;;  %v7679_v53 = vsel %vm985_vm5, %v1067_v58, %v1069_v42  ;;  %v7682_v14 = vsel %vm985_vm5, %v1069_v42, %v1071_v59  ;;  %v7695_v58 = vsel %vm985_vm5, %v1071_v59, %v1073_v60 }
 0x1f3   : > { %9043 = vst [vmem:[#allocation49_spill] sm:$0xff] %v7679_v53  ;;  %9044 = vst [vmem:[#allocation50_spill] sm:$0xff] %v7682_v14  ;;  %v759_v28 = vadd.f32 %v5599_v45, %v7213_v37  ;;  %v753_v38 = vpop.f32.mrb[31].mxu0  ;;  %5669 = vmatmul.mubr.msk.f32.gmra.mrb[72].mxu0 %vm794_vm2, %v7679_v53  ;;  %5985 = vmatprep.mubr.msk.f32.mxu1 %vm794_vm2, %v7679_v53 }
 0x1f4   : > { %v754_v34 = vadd.f32 %v7213_v37, %v753_v38  ;;  %5671 = vmatprep.mubr.msk.f32.mxu0 %vm794_vm2, %v7682_v14  ;;  %5986 = vmatmul.mubr.msk.f32.gmra.mrb[30].mxu1 %vm794_vm2, %v7682_v14  ;;  %9045 = vst [vmem:[#allocation51_spill] sm:$0xff] %v7695_v58 }
 0x1f5   : > { %v793_v42 = vmax.f32 %v759_v28, 0.0  ;;  %5988 = vmatprep.mubr.msk.f32.mxu1 %vm794_vm2, %v7695_v58 }
 0x1f6   : > { %v792_v45 = vmax.f32 %v754_v34, 0.0  ;;  %v7699_v32 = vld [vmem:[#allocation2 + $0x178] sm:$0xff] }
 0x1f7   : > { %9046 = vst [vmem:[#allocation52_spill] sm:$0xff] %v7699_v32  ;;  %871 = vst.msk [vmem:[#allocation2 + $0x189] sm:$0xff] %vm794_vm2, %v793_v42  ;;  %5672 = vmatmul.mubr.msk.f32.gmra.mrb[74].mxu0 %vm794_vm2, %v7695_v58  ;;  %v1079_v14 = vrot.slane %v7699_v32, 1 }
 0x1f8   : > { %v7704_v37 = vld [vmem:[#allocation2 + $0x168] sm:$0xff]  ;;  %v7706_v38 = vld [vmem:[#allocation2 + $0x170] sm:$0xff]  ;;  %870 = vst.msk [vmem:[#allocation2 + $0x181] sm:$0xff] %vm794_vm2, %v792_v45 }
 0x1f9   : > { %v1075_v59 = vrot.slane %v7704_v37, 1  ;;  %v1077_v28 = vrot.slane %v7706_v38, 1 }
 0x1fb   : > { %v7713_v34 = vsel %vm985_vm5, %v1073_v60, %v1075_v59  ;;  %v7716_v42 = vsel %vm985_vm5, %v1075_v59, %v1077_v28  ;;  %v7727_v45 = vsel %vm985_vm5, %v1077_v28, %v1079_v14  ;;  %v7742_v28 = vld [vmem:[#allocation2 + $0x198] sm:$0xff] }
 0x1fc   : > { %9047 = vst [vmem:[#allocation53_spill] sm:$0xff] %v7713_v34  ;;  %9048 = vst [vmem:[#allocation54_spill] sm:$0xff] %v7716_v42  ;;  %5674 = vmatprep.mubr.msk.f32.mxu0 %vm794_vm2, %v7713_v34  ;;  %5989 = vmatmul.mubr.msk.f32.gmra.mrb[32].mxu1 %vm794_vm2, %v7713_v34 }
 0x1fd   : > { %5675 = vmatmul.mubr.msk.f32.gmra.mrb[76].mxu0 %vm794_vm2, %v7716_v42  ;;  %5991 = vmatprep.mubr.msk.f32.mxu1 %vm794_vm2, %v7716_v42  ;;  %9049 = vst [vmem:[#allocation55_spill] sm:$0xff] %v7727_v45  ;;  %9053 = vst [vmem:[#allocation59_spill] sm:$0xff] %v7742_v28 }
 0x1fe   : > { %5677 = vmatprep.mubr.msk.f32.mxu0 %vm794_vm2, %v7727_v45  ;;  %v7731_v60 = vld [vmem:[#allocation2 + $0x190] sm:$0xff] }
 0x1ff   : > { %9050 = vst [vmem:[#allocation56_spill] sm:$0xff] %v7731_v60  ;;  %v7735_v59 = vld [vmem:[#allocation2 + $0x180] sm:$0xff]  ;;  %v7737_v34 = vld [vmem:[#allocation2 + $0x188] sm:$0xff]  ;;  %v2715_v42 = vrot.slane %v7731_v60, 1 }
 0x200   : > { %5992 = vmatmul.mubr.msk.f32.gmra.mrb[34].mxu1 %vm794_vm2, %v7727_v45  ;;  %9051 = vst [vmem:[#allocation57_spill] sm:$0xff] %v7735_v59  ;;  %9052 = vst [vmem:[#allocation58_spill] sm:$0xff] %v7737_v34  ;;  %v1081_v58 = vrot.slane %v7735_v59, 1  ;;  %v2713_v53 = vrot.slane %v7737_v34, 1  ;;  %v1866_v45 = vrot.slane %v7226_v52, 2 }
 0x202   : > { %v7745_v31 = vsel %vm985_vm5, %v1079_v14, %v1081_v58  ;;  %v7748_v23 = vsel %vm985_vm5, %v1081_v58, %v2713_v53  ;;  %v4681_v14 = vld [vmem:[%s8870_s5 + $0x58] sm:$0xff]  ;;  %v7764_v58 = vsel %vm985_vm5, %v2713_v53, %v2715_v42 }
 0x203   : > { %9054 = vst [vmem:[#allocation60_spill] sm:$0xff] %v7745_v31  ;;  %9055 = vst [vmem:[#allocation61_spill] sm:$0xff] %v7748_v23  ;;  %5678 = vmatmul.mubr.msk.f32.gmra.mrb[78].mxu0 %vm794_vm2, %v7745_v31  ;;  %5994 = vmatprep.mubr.msk.f32.mxu1 %vm794_vm2, %v7745_v31  ;;  %v6340_v15 = vpack.c.bf16 %v4681_v14, %v4680_v5  ;;  %v4889_v31 = vld [vmem:[%s8870_s5 + $0xd8] sm:$0xff]  ;;  %v4731_v14 = vld [vmem:[%s8870_s5 + $0x68] sm:$0xff] }
 0x204   : > { %5995 = vmatmul.mubr.msk.f32.gmra.mrb[36].mxu1 %vm794_vm2, %v7748_v23  ;;  %9056 = vst [vmem:[#allocation62_spill] sm:$0xff] %v7764_v58  ;;  %5688 = vmatprep.mubr.msk.f32.mxu0 %vm794_vm2, %v7150_v10  ;;  %v9057_v23 = vrot.slane %v7742_v28, 1  ;;  %v4888_v10 = vld [vmem:[%s8870_s5 + $0xd0] sm:$0xff]  ;;  %v4938_v28 = vld [vmem:[%s8870_s5 + $0xe0] sm:$0xff] }
 0x205   : > { %5997 = vmatprep.mubr.msk.f32.mxu1 %vm794_vm2, %v7764_v58 }
 0x206   : > { %v7777_v53 = vsel %vm985_vm5, %v2715_v42, %v9057_v23  ;;  %v1870_v23 = vrot.slane %v7256_v6, 2  ;;  %v4730_v42 = vld [vmem:[%s8870_s5 + $0x60] sm:$0xff] }
 0x207   : > { %5689 = vmatmul.mubr.msk.f32.vlgmr.msra.gmra.mrb[32].mxu0 %vm794_vm2, %v7152_v11  ;;  %9058 = vst [vmem:[#allocation63_spill] sm:$0xff] %v7777_v53  ;;  %v9059_v11 = vrot.slane %v7224_v51, 2  ;;  %v7811_v58 = vpack.c.bf16 %v4731_v14, %v4730_v42  ;;  %v1886_v42 = vrot.slane %v7311_v41, 2  ;;  %v1888_v14 = vrot.slane %v7363_v12, 2 }
 0x208   : > { %5998 = vmatmul.mubr.msk.f32.gmra.mrb[38].mxu1 %vm794_vm2, %v7777_v53  ;;  %5691 = vmatprep.mubr.msk.f32.mxu0 %vm794_vm2, %v7159_v18  ;;  %v7808_v18 = vsel %vm1858_vm6, %v1866_v45, %v1868_v21  ;;  %v1872_v53 = vrot.slane %v7258_v7, 2 }
 0x209   : > { %v7791_v5 = vsel %vm1858_vm6, %v9059_v11, %v1866_v45  ;;  %6339 = vmatpush3.bf16.msra.mxu0 %v7250_v1  ;;  %v6372_v11 = vpack.c.bf16 %v4889_v31, %v4888_v10  ;;  %v4939_v1 = vld [vmem:[%s8870_s5 + $0xe8] sm:$0xff]  ;;  %v7824_v31 = vsel %vm1858_vm6, %v1868_v21, %v1870_v23  ;;  %v1874_v45 = vrot.slane %v7260_v8, 2 }
 0x20a   : > { %6008 = vmatprep.mubr.msk.f32.mxu1 %vm794_vm2, %v7791_v5  ;;  %6341 = vmatprep.subr.bf16.mxu0 %v6340_v15  ;;  %v7830_v10 = vpack.c.bf16 %v4939_v1, %v4938_v28  ;;  %v1876_v21 = vrot.slane %v7286_v25, 2  ;;  %v1892_v1 = vrot.slane %v7356_v4, 2 }
 0x20b   : > { %5692 = vmatmul.mubr.msk.f32.gmra.mrb[34].mxu0 %vm794_vm2, %v7224_v51 }
 0x20c   : > { %5694 = vmatprep.mubr.msk.f32.mxu0 %vm794_vm2, %v7226_v52  ;;  %6009 = vmatmul.mubr.msk.f32.vlgmr.msra.gmra.mrb[40].mxu1 %vm794_vm2, %v7808_v18  ;;  %v7835_v52 = vsel %vm1858_vm6, %v1870_v23, %v1872_v53  ;;  %v1884_v23 = vrot.slane %v7319_v44, 2 }
 0x20d   : > { %6371 = vmatpush3.bf16.msra.mxu1 %v7358_v9  ;;  %6011 = vmatprep.mubr.msk.f32.mxu1 %vm794_vm2, %v7824_v31  ;;  %v1878_v9 = vrot.slane %v7288_v26, 2 }
 0x20e   : > { %6373 = vmatprep.subr.bf16.mxu1 %v6372_v11  ;;  %6343 = vmatpush3.bf16.msra.mxu0 %v6340_v15  ;;  %v7844_v15 = vsel %vm1858_vm6, %v1872_v53, %v1874_v45  ;;  %v1882_v53 = vrot.slane %v7317_v43, 2 }
 0x20f   : > { %5695 = vmatmul.mubr.msk.f32.gmra.mrb[36].mxu0 %vm794_vm2, %v7221_v50  ;;  %6345 = vmatprep.subr.bf16.mxu0 %v7811_v58  ;;  %v7853_v50 = vsel %vm1858_vm6, %v1874_v45, %v1876_v21  ;;  %v7861_v28 = vsel %vm1858_vm6, %v1876_v21, %v1878_v9  ;;  %v1894_v45 = vrot.slane %v7398_v36, 2  ;;  %v1896_v21 = vrot.slane %v7400_v39, 2 }
 0x210   : > { %5697 = vmatprep.mubr.msk.f32.mxu0 %vm794_vm2, %v7256_v6  ;;  %6012 = vmatmul.mubr.msk.f32.gmra.mrb[42].mxu1 %vm794_vm2, %v7835_v52  ;;  %v1880_v6 = vrot.slane %v7281_v24, 2 }
 0x211   : > { %6014 = vmatprep.mubr.msk.f32.mxu1 %vm794_vm2, %v7844_v15  ;;  %6375 = vmatpush3.bf16.msra.mxu1 %v6372_v11  ;;  %v1890_v11 = vrot.slane %v7365_v13, 2 }
 0x212   : > { %6377 = vmatprep.subr.bf16.mxu1 %v7830_v10 }
 0x213   : > { %5698 = vmatmul.mubr.msk.f32.gmra.mrb[38].mxu0 %vm794_vm2, %v7258_v7  ;;  %v7869_v7 = vsel %vm1858_vm6, %v1878_v9, %v1880_v6  ;;  %v1898_v9 = vrot.slane %v7393_v35, 2 }
 0x214   : > { %5700 = vmatprep.mubr.msk.f32.mxu0 %vm794_vm2, %v7260_v8  ;;  %6015 = vmatmul.mubr.msk.f32.gmra.mrb[44].mxu1 %vm794_vm2, %v7853_v50  ;;  %v7877_v8 = vsel %vm1858_vm6, %v1880_v6, %v1882_v53  ;;  %v1900_v6 = vrot.slane %v7432_v63, 2 }
 0x215   : > { %6017 = vmatprep.mubr.msk.f32.mxu1 %vm794_vm2, %v7861_v28 }
 0x217   : > { %5701 = vmatmul.mubr.msk.f32.gmra.mrb[40].mxu0 %vm794_vm2, %v7286_v25  ;;  %v7885_v25 = vsel %vm1858_vm6, %v1882_v53, %v1884_v23  ;;  %v1902_v53 = vrot.slane %v7434_v2, 2 }
 0x218   : > { %5703 = vmatprep.mubr.msk.f32.mxu0 %vm794_vm2, %v7288_v26  ;;  %6018 = vmatmul.mubr.msk.f32.gmra.mrb[46].mxu1 %vm794_vm2, %v7869_v7  ;;  %v7893_v26 = vsel %vm1858_vm6, %v1884_v23, %v1886_v42  ;;  %v1904_v23 = vrot.slane %v7427_v61, 2 }
 0x219   : > { %6020 = vmatprep.mubr.msk.f32.mxu1 %vm794_vm2, %v7877_v8 }
 0x21b   : > { %5704 = vmatmul.mubr.msk.f32.gmra.mrb[42].mxu0 %vm794_vm2, %v7281_v24  ;;  %v7901_v24 = vsel %vm1858_vm6, %v1886_v42, %v1888_v14  ;;  %v7957_v42 = vsel %vm1858_vm6, %v1900_v6, %v1902_v53 }
 0x21c   : > { %5706 = vmatprep.mubr.msk.f32.mxu0 %vm794_vm2, %v7317_v43  ;;  %6021 = vmatmul.mubr.msk.f32.gmra.mrb[0].mxu1 %vm794_vm2, %v7885_v25  ;;  %v7909_v43 = vsel %vm1858_vm6, %v1888_v14, %v1890_v11  ;;  %v1906_v14 = vrot.slane %v7466_v49, 2 }
 0x21d   : > { %6023 = vmatprep.mubr.msk.f32.mxu1 %vm794_vm2, %v7893_v26 }
 0x21f   : > { %5707 = vmatmul.mubr.msk.f32.gmra.mrb[44].mxu0 %vm794_vm2, %v7319_v44  ;;  %v7917_v44 = vsel %vm1858_vm6, %v1890_v11, %v1892_v1  ;;  %v7965_v11 = vsel %vm1858_vm6, %v1902_v53, %v1904_v23 }
 0x220   : > { %5709 = vmatprep.mubr.msk.f32.mxu0 %vm794_vm2, %v7311_v41  ;;  %6024 = vmatmul.mubr.msk.f32.gmra.mrb[2].mxu1 %vm794_vm2, %v7901_v24  ;;  %v7925_v41 = vsel %vm1858_vm6, %v1892_v1, %v1894_v45  ;;  %v1908_v1 = vrot.slane %v7468_v55, 2 }
 0x221   : > { %6026 = vmatprep.mubr.msk.f32.mxu1 %vm794_vm2, %v7909_v43 }
 0x223   : > { %5710 = vmatmul.mubr.msk.f32.gmra.mrb[46].mxu0 %vm794_vm2, %v7363_v12  ;;  %v7933_v12 = vsel %vm1858_vm6, %v1894_v45, %v1896_v21  ;;  %v7973_v45 = vsel %vm1858_vm6, %v1904_v23, %v1906_v14  ;;  %v1914_v23 = vrot.slane %v7502_v30, 2 }
 0x224   : > { %5712 = vmatprep.mubr.msk.f32.mxu0 %vm794_vm2, %v7365_v13  ;;  %6027 = vmatmul.mubr.msk.f32.gmra.mrb[4].mxu1 %vm794_vm2, %v7917_v44  ;;  %v7941_v13 = vsel %vm1858_vm6, %v1896_v21, %v1898_v9  ;;  %9060 = vst [vmem:[#allocation64_spill] sm:$0xff] %v7973_v45  ;;  %v1910_v21 = vrot.slane %v7461_v46, 2 }
 0x225   : > { %6029 = vmatprep.mubr.msk.f32.mxu1 %vm794_vm2, %v7925_v41 }
 0x226   : > { %v7989_v53 = vsel %vm1858_vm6, %v1908_v1, %v1910_v21 }
 0x227   : > { %5713 = vmatmul.mubr.msk.f32.gmra.mrb[48].mxu0 %vm794_vm2, %v7356_v4  ;;  %v7949_v4 = vsel %vm1858_vm6, %v1898_v9, %v1900_v6  ;;  %v7981_v9 = vsel %vm1858_vm6, %v1906_v14, %v1908_v1  ;;  %v1912_v6 = vrot.slane %v7500_v16, 2  ;;  %9062 = vst [vmem:[#allocation66_spill] sm:$0xff] %v7989_v53 }
 0x228   : > { %5715 = vmatprep.mubr.msk.f32.mxu0 %vm794_vm2, %v7398_v36  ;;  %6030 = vmatmul.mubr.msk.f32.gmra.mrb[6].mxu1 %vm794_vm2, %v7933_v12  ;;  %9061 = vst [vmem:[#allocation65_spill] sm:$0xff] %v7981_v9 }
 0x229   : > { %6032 = vmatprep.mubr.msk.f32.mxu1 %vm794_vm2, %v7941_v13  ;;  %v7997_v14 = vsel %vm1858_vm6, %v1910_v21, %v1912_v6  ;;  %v8005_v1 = vsel %vm1858_vm6, %v1912_v6, %v1914_v23 }
 0x22a   : > { %9063 = vst [vmem:[#allocation67_spill] sm:$0xff] %v7997_v14  ;;  %9064 = vst [vmem:[#allocation68_spill] sm:$0xff] %v8005_v1 }
 0x22b   : > { %5716 = vmatmul.mubr.msk.f32.gmra.mrb[50].mxu0 %vm794_vm2, %v7400_v39 }
 0x22c   : > { %5718 = vmatprep.mubr.msk.f32.mxu0 %vm794_vm2, %v7393_v35  ;;  %6033 = vmatmul.mubr.msk.f32.gmra.mrb[8].mxu1 %vm794_vm2, %v7949_v4 }
 0x22d   : > { %6035 = vmatprep.mubr.msk.f32.mxu1 %vm794_vm2, %v7957_v42 }
 0x22f   : > { %5719 = vmatmul.mubr.msk.f32.gmra.mrb[52].mxu0 %vm794_vm2, %v7432_v63 }
 0x230   : > { %5721 = vmatprep.mubr.msk.f32.mxu0 %vm794_vm2, %v7434_v2  ;;  %6036 = vmatmul.mubr.msk.f32.gmra.mrb[10].mxu1 %vm794_vm2, %v7965_v11 }
 0x231   : > { %6038 = vmatprep.mubr.msk.f32.mxu1 %vm794_vm2, %v7973_v45  ;;  %v1916_v45 = vrot.slane %v7495_v56, 2 }
 0x233   : > { %5722 = vmatmul.mubr.msk.f32.gmra.mrb[54].mxu0 %vm794_vm2, %v7427_v61  ;;  %v8013_v21 = vsel %vm1858_vm6, %v1914_v23, %v1916_v45 }
 0x234   : > { %5724 = vmatprep.mubr.msk.f32.mxu0 %vm794_vm2, %v7466_v49  ;;  %6039 = vmatmul.mubr.msk.f32.gmra.mrb[12].mxu1 %vm794_vm2, %v7981_v9  ;;  %v1918_v9 = vrot.slane %v7534_v17, 2  ;;  %9065 = vst [vmem:[#allocation69_spill] sm:$0xff] %v8013_v21 }
 0x235   : > { %6041 = vmatprep.mubr.msk.f32.mxu1 %vm794_vm2, %v7989_v53  ;;  %v1920_v53 = vrot.slane %v7536_v0, 2 }
 0x236   : > { %v8021_v6 = vsel %vm1858_vm6, %v1916_v45, %v1918_v9 }
 0x237   : > { %5725 = vmatmul.mubr.msk.f32.gmra.mrb[56].mxu0 %vm794_vm2, %v7468_v55  ;;  %9066 = vst [vmem:[#allocation70_spill] sm:$0xff] %v8021_v6  ;;  %v8029_v23 = vsel %vm1858_vm6, %v1918_v9, %v1920_v53 }
 0x238   : > { %5727 = vmatprep.mubr.msk.f32.mxu0 %vm794_vm2, %v7461_v46  ;;  %6042 = vmatmul.mubr.msk.f32.gmra.mrb[14].mxu1 %vm794_vm2, %v7997_v14  ;;  %v1922_v14 = vrot.slane %v7529_v19, 2  ;;  %9067 = vst [vmem:[#allocation71_spill] sm:$0xff] %v8029_v23 }
 0x239   : > { %6044 = vmatprep.mubr.msk.f32.mxu1 %vm794_vm2, %v8005_v1  ;;  %v1924_v1 = vrot.slane %v7568_v40, 2 }
 0x23a   : > { %v8037_v45 = vsel %vm1858_vm6, %v1920_v53, %v1922_v14 }
 0x23b   : > { %5728 = vmatmul.mubr.msk.f32.gmra.mrb[58].mxu0 %vm794_vm2, %v7500_v16  ;;  %9068 = vst [vmem:[#allocation72_spill] sm:$0xff] %v8037_v45  ;;  %v8045_v9 = vsel %vm1858_vm6, %v1922_v14, %v1924_v1 }
 0x23c   : > { %5730 = vmatprep.mubr.msk.f32.mxu0 %vm794_vm2, %v7502_v30  ;;  %6045 = vmatmul.mubr.msk.f32.gmra.mrb[16].mxu1 %vm794_vm2, %v8013_v21  ;;  %v1926_v21 = vrot.slane %v7570_v33, 2  ;;  %9069 = vst [vmem:[#allocation73_spill] sm:$0xff] %v8045_v9 }
 0x23d   : > { %6047 = vmatprep.mubr.msk.f32.mxu1 %vm794_vm2, %v8021_v6  ;;  %v1928_v6 = vrot.slane %v7563_v27, 2 }
 0x23e   : > { %v8053_v53 = vsel %vm1858_vm6, %v1924_v1, %v1926_v21 }
 0x23f   : > { %5731 = vmatmul.mubr.msk.f32.gmra.mrb[60].mxu0 %vm794_vm2, %v7495_v56  ;;  %9070 = vst [vmem:[#allocation74_spill] sm:$0xff] %v8053_v53  ;;  %v8061_v14 = vsel %vm1858_vm6, %v1926_v21, %v1928_v6 }
 0x240   : > { %5733 = vmatprep.mubr.msk.f32.mxu0 %vm794_vm2, %v7534_v17  ;;  %6048 = vmatmul.mubr.msk.f32.gmra.mrb[18].mxu1 %vm794_vm2, %v8029_v23  ;;  %v1930_v23 = vrot.slane %v7602_v57, 2  ;;  %9071 = vst [vmem:[#allocation75_spill] sm:$0xff] %v8061_v14 }
 0x241   : > { %6050 = vmatprep.mubr.msk.f32.mxu1 %vm794_vm2, %v8037_v45  ;;  %v1932_v45 = vrot.slane %v7604_v3, 2 }
 0x242   : > { %v8069_v1 = vsel %vm1858_vm6, %v1928_v6, %v1930_v23 }
 0x243   : > { %5734 = vmatmul.mubr.msk.f32.gmra.mrb[62].mxu0 %vm794_vm2, %v7536_v0  ;;  %9072 = vst [vmem:[#allocation76_spill] sm:$0xff] %v8069_v1  ;;  %v8077_v21 = vsel %vm1858_vm6, %v1930_v23, %v1932_v45 }
 0x244   : > { %5736 = vmatprep.mubr.msk.f32.mxu0 %vm794_vm2, %v7529_v19  ;;  %6051 = vmatmul.mubr.msk.f32.gmra.mrb[20].mxu1 %vm794_vm2, %v8045_v9  ;;  %v1934_v9 = vrot.slane %v7597_v48, 2  ;;  %9073 = vst [vmem:[#allocation77_spill] sm:$0xff] %v8077_v21 }
 0x245   : > { %6053 = vmatprep.mubr.msk.f32.mxu1 %vm794_vm2, %v8053_v53  ;;  %v1936_v53 = vrot.slane %v7636_v29, 2 }
 0x246   : > { %v8085_v6 = vsel %vm1858_vm6, %v1932_v45, %v1934_v9 }
 0x247   : > { %5737 = vmatmul.mubr.msk.f32.gmra.mrb[64].mxu0 %vm794_vm2, %v7568_v40  ;;  %9074 = vst [vmem:[#allocation78_spill] sm:$0xff] %v8085_v6  ;;  %v8093_v23 = vsel %vm1858_vm6, %v1934_v9, %v1936_v53 }
 0x248   : > { %5739 = vmatprep.mubr.msk.f32.mxu0 %vm794_vm2, %v7570_v33  ;;  %6054 = vmatmul.mubr.msk.f32.gmra.mrb[22].mxu1 %vm794_vm2, %v8061_v14  ;;  %v1938_v14 = vrot.slane %v7638_v47, 2  ;;  %9075 = vst [vmem:[#allocation79_spill] sm:$0xff] %v8093_v23 }
 0x249   : > { %6056 = vmatprep.mubr.msk.f32.mxu1 %vm794_vm2, %v8069_v1  ;;  %v1940_v1 = vrot.slane %v7631_v22, 2 }
 0x24a   : > { %v8101_v45 = vsel %vm1858_vm6, %v1936_v53, %v1938_v14 }
 0x24b   : > { %5740 = vmatmul.mubr.msk.f32.gmra.mrb[66].mxu0 %vm794_vm2, %v7563_v27  ;;  %9076 = vst [vmem:[#allocation80_spill] sm:$0xff] %v8101_v45  ;;  %v8109_v9 = vsel %vm1858_vm6, %v1938_v14, %v1940_v1 }
 0x24c   : > { %5742 = vmatprep.mubr.msk.f32.mxu0 %vm794_vm2, %v7602_v57  ;;  %6057 = vmatmul.mubr.msk.f32.gmra.mrb[24].mxu1 %vm794_vm2, %v8077_v21  ;;  %v1942_v21 = vrot.slane %v7670_v62, 2  ;;  %9077 = vst [vmem:[#allocation81_spill] sm:$0xff] %v8109_v9 }
 0x24d   : > { %6059 = vmatprep.mubr.msk.f32.mxu1 %vm794_vm2, %v8085_v6  ;;  %v1944_v6 = vrot.slane %v7672_v20, 2 }
 0x24e   : > { %v8117_v53 = vsel %vm1858_vm6, %v1940_v1, %v1942_v21 }
 0x24f   : > { %5743 = vmatmul.mubr.msk.f32.gmra.mrb[68].mxu0 %vm794_vm2, %v7604_v3  ;;  %9078 = vst [vmem:[#allocation82_spill] sm:$0xff] %v8117_v53  ;;  %v8125_v14 = vsel %vm1858_vm6, %v1942_v21, %v1944_v6 }
 0x250   : > { %5745 = vmatprep.mubr.msk.f32.mxu0 %vm794_vm2, %v7597_v48  ;;  %6060 = vmatmul.mubr.msk.f32.gmra.mrb[26].mxu1 %vm794_vm2, %v8093_v23  ;;  %v1946_v23 = vrot.slane %v7665_v54, 2  ;;  %9079 = vst [vmem:[#allocation83_spill] sm:$0xff] %v8125_v14 }
 0x251   : > { %6062 = vmatprep.mubr.msk.f32.mxu1 %vm794_vm2, %v8101_v45  ;;  %v1948_v45 = vrot.slane %v7704_v37, 2 }
 0x252   : > { %v8133_v1 = vsel %vm1858_vm6, %v1944_v6, %v1946_v23 }
 0x253   : > { %5746 = vmatmul.mubr.msk.f32.gmra.mrb[70].mxu0 %vm794_vm2, %v7636_v29  ;;  %9080 = vst [vmem:[#allocation84_spill] sm:$0xff] %v8133_v1  ;;  %v8141_v21 = vsel %vm1858_vm6, %v1946_v23, %v1948_v45  ;;  %v6806_v23 = vld [vmem:[#allocation2 + $0x8] sm:$0xff] }
 0x254   : > { %5748 = vmatprep.mubr.msk.f32.mxu0 %vm794_vm2, %v7638_v47  ;;  %6063 = vmatmul.mubr.msk.f32.gmra.mrb[28].mxu1 %vm794_vm2, %v8109_v9  ;;  %v1950_v9 = vrot.slane %v7706_v38, 2  ;;  %9081 = vst [vmem:[#allocation85_spill] sm:$0xff] %v8141_v21 }
 0x255   : > { %6065 = vmatprep.mubr.msk.f32.mxu1 %vm794_vm2, %v8117_v53  ;;  %v1952_v53 = vrot.slane %v7699_v32, 2 }
 0x256   : > { %v8149_v6 = vsel %vm1858_vm6, %v1948_v45, %v1950_v9 }
 0x257   : > { %5749 = vmatmul.mubr.msk.f32.gmra.mrb[72].mxu0 %vm794_vm2, %v7631_v22  ;;  %9082 = vst [vmem:[#allocation86_spill] sm:$0xff] %v8149_v6 }
 0x258   : > { %5751 = vmatprep.mubr.msk.f32.mxu0 %vm794_vm2, %v7670_v62  ;;  %6066 = vmatmul.mubr.msk.f32.gmra.mrb[30].mxu1 %vm794_vm2, %v8125_v14  ;;  %v1954_v14 = vrot.slane %v7735_v59, 2  ;;  %v1860_v62 = vrot.slane %v6806_v23, 2  ;;  %v9086_v59 = vld [vmem:[#allocation59_spill] sm:$0xff] }
 0x259   : > { %6068 = vmatprep.mubr.msk.f32.mxu1 %vm794_vm2, %v8133_v1  ;;  %v6805_v1 = vld [vmem:[#allocation2] sm:$0xff] }
 0x25a   : > { %v8165_v45 = vsel %vm1858_vm6, %v1952_v53, %v1954_v14 }
 0x25b   : > { %5752 = vmatmul.mubr.msk.f32.gmra.mrb[74].mxu0 %vm794_vm2, %v7672_v20  ;;  %v1859_v20 = vrot.slane %v6805_v1, 2  ;;  %9084 = vst [vmem:[#allocation88_spill] sm:$0xff] %v8165_v45  ;;  %v3053_v1 = vrot.slane %v7731_v60, 2 }
 0x25c   : > { %5754 = vmatprep.mubr.msk.f32.mxu0 %vm794_vm2, %v7665_v54  ;;  %6069 = vmatmul.mubr.msk.f32.gmra.mrb[32].mxu1 %vm794_vm2, %v8141_v21  ;;  %v8157_v54 = vsel %vm1858_vm6, %v1950_v9, %v1952_v53  ;;  %v3051_v21 = vrot.slane %v7737_v34, 2  ;;  %v6807_v9 = vld [vmem:[#allocation2 + $0x10] sm:$0xff] }
 0x25d   : > { %6071 = vmatprep.mubr.msk.f32.mxu1 %vm794_vm2, %v8149_v6  ;;  %9083 = vst [vmem:[#allocation87_spill] sm:$0xff] %v8157_v54  ;;  %v1861_v23 = vsel %vm1858_vm6, %v1859_v20, %v1860_v62  ;;  %v1862_v6 = vrot.slane %v6807_v9, 2  ;;  %v4732_v53 = vld [vmem:[%s8870_s5 + $0x70] sm:$0xff] }
 0x25e   : > { %v8174_v34 = vsel %vm1858_vm6, %v1954_v14, %v3051_v21  ;;  %v8186_v20 = vsel %vm1858_vm6, %v3051_v21, %v3053_v1  ;;  %v4940_v21 = vld [vmem:[%s8870_s5 + $0xf0] sm:$0xff] }
 0x25f   : > { %5755 = vmatmul.mubr.msk.f32.gmra.mrb[76].mxu0 %vm794_vm2, %v7704_v37  ;;  %9085 = vst [vmem:[#allocation89_spill] sm:$0xff] %v8174_v34  ;;  %9087 = vst [vmem:[#allocation59_spill] sm:$0xff] %v8186_v20  ;;  %v1863_v14 = vsel %vm1858_vm6, %v1860_v62, %v1862_v6  ;;  %v4941_v62 = vld [vmem:[%s8870_s5 + $0xf8] sm:$0xff] }
 0x260   : > { %5757 = vmatprep.mubr.msk.f32.mxu0 %vm794_vm2, %v7706_v38  ;;  %6072 = vmatmul.mubr.msk.f32.gmra.mrb[34].mxu1 %vm794_vm2, %v8157_v54  ;;  %v9088_v54 = vrot.slane %v7224_v51, 2  ;;  %v8210_v51 = vld [vmem:[#allocation2 + $0x30] sm:$0xff] }
 0x261   : > { %6074 = vmatprep.mubr.msk.f32.mxu1 %vm794_vm2, %v8165_v45  ;;  %v4733_v45 = vld [vmem:[%s8870_s5 + $0x78] sm:$0xff] }
 0x262   : > { %v6348_v9 = vpack.c.bf16 %v4733_v45, %v4732_v53  ;;  %v1865_v60 = vsel %vm1858_vm6, %v1862_v6, %v9088_v54  ;;  %v4990_v54 = vld [vmem:[%s8870_s5 + $0x100] sm:$0xff]  ;;  %v8225_v6 = vld [vmem:[#allocation2 + $0x38] sm:$0xff]  ;;  %v8241_v45 = vld [vmem:[#allocation2 + $0x48] sm:$0xff] }
 0x263   : > { %5758 = vmatmul.mubr.msk.f32.gmra.mrb[78].mxu0 %vm794_vm2, %v7699_v32  ;;  %v9089_v32 = vrot.slane %v9086_v59, 2  ;;  %v8270_v53 = vld [vmem:[#allocation2 + $0x70] sm:$0xff] }
 0x264   : > { %6075 = vmatmul.mubr.msk.f32.gmra.mrb[36].mxu1 %vm794_vm2, %v8174_v34  ;;  %5768 = vmatprep.mubr.msk.f32.mxu0 %vm794_vm2, %v1861_v23  ;;  %v8266_v23 = vld [vmem:[#allocation2 + $0x68] sm:$0xff] }
 0x265   : > { %6077 = vmatprep.mubr.msk.f32.mxu1 %vm794_vm2, %v8186_v20  ;;  %v8199_v34 = vsel %vm1858_vm6, %v3053_v1, %v9089_v32  ;;  %v6380_v32 = vpack.c.bf16 %v4941_v62, %v4940_v21  ;;  %v8258_v1 = vld [vmem:[#allocation2 + $0x60] sm:$0xff]  ;;  %v8290_v21 = vld [vmem:[#allocation2 + $0x88] sm:$0xff]  ;;  %v9111_v62 = vld [vmem:[#allocation48_spill] sm:$0xff] }
 0x266   : > { %9090 = vst [vmem:[#allocation90_spill] sm:$0xff] %v8199_v34  ;;  %v9116_v20 = vld [vmem:[#allocation85_spill] sm:$0xff] }
 0x267   : > { %5769 = vmatmul.mubr.msk.f32.vlgmr.msra.gmra.mrb[32].mxu0 %vm794_vm2, %v1863_v14  ;;  %v8278_v14 = vld [vmem:[#allocation2 + $0x78] sm:$0xff] }
 0x268   : > { %5771 = vmatprep.mubr.msk.f32.mxu0 %vm794_vm2, %v1865_v60  ;;  %6078 = vmatmul.mubr.msk.f32.gmra.mrb[38].mxu1 %vm794_vm2, %v8199_v34  ;;  %v4991_v60 = vld [vmem:[%s8870_s5 + $0x108] sm:$0xff]  ;;  %v9115_v34 = vld [vmem:[#allocation84_spill] sm:$0xff] }
 0x269   : > { %6088 = vmatprep.mubr.msk.f32.mxu1 %vm794_vm2, %v8210_v51  ;;  %6347 = vmatpush3.bf16.msra.mxu0 %v7811_v58  ;;  %v8230_v58 = vld [vmem:[#allocation2 + $0x40] sm:$0xff] }
 0x26a   : > { %6349 = vmatprep.subr.bf16.mxu0 %v6348_v9 }
 0x26b   : > { %5772 = vmatmul.mubr.msk.f32.gmra.mrb[34].mxu0 %vm794_vm2, %v7791_v5  ;;  %v8234_v5 = vpack.c.bf16 %v4991_v60, %v4990_v54  ;;  %v9113_v54 = vld [vmem:[#allocation82_spill] sm:$0xff]  ;;  %v9114_v60 = vld [vmem:[#allocation83_spill] sm:$0xff] }
 0x26c   : > { %5774 = vmatprep.mubr.msk.f32.mxu0 %vm794_vm2, %v7808_v18  ;;  %6089 = vmatmul.mubr.msk.f32.vlgmr.msra.gmra.mrb[40].mxu1 %vm794_vm2, %v8225_v6  ;;  %v9091_v18 = vld [vmem:[#allocation6_spill] sm:$0xff] }
 0x26d   : > { %6379 = vmatpush3.bf16.msra.mxu1 %v7830_v10  ;;  %6091 = vmatprep.mubr.msk.f32.mxu1 %vm794_vm2, %v8230_v58  ;;  %v8245_v10 = vld [vmem:[#allocation2 + $0x50] sm:$0xff] }
 0x26e   : > { %6381 = vmatprep.subr.bf16.mxu1 %v6380_v32  ;;  %6351 = vmatpush3.bf16.msra.mxu0 %v6348_v9  ;;  %v8282_v9 = vld [vmem:[#allocation2 + $0x80] sm:$0xff] }
 0x26f   : > { %5775 = vmatmul.mubr.msk.f32.gmra.mrb[36].mxu0 %vm794_vm2, %v7824_v31  ;;  %6353 = vmatprep.subr.bf16.mxu0 %v9091_v18  ;;  %v8254_v31 = vld [vmem:[#allocation2 + $0x58] sm:$0xff] }
 0x270   : > { %5777 = vmatprep.mubr.msk.f32.mxu0 %vm794_vm2, %v7835_v52  ;;  %6092 = vmatmul.mubr.msk.f32.gmra.mrb[42].mxu1 %vm794_vm2, %v8241_v45 }
 0x271   : > { %6094 = vmatprep.mubr.msk.f32.mxu1 %vm794_vm2, %v8245_v10  ;;  %6383 = vmatpush3.bf16.msra.mxu1 %v6380_v32  ;;  %v9112_v32 = vld [vmem:[#allocation46_spill] sm:$0xff] }
 0x272   : > { %6385 = vmatprep.subr.bf16.mxu1 %v8234_v5 }
 0x273   : > { %5778 = vmatmul.mubr.msk.f32.gmra.mrb[38].mxu0 %vm794_vm2, %v7844_v15 }
 0x274   : > { %5780 = vmatprep.mubr.msk.f32.mxu0 %vm794_vm2, %v7853_v50  ;;  %6095 = vmatmul.mubr.msk.f32.gmra.mrb[44].mxu1 %vm794_vm2, %v8254_v31 }
 0x275   : > { %6097 = vmatprep.mubr.msk.f32.mxu1 %vm794_vm2, %v8258_v1 }
 0x277   : > { %5781 = vmatmul.mubr.msk.f32.gmra.mrb[40].mxu0 %vm794_vm2, %v7861_v28 }
 0x278   : > { %5783 = vmatprep.mubr.msk.f32.mxu0 %vm794_vm2, %v7869_v7  ;;  %6098 = vmatmul.mubr.msk.f32.gmra.mrb[46].mxu1 %vm794_vm2, %v8266_v23 }
 0x279   : > { %6100 = vmatprep.mubr.msk.f32.mxu1 %vm794_vm2, %v8270_v53 }
 0x27b   : > { %5784 = vmatmul.mubr.msk.f32.gmra.mrb[42].mxu0 %vm794_vm2, %v7877_v8 }
 0x27c   : > { %5786 = vmatprep.mubr.msk.f32.mxu0 %vm794_vm2, %v7885_v25  ;;  %6101 = vmatmul.mubr.msk.f32.gmra.mrb[0].mxu1 %vm794_vm2, %v8278_v14 }
 0x27d   : > { %6103 = vmatprep.mubr.msk.f32.mxu1 %vm794_vm2, %v8282_v9 }
 0x27f   : > { %5787 = vmatmul.mubr.msk.f32.gmra.mrb[44].mxu0 %vm794_vm2, %v7893_v26 }
 0x280   : > { %5789 = vmatprep.mubr.msk.f32.mxu0 %vm794_vm2, %v7901_v24  ;;  %6104 = vmatmul.mubr.msk.f32.gmra.mrb[2].mxu1 %vm794_vm2, %v8290_v21 }
 0x281   : > { %6106 = vmatprep.mubr.msk.f32.mxu1 %vm794_vm2, %v7398_v36  ;;  %v9093_v36 = vld [vmem:[#allocation65_spill] sm:$0xff] }
 0x283   : > { %5790 = vmatmul.mubr.msk.f32.gmra.mrb[46].mxu0 %vm794_vm2, %v7909_v43 }
 0x284   : > { %5792 = vmatprep.mubr.msk.f32.mxu0 %vm794_vm2, %v7917_v44  ;;  %6107 = vmatmul.mubr.msk.f32.gmra.mrb[4].mxu1 %vm794_vm2, %v7400_v39  ;;  %v9094_v39 = vld [vmem:[#allocation66_spill] sm:$0xff] }
 0x285   : > { %6109 = vmatprep.mubr.msk.f32.mxu1 %vm794_vm2, %v7393_v35  ;;  %v9092_v35 = vld [vmem:[#allocation64_spill] sm:$0xff] }
 0x287   : > { %5793 = vmatmul.mubr.msk.f32.gmra.mrb[48].mxu0 %vm794_vm2, %v7925_v41 }
 0x288   : > { %5795 = vmatprep.mubr.msk.f32.mxu0 %vm794_vm2, %v7933_v12  ;;  %6110 = vmatmul.mubr.msk.f32.gmra.mrb[6].mxu1 %vm794_vm2, %v7432_v63  ;;  %v9096_v63 = vld [vmem:[#allocation68_spill] sm:$0xff] }
 0x289   : > { %6112 = vmatprep.mubr.msk.f32.mxu1 %vm794_vm2, %v7434_v2  ;;  %v9097_v2 = vld [vmem:[#allocation69_spill] sm:$0xff] }
 0x28b   : > { %5796 = vmatmul.mubr.msk.f32.gmra.mrb[50].mxu0 %vm794_vm2, %v7941_v13 }
 0x28c   : > { %5798 = vmatprep.mubr.msk.f32.mxu0 %vm794_vm2, %v7949_v4  ;;  %6113 = vmatmul.mubr.msk.f32.gmra.mrb[8].mxu1 %vm794_vm2, %v7427_v61  ;;  %v9095_v61 = vld [vmem:[#allocation67_spill] sm:$0xff] }
 0x28d   : > { %6115 = vmatprep.mubr.msk.f32.mxu1 %vm794_vm2, %v7466_v49  ;;  %v9099_v49 = vld [vmem:[#allocation71_spill] sm:$0xff] }
 0x28f   : > { %5799 = vmatmul.mubr.msk.f32.gmra.mrb[52].mxu0 %vm794_vm2, %v7957_v42 }
 0x290   : > { %5801 = vmatprep.mubr.msk.f32.mxu0 %vm794_vm2, %v7965_v11  ;;  %6116 = vmatmul.mubr.msk.f32.gmra.mrb[10].mxu1 %vm794_vm2, %v7468_v55  ;;  %v9100_v55 = vld [vmem:[#allocation72_spill] sm:$0xff] }
 0x291   : > { %6118 = vmatprep.mubr.msk.f32.mxu1 %vm794_vm2, %v7461_v46  ;;  %v9098_v46 = vld [vmem:[#allocation70_spill] sm:$0xff] }
 0x293   : > { %5802 = vmatmul.mubr.msk.f32.gmra.mrb[54].mxu0 %vm794_vm2, %v9092_v35 }
 0x294   : > { %5804 = vmatprep.mubr.msk.f32.mxu0 %vm794_vm2, %v9093_v36  ;;  %6119 = vmatmul.mubr.msk.f32.gmra.mrb[12].mxu1 %vm794_vm2, %v7500_v16  ;;  %v9105_v16 = vld [vmem:[#allocation77_spill] sm:$0xff] }
 0x295   : > { %6121 = vmatprep.mubr.msk.f32.mxu1 %vm794_vm2, %v7502_v30  ;;  %v9107_v30 = vld [vmem:[#allocation79_spill] sm:$0xff] }
 0x297   : > { %5805 = vmatmul.mubr.msk.f32.gmra.mrb[56].mxu0 %vm794_vm2, %v9094_v39 }
 0x298   : > { %5807 = vmatprep.mubr.msk.f32.mxu0 %vm794_vm2, %v9095_v61  ;;  %6122 = vmatmul.mubr.msk.f32.gmra.mrb[14].mxu1 %vm794_vm2, %v7495_v56  ;;  %v9101_v56 = vld [vmem:[#allocation73_spill] sm:$0xff] }
 0x299   : > { %6124 = vmatprep.mubr.msk.f32.mxu1 %vm794_vm2, %v7534_v17  ;;  %v9109_v17 = vld [vmem:[#allocation80_spill] sm:$0xff] }
 0x29b   : > { %5808 = vmatmul.mubr.msk.f32.gmra.mrb[58].mxu0 %vm794_vm2, %v9096_v63 }
 0x29c   : > { %5810 = vmatprep.mubr.msk.f32.mxu0 %vm794_vm2, %v9097_v2  ;;  %6125 = vmatmul.mubr.msk.f32.gmra.mrb[16].mxu1 %vm794_vm2, %v7536_v0  ;;  %v9102_v0 = vld [vmem:[#allocation74_spill] sm:$0xff] }
 0x29d   : > { %6127 = vmatprep.mubr.msk.f32.mxu1 %vm794_vm2, %v7529_v19  ;;  %v9103_v19 = vld [vmem:[#allocation75_spill] sm:$0xff] }
 0x29f   : > { %5811 = vmatmul.mubr.msk.f32.gmra.mrb[60].mxu0 %vm794_vm2, %v9098_v46 }
 0x2a0   : > { %5813 = vmatprep.mubr.msk.f32.mxu0 %vm794_vm2, %v9099_v49  ;;  %6128 = vmatmul.mubr.msk.f32.gmra.mrb[18].mxu1 %vm794_vm2, %v7568_v40  ;;  %v9110_v40 = vld [vmem:[#allocation81_spill] sm:$0xff] }
 0x2a1   : > { %6130 = vmatprep.mubr.msk.f32.mxu1 %vm794_vm2, %v7570_v33  ;;  %v9104_v33 = vld [vmem:[#allocation76_spill] sm:$0xff] }
 0x2a3   : > { %5814 = vmatmul.mubr.msk.f32.gmra.mrb[62].mxu0 %vm794_vm2, %v9100_v55 }
 0x2a4   : > { %5816 = vmatprep.mubr.msk.f32.mxu0 %vm794_vm2, %v9101_v56  ;;  %6131 = vmatmul.mubr.msk.f32.gmra.mrb[20].mxu1 %vm794_vm2, %v7563_v27  ;;  %v9106_v27 = vld [vmem:[#allocation78_spill] sm:$0xff]  ;;  %v9126_v56 = vld [vmem:[#allocation12_spill] sm:$0xff] }
 0x2a5   : > { %6133 = vmatprep.mubr.msk.f32.mxu1 %vm794_vm2, %v7602_v57 }
 0x2a7   : > { %5817 = vmatmul.mubr.msk.f32.gmra.mrb[64].mxu0 %vm794_vm2, %v9102_v0 }
 0x2a8   : > { %5819 = vmatprep.mubr.msk.f32.mxu0 %vm794_vm2, %v9103_v19  ;;  %6134 = vmatmul.mubr.msk.f32.gmra.mrb[22].mxu1 %vm794_vm2, %v7604_v3  ;;  %v9124_v19 = vld [vmem:[#allocation11_spill] sm:$0xff] }
 0x2a9   : > { %6136 = vmatprep.mubr.msk.f32.mxu1 %vm794_vm2, %v7597_v48  ;;  %v9108_v48 = vld [vmem:[#allocation47_spill] sm:$0xff] }
 0x2ab   : > { %5820 = vmatmul.mubr.msk.f32.gmra.mrb[66].mxu0 %vm794_vm2, %v9104_v33  ;;  %v4992_v33 = vld [vmem:[%s8870_s5 + $0x110] sm:$0xff] }
 0x2ac   : > { %5822 = vmatprep.mubr.msk.f32.mxu0 %vm794_vm2, %v9105_v16  ;;  %6137 = vmatmul.mubr.msk.f32.gmra.mrb[24].mxu1 %vm794_vm2, %v7636_v29  ;;  %v6820_v16 = vld [vmem:[#allocation2 + $0x18] sm:$0xff] }
 0x2ad   : > { %6139 = vmatprep.mubr.msk.f32.mxu1 %vm794_vm2, %v7638_v47 }
 0x2af   : > { %5823 = vmatmul.mubr.msk.f32.gmra.mrb[68].mxu0 %vm794_vm2, %v9106_v27  ;;  %v9122_v27 = vld [vmem:[#allocation56_spill] sm:$0xff] }
 0x2b0   : > { %5825 = vmatprep.mubr.msk.f32.mxu0 %vm794_vm2, %v9107_v30  ;;  %6140 = vmatmul.mubr.msk.f32.gmra.mrb[26].mxu1 %vm794_vm2, %v7631_v22  ;;  %v9121_v30 = vld [vmem:[#allocation58_spill] sm:$0xff] }
 0x2b1   : > { %6142 = vmatprep.mubr.msk.f32.mxu1 %vm794_vm2, %v9108_v48 }
 0x2b3   : > { %5826 = vmatmul.mubr.msk.f32.gmra.mrb[70].mxu0 %vm794_vm2, %v9109_v17  ;;  %v9118_v17 = vld [vmem:[#allocation57_spill] sm:$0xff] }
 0x2b4   : > { %5828 = vmatprep.mubr.msk.f32.mxu0 %vm794_vm2, %v9110_v40  ;;  %6143 = vmatmul.mubr.msk.f32.gmra.mrb[28].mxu1 %vm794_vm2, %v9111_v62  ;;  %v9117_v40 = vld [vmem:[#allocation52_spill] sm:$0xff] }
 0x2b5   : > { %6145 = vmatprep.mubr.msk.f32.mxu1 %vm794_vm2, %v9112_v32 }
 0x2b7   : > { %5829 = vmatmul.mubr.msk.f32.gmra.mrb[72].mxu0 %vm794_vm2, %v9113_v54  ;;  %v9119_v54 = vld [vmem:[#allocation86_spill] sm:$0xff] }
 0x2b8   : > { %5831 = vmatprep.mubr.msk.f32.mxu0 %vm794_vm2, %v9114_v60  ;;  %6146 = vmatmul.mubr.msk.f32.gmra.mrb[30].mxu1 %vm794_vm2, %v7704_v37  ;;  %v9120_v60 = vld [vmem:[#allocation87_spill] sm:$0xff] }
 0x2b9   : > { %6148 = vmatprep.mubr.msk.f32.mxu1 %vm794_vm2, %v7706_v38 }
 0x2bb   : > { %5832 = vmatmul.mubr.msk.f32.gmra.mrb[74].mxu0 %vm794_vm2, %v9115_v34  ;;  %v8424_v34 = vld [vmem:[#allocation2 + $0x1a0] sm:$0xff] }
 0x2bc   : > { %5834 = vmatprep.mubr.msk.f32.mxu0 %vm794_vm2, %v9116_v20  ;;  %6149 = vmatmul.mubr.msk.f32.gmra.mrb[32].mxu1 %vm794_vm2, %v9117_v40  ;;  %v9123_v20 = vld [vmem:[#allocation88_spill] sm:$0xff] }
 0x2bd   : > { %6151 = vmatprep.mubr.msk.f32.mxu1 %vm794_vm2, %v9118_v17 }
 0x2bf   : > { %5835 = vmatmul.mubr.msk.f32.gmra.mrb[76].mxu0 %vm794_vm2, %v9119_v54  ;;  %v6821_v54 = vld [vmem:[#allocation2 + $0x20] sm:$0xff] }
 0x2c0   : > { %5837 = vmatprep.mubr.msk.f32.mxu0 %vm794_vm2, %v9120_v60  ;;  %6152 = vmatmul.mubr.msk.f32.gmra.mrb[34].mxu1 %vm794_vm2, %v9121_v30  ;;  %v8433_v60 = vld [vmem:[#allocation2 + $0x1a8] sm:$0xff] }
 0x2c1   : > { %6154 = vmatprep.mubr.msk.f32.mxu1 %vm794_vm2, %v9122_v27 }
 0x2c3   : > { %5838 = vmatmul.mubr.msk.f32.gmra.mrb[78].mxu0 %vm794_vm2, %v9123_v20  ;;  %v4993_v20 = vld [vmem:[%s8870_s5 + $0x118] sm:$0xff] }
 0x2c4   : > { %5848 = vmatprep.mubr.msk.f32.mxu0 %vm794_vm2, %v6820_v16  ;;  %6155 = vmatmul.mubr.msk.f32.gmra.mrb[36].mxu1 %vm794_vm2, %v9086_v59  ;;  %v6822_v16 = vld [vmem:[#allocation2 + $0x28] sm:$0xff]  ;;  %v6388_v0 = vpack.c.bf16 %v4993_v20, %v4992_v33 }
 0x2c5   : > { %6157 = vmatprep.mubr.msk.f32.mxu1 %vm794_vm2, %v8424_v34  ;;  %v9128_v20 = vld [vmem:[#allocation14_spill] sm:$0xff] }
 0x2c6   : > { %v9140_v33 = vld [vmem:[#allocation26_spill] sm:$0xff] }
 0x2c7   : > { %5849 = vmatmul.mubr.msk.f32.vlgmr.msra.gmra.mrb[32].mxu0 %vm794_vm2, %v6821_v54  ;;  %v9125_v54 = vld [vmem:[#allocation7_spill] sm:$0xff] }
 0x2c8   : > { %5851 = vmatprep.mubr.msk.f32.mxu0 %vm794_vm2, %v6822_v16  ;;  %6158 = vmatmul.mubr.msk.f32.gmra.mrb[38].mxu1 %vm794_vm2, %v8433_v60  ;;  %v9127_v16 = vld [vmem:[#allocation13_spill] sm:$0xff] }
 0x2c9   : > { %6168 = vmatprep.mubr.msk.f32.mxu1 %vm794_vm2, %v9124_v19  ;;  %6355 = vmatpush3.bf16.msra.mxu0 %v9091_v18  ;;  %v9133_v18 = vld [vmem:[#allocation19_spill] sm:$0xff] }
 0x2ca   : > { %6357 = vmatprep.subr.bf16.mxu0 %v9125_v54 }
 0x2cb   : > { %5852 = vmatmul.mubr.msk.f32.gmra.mrb[34].mxu0 %vm794_vm2, %v8210_v51  ;;  %v9129_v51 = vld [vmem:[#allocation15_spill] sm:$0xff] }
 0x2cc   : > { %5854 = vmatprep.mubr.msk.f32.mxu0 %vm794_vm2, %v8225_v6  ;;  %6169 = vmatmul.mubr.msk.f32.vlgmr.msra.gmra.mrb[40].mxu1 %vm794_vm2, %v9126_v56  ;;  %v9130_v6 = vld [vmem:[#allocation16_spill] sm:$0xff] }
 0x2cd   : > { %6387 = vmatpush3.bf16.msra.mxu1 %v8234_v5  ;;  %6171 = vmatprep.mubr.msk.f32.mxu1 %vm794_vm2, %v9127_v16  ;;  %v9132_v5 = vld [vmem:[#allocation18_spill] sm:$0xff] }
 0x2ce   : > { %6389 = vmatprep.subr.bf16.mxu1 %v6388_v0  ;;  %6359 = vmatpush3.bf16.msra.mxu0 %v9125_v54  ;;  %v9141_v54 = vld [vmem:[#allocation27_spill] sm:$0xff] }
 0x2cf   : > { %5855 = vmatmul.mubr.msk.f32.gmra.mrb[36].mxu0 %vm794_vm2, %v8230_v58  ;;  %v9131_v58 = vld [vmem:[#allocation17_spill] sm:$0xff] }
 0x2d0   : > { %5857 = vmatprep.mubr.msk.f32.mxu0 %vm794_vm2, %v8241_v45  ;;  %6172 = vmatmul.mubr.msk.f32.gmra.mrb[42].mxu1 %vm794_vm2, %v9128_v20  ;;  %v9134_v45 = vld [vmem:[#allocation20_spill] sm:$0xff] }
 0x2d1   : > { %6174 = vmatprep.mubr.msk.f32.mxu1 %vm794_vm2, %v9129_v51  ;;  %6391 = vmatpush3.bf16.msra.mxu1 %v6388_v0  ;;  %v9139_v0 = vld [vmem:[#allocation25_spill] sm:$0xff] }
 0x2d3   : > { %5858 = vmatmul.mubr.msk.f32.gmra.mrb[38].mxu0 %vm794_vm2, %v8245_v10  ;;  %v9135_v10 = vld [vmem:[#allocation21_spill] sm:$0xff] }
 0x2d4   : > { %5860 = vmatprep.mubr.msk.f32.mxu0 %vm794_vm2, %v8254_v31  ;;  %6175 = vmatmul.mubr.msk.f32.gmra.mrb[44].mxu1 %vm794_vm2, %v9130_v6  ;;  %v9136_v31 = vld [vmem:[#allocation22_spill] sm:$0xff]  ;;  %v6827_v6 = vld [vmem:[#allocation2 + $0xb0] sm:$0xff] }
 0x2d5   : > { %6177 = vmatprep.mubr.msk.f32.mxu1 %vm794_vm2, %v9131_v58  ;;  %v6828_v58 = vld [vmem:[#allocation2 + $0xb8] sm:$0xff] }
 0x2d7   : > { %5861 = vmatmul.mubr.msk.f32.gmra.mrb[40].mxu0 %vm794_vm2, %v8258_v1  ;;  %v9137_v1 = vld [vmem:[#allocation23_spill] sm:$0xff] }
 0x2d8   : > { %5863 = vmatprep.mubr.msk.f32.mxu0 %vm794_vm2, %v8266_v23  ;;  %6178 = vmatmul.mubr.msk.f32.gmra.mrb[46].mxu1 %vm794_vm2, %v9132_v5  ;;  %v6823_v23 = vld [vmem:[#allocation2 + $0x90] sm:$0xff]  ;;  %v9142_v5 = vld [vmem:[#allocation28_spill] sm:$0xff] }
 0x2d9   : > { %6180 = vmatprep.mubr.msk.f32.mxu1 %vm794_vm2, %v9133_v18  ;;  %v9143_v18 = vld [vmem:[#allocation29_spill] sm:$0xff] }
 0x2db   : > { %5864 = vmatmul.mubr.msk.f32.gmra.mrb[42].mxu0 %vm794_vm2, %v8270_v53  ;;  %v6824_v53 = vld [vmem:[#allocation2 + $0x98] sm:$0xff] }
 0x2dc   : > { %5866 = vmatprep.mubr.msk.f32.mxu0 %vm794_vm2, %v8278_v14  ;;  %6181 = vmatmul.mubr.msk.f32.gmra.mrb[0].mxu1 %vm794_vm2, %v9134_v45  ;;  %v9138_v14 = vld [vmem:[#allocation24_spill] sm:$0xff]  ;;  %v6829_v45 = vld [vmem:[#allocation2 + $0xc0] sm:$0xff] }
 0x2dd   : > { %6183 = vmatprep.mubr.msk.f32.mxu1 %vm794_vm2, %v9135_v10  ;;  %v6830_v10 = vld [vmem:[#allocation2 + $0xc8] sm:$0xff] }
 0x2df   : > { %5867 = vmatmul.mubr.msk.f32.gmra.mrb[44].mxu0 %vm794_vm2, %v8282_v9  ;;  %v6825_v9 = vld [vmem:[#allocation2 + $0xa0] sm:$0xff] }
 0x2e0   : > { %5869 = vmatprep.mubr.msk.f32.mxu0 %vm794_vm2, %v8290_v21  ;;  %6184 = vmatmul.mubr.msk.f32.gmra.mrb[2].mxu1 %vm794_vm2, %v9136_v31  ;;  %v6826_v21 = vld [vmem:[#allocation2 + $0xa8] sm:$0xff] }
 0x2e1   : > { %6186 = vmatprep.mubr.msk.f32.mxu1 %vm794_vm2, %v9137_v1  ;;  %v9144_v31 = vld [vmem:[#allocation30_spill] sm:$0xff]  ;;  %v9145_v1 = vld [vmem:[#allocation31_spill] sm:$0xff] }
 0x2e3   : > { %5870 = vmatmul.mubr.msk.f32.gmra.mrb[46].mxu0 %vm794_vm2, %v6823_v23  ;;  %v6831_v23 = vld [vmem:[#allocation2 + $0xd0] sm:$0xff] }
 0x2e4   : > { %5872 = vmatprep.mubr.msk.f32.mxu0 %vm794_vm2, %v6824_v53  ;;  %6187 = vmatmul.mubr.msk.f32.gmra.mrb[4].mxu1 %vm794_vm2, %v9138_v14  ;;  %v6832_v53 = vld [vmem:[#allocation2 + $0xd8] sm:$0xff] }
 0x2e5   : > { %6189 = vmatprep.mubr.msk.f32.mxu1 %vm794_vm2, %v9139_v0  ;;  %v9146_v14 = vld [vmem:[#allocation32_spill] sm:$0xff]  ;;  %v9147_v0 = vld [vmem:[#allocation33_spill] sm:$0xff] }
 0x2e7   : > { %5873 = vmatmul.mubr.msk.f32.gmra.mrb[48].mxu0 %vm794_vm2, %v6825_v9  ;;  %v6833_v9 = vld [vmem:[#allocation2 + $0xe0] sm:$0xff] }
 0x2e8   : > { %5875 = vmatprep.mubr.msk.f32.mxu0 %vm794_vm2, %v6826_v21  ;;  %6190 = vmatmul.mubr.msk.f32.gmra.mrb[6].mxu1 %vm794_vm2, %v9140_v33  ;;  %v6834_v21 = vld [vmem:[#allocation2 + $0xe8] sm:$0xff] }
 0x2e9   : > { %6192 = vmatprep.mubr.msk.f32.mxu1 %vm794_vm2, %v9141_v54  ;;  %v9148_v33 = vld [vmem:[#allocation34_spill] sm:$0xff]  ;;  %v9149_v54 = vld [vmem:[#allocation35_spill] sm:$0xff] }
 0x2eb   : > { %5876 = vmatmul.mubr.msk.f32.gmra.mrb[50].mxu0 %vm794_vm2, %v6827_v6  ;;  %v6835_v6 = vld [vmem:[#allocation2 + $0xf0] sm:$0xff] }
 0x2ec   : > { %5878 = vmatprep.mubr.msk.f32.mxu0 %vm794_vm2, %v6828_v58  ;;  %6193 = vmatmul.mubr.msk.f32.gmra.mrb[8].mxu1 %vm794_vm2, %v9142_v5  ;;  %v6836_v58 = vld [vmem:[#allocation2 + $0xf8] sm:$0xff] }
 0x2ed   : > { %6195 = vmatprep.mubr.msk.f32.mxu1 %vm794_vm2, %v9143_v18  ;;  %v9150_v5 = vld [vmem:[#allocation36_spill] sm:$0xff]  ;;  %v9151_v18 = vld [vmem:[#allocation37_spill] sm:$0xff] }
 0x2ef   : > { %5879 = vmatmul.mubr.msk.f32.gmra.mrb[52].mxu0 %vm794_vm2, %v6829_v45  ;;  %v6837_v45 = vld [vmem:[#allocation2 + $0x100] sm:$0xff] }
 0x2f0   : > { %5881 = vmatprep.mubr.msk.f32.mxu0 %vm794_vm2, %v6830_v10  ;;  %6196 = vmatmul.mubr.msk.f32.gmra.mrb[10].mxu1 %vm794_vm2, %v9144_v31  ;;  %v6838_v10 = vld [vmem:[#allocation2 + $0x108] sm:$0xff] }
 0x2f1   : > { %6198 = vmatprep.mubr.msk.f32.mxu1 %vm794_vm2, %v9145_v1  ;;  %v9152_v31 = vld [vmem:[#allocation38_spill] sm:$0xff]  ;;  %v9153_v1 = vld [vmem:[#allocation39_spill] sm:$0xff] }
 0x2f3   : > { %5882 = vmatmul.mubr.msk.f32.gmra.mrb[54].mxu0 %vm794_vm2, %v6831_v23  ;;  %v6839_v23 = vld [vmem:[#allocation2 + $0x110] sm:$0xff] }
 0x2f4   : > { %5884 = vmatprep.mubr.msk.f32.mxu0 %vm794_vm2, %v6832_v53  ;;  %6199 = vmatmul.mubr.msk.f32.gmra.mrb[12].mxu1 %vm794_vm2, %v9146_v14  ;;  %v6840_v53 = vld [vmem:[#allocation2 + $0x118] sm:$0xff] }
 0x2f5   : > { %6201 = vmatprep.mubr.msk.f32.mxu1 %vm794_vm2, %v9147_v0  ;;  %v9154_v14 = vld [vmem:[#allocation40_spill] sm:$0xff]  ;;  %v9155_v0 = vld [vmem:[#allocation41_spill] sm:$0xff] }
 0x2f7   : > { %5885 = vmatmul.mubr.msk.f32.gmra.mrb[56].mxu0 %vm794_vm2, %v6833_v9  ;;  %v9156_v9 = vld [vmem:[#allocation42_spill] sm:$0xff] }
 0x2f8   : > { %5887 = vmatprep.mubr.msk.f32.mxu0 %vm794_vm2, %v6834_v21  ;;  %6202 = vmatmul.mubr.msk.f32.gmra.mrb[14].mxu1 %vm794_vm2, %v9148_v33  ;;  %v9157_v21 = vld [vmem:[#allocation43_spill] sm:$0xff] }
 0x2f9   : > { %6204 = vmatprep.mubr.msk.f32.mxu1 %vm794_vm2, %v9149_v54  ;;  %v6841_v33 = vld [vmem:[#allocation2 + $0x130] sm:$0xff]  ;;  %v9158_v54 = vld [vmem:[#allocation44_spill] sm:$0xff] }
 0x2fb   : > { %5888 = vmatmul.mubr.msk.f32.gmra.mrb[58].mxu0 %vm794_vm2, %v6835_v6  ;;  %v9159_v6 = vld [vmem:[#allocation45_spill] sm:$0xff] }
 0x2fc   : > { %5890 = vmatprep.mubr.msk.f32.mxu0 %vm794_vm2, %v6836_v58  ;;  %6205 = vmatmul.mubr.msk.f32.gmra.mrb[16].mxu1 %vm794_vm2, %v9150_v5  ;;  %v9163_v58 = vld [vmem:[#allocation53_spill] sm:$0xff]  ;;  %v8602_v5 = vld [vmem:[#allocation2 + $0x1b0] sm:$0xff] }
 0x2fd   : > { %6207 = vmatprep.mubr.msk.f32.mxu1 %vm794_vm2, %v9151_v18  ;;  %v9170_v18 = vrot.slane %v9086_v59, 1 }
 0x2ff   : > { %5891 = vmatmul.mubr.msk.f32.gmra.mrb[60].mxu0 %vm794_vm2, %v6837_v45 }
 0x300   : > { %5893 = vmatprep.mubr.msk.f32.mxu0 %vm794_vm2, %v6838_v10  ;;  %6208 = vmatmul.mubr.msk.f32.gmra.mrb[18].mxu1 %vm794_vm2, %v9152_v31  ;;  %v3728_v10 = vrot.slane %v8602_v5, 1 }
 0x301   : > { %6210 = vmatprep.mubr.msk.f32.mxu1 %vm794_vm2, %v9153_v1  ;;  %v9172_v1 = vld [vmem:[#allocation9_spill] sm:$0xff] }
 0x303   : > { %5894 = vmatmul.mubr.msk.f32.gmra.mrb[62].mxu0 %vm794_vm2, %v6839_v23  ;;  %v9173_v23 = vld [vmem:[#allocation10_spill] sm:$0xff] }
 0x304   : > { %5896 = vmatprep.mubr.msk.f32.mxu0 %vm794_vm2, %v6840_v53  ;;  %6211 = vmatmul.mubr.msk.f32.gmra.mrb[20].mxu1 %vm794_vm2, %v9154_v14 }
 0x305   : > { %6213 = vmatprep.mubr.msk.f32.mxu1 %vm794_vm2, %v9155_v0 }
 0x307   : > { %5897 = vmatmul.mubr.msk.f32.gmra.mrb[64].mxu0 %vm794_vm2, %v7602_v57  ;;  %v9161_v57 = vld [vmem:[#allocation50_spill] sm:$0xff] }
 0x308   : > { %5899 = vmatprep.mubr.msk.f32.mxu0 %vm794_vm2, %v7604_v3  ;;  %6214 = vmatmul.mubr.msk.f32.gmra.mrb[22].mxu1 %vm794_vm2, %v9156_v9  ;;  %v9160_v3 = vld [vmem:[#allocation49_spill] sm:$0xff] }
 0x309   : > { %6216 = vmatprep.mubr.msk.f32.mxu1 %vm794_vm2, %v9157_v21 }
 0x30b   : > { %5900 = vmatmul.mubr.msk.f32.gmra.mrb[66].mxu0 %vm794_vm2, %v6841_v33 }
 0x30c   : > { %5902 = vmatprep.mubr.msk.f32.mxu0 %vm794_vm2, %v7636_v29  ;;  %6217 = vmatmul.mubr.msk.f32.gmra.mrb[24].mxu1 %vm794_vm2, %v9158_v54  ;;  %v9162_v29 = vld [vmem:[#allocation51_spill] sm:$0xff] }
 0x30d   : > { %6219 = vmatprep.mubr.msk.f32.mxu1 %vm794_vm2, %v9159_v6 }
 0x30f   : > { %5903 = vmatmul.mubr.msk.f32.gmra.mrb[68].mxu0 %vm794_vm2, %v7638_v47  ;;  %v9165_v47 = vld [vmem:[#allocation55_spill] sm:$0xff] }
 0x310   : > { %5905 = vmatprep.mubr.msk.f32.mxu0 %vm794_vm2, %v7631_v22  ;;  %6220 = vmatmul.mubr.msk.f32.gmra.mrb[26].mxu1 %vm794_vm2, %v9160_v3  ;;  %v9164_v22 = vld [vmem:[#allocation54_spill] sm:$0xff] }
 0x311   : > { %6222 = vmatprep.mubr.msk.f32.mxu1 %vm794_vm2, %v9161_v57 }
 0x313   : > { %5906 = vmatmul.mubr.msk.f32.gmra.mrb[70].mxu0 %vm794_vm2, %v9108_v48  ;;  %v9166_v48 = vld [vmem:[#allocation60_spill] sm:$0xff] }
 0x314   : > { %5908 = vmatprep.mubr.msk.f32.mxu0 %vm794_vm2, %v9111_v62  ;;  %6223 = vmatmul.mubr.msk.f32.gmra.mrb[28].mxu1 %vm794_vm2, %v9162_v29  ;;  %v3724_v62 = vrot.slane %v8424_v34, 1 }
 0x315   : > { %6225 = vmatprep.mubr.msk.f32.mxu1 %vm794_vm2, %v9163_v58 }
 0x316   : > { %v3725_v45 = vsel %vm985_vm5, %v9170_v18, %v3724_v62 }
 0x317   : > { %5909 = vmatmul.mubr.msk.f32.gmra.mrb[72].mxu0 %vm794_vm2, %v9112_v32  ;;  %v9167_v32 = vld [vmem:[#allocation61_spill] sm:$0xff] }
 0x318   : > { %5911 = vmatprep.mubr.msk.f32.mxu0 %vm794_vm2, %v7704_v37  ;;  %6226 = vmatmul.mubr.msk.f32.gmra.mrb[30].mxu1 %vm794_vm2, %v9164_v22  ;;  %v3726_v37 = vrot.slane %v8433_v60, 1 }
 0x319   : > { %6228 = vmatprep.mubr.msk.f32.mxu1 %vm794_vm2, %v9165_v47 }
 0x31a   : > { %v3727_v31 = vsel %vm985_vm5, %v3724_v62, %v3726_v37 }
 0x31b   : > { %5912 = vmatmul.mubr.msk.f32.gmra.mrb[74].mxu0 %vm794_vm2, %v7706_v38  ;;  %v9168_v38 = vld [vmem:[#allocation62_spill] sm:$0xff] }
 0x31c   : > { %5914 = vmatprep.mubr.msk.f32.mxu0 %vm794_vm2, %v9117_v40  ;;  %6229 = vmatmul.mubr.msk.f32.gmra.mrb[32].mxu1 %vm794_vm2, %v9166_v48  ;;  %v9169_v40 = vld [vmem:[#allocation63_spill] sm:$0xff] }
 0x31d   : > { %6231 = vmatprep.mubr.msk.f32.mxu1 %vm794_vm2, %v9167_v32 }
 0x31f   : > { %5915 = vmatmul.mubr.msk.f32.gmra.mrb[76].mxu0 %vm794_vm2, %v9118_v17  ;;  %v9171_v17 = vld [vmem:[#allocation8_spill] sm:$0xff] }
 0x320   : > { %5917 = vmatprep.mubr.msk.f32.mxu0 %vm794_vm2, %v9121_v30  ;;  %6232 = vmatmul.mubr.msk.f32.gmra.mrb[34].mxu1 %vm794_vm2, %v9168_v38  ;;  %v3729_v30 = vsel %vm985_vm5, %v3726_v37, %v3728_v10 }
 0x321   : > { %6234 = vmatprep.mubr.msk.f32.mxu1 %vm794_vm2, %v9169_v40 }
 0x323   : > { %5918 = vmatmul.mubr.msk.f32.gmra.mrb[78].mxu0 %vm794_vm2, %v9122_v27 }
 0x324   : > { %5928 = vmatprep.mubr.msk.f32.mxu0 %vm794_vm2, %v9171_v17  ;;  %6235 = vmatmul.mubr.msk.f32.gmra.mrb[36].mxu1 %vm794_vm2, %v3725_v45 }
 0x325   : > { %6237 = vmatprep.mubr.msk.f32.mxu1 %vm794_vm2, %v3727_v31 }
 0x327   : > { %5929 = vmatmul.mubr.msk.f32.vlgmr.msra.gmra.mrb[32].mxu0 %vm794_vm2, %v9172_v1 }
 0x328   : > { %5931 = vmatprep.mubr.msk.f32.mxu0 %vm794_vm2, %v9173_v23  ;;  %6238 = vmatmul.mubr.msk.f32.gmra.mrb[38].mxu1 %vm794_vm2, %v3729_v30 }
 0x329   : > { %6248 = vmatprep.mubr.msk.f32.mxu1 %vm794_vm2, %v7835_v52  ;;  %v9174_v52 = vld [vmem:[#allocation73_spill] sm:$0xff] }
 0x32b   : > { %5932 = vmatmul.mubr.msk.f32.gmra.mrb[34].mxu0 %vm794_vm2, %v9124_v19 }
 0x32c   : > { %5934 = vmatprep.mubr.msk.f32.mxu0 %vm794_vm2, %v9126_v56  ;;  %6249 = vmatmul.mubr.msk.f32.vlgmr.msra.gmra.mrb[40].mxu1 %vm794_vm2, %v7844_v15  ;;  %v9175_v15 = vld [vmem:[#allocation74_spill] sm:$0xff] }
 0x32d   : > { %6251 = vmatprep.mubr.msk.f32.mxu1 %vm794_vm2, %v7853_v50  ;;  %v9176_v50 = vld [vmem:[#allocation75_spill] sm:$0xff] }
 0x32f   : > { %5935 = vmatmul.mubr.msk.f32.gmra.mrb[36].mxu0 %vm794_vm2, %v9127_v16 }
 0x330   : > { %5937 = vmatprep.mubr.msk.f32.mxu0 %vm794_vm2, %v9128_v20  ;;  %6252 = vmatmul.mubr.msk.f32.gmra.mrb[42].mxu1 %vm794_vm2, %v7861_v28  ;;  %v9177_v28 = vld [vmem:[#allocation76_spill] sm:$0xff] }
 0x331   : > { %6254 = vmatprep.mubr.msk.f32.mxu1 %vm794_vm2, %v7869_v7  ;;  %v9178_v7 = vld [vmem:[#allocation77_spill] sm:$0xff] }
 0x333   : > { %5938 = vmatmul.mubr.msk.f32.gmra.mrb[38].mxu0 %vm794_vm2, %v9129_v51 }
 0x334   : > { %6255 = vmatmul.mubr.msk.f32.gmra.mrb[44].mxu1 %vm794_vm2, %v7877_v8  ;;  %v9179_v8 = vld [vmem:[#allocation78_spill] sm:$0xff] }
 0x335   : > { %6257 = vmatprep.mubr.msk.f32.mxu1 %vm794_vm2, %v7885_v25  ;;  %v9180_v25 = vld [vmem:[#allocation79_spill] sm:$0xff] }
 0x338   : > { %6258 = vmatmul.mubr.msk.f32.gmra.mrb[46].mxu1 %vm794_vm2, %v7893_v26  ;;  %v9181_v26 = vld [vmem:[#allocation80_spill] sm:$0xff] }
 0x339   : > { %6260 = vmatprep.mubr.msk.f32.mxu1 %vm794_vm2, %v7901_v24  ;;  %v9182_v24 = vld [vmem:[#allocation81_spill] sm:$0xff] }
 0x33c   : > { %6261 = vmatmul.mubr.msk.f32.gmra.mrb[0].mxu1 %vm794_vm2, %v7909_v43  ;;  %v9183_v43 = vld [vmem:[#allocation82_spill] sm:$0xff] }
 0x33d   : > { %6263 = vmatprep.mubr.msk.f32.mxu1 %vm794_vm2, %v7917_v44  ;;  %v9184_v44 = vld [vmem:[#allocation83_spill] sm:$0xff] }
 0x340   : > { %6264 = vmatmul.mubr.msk.f32.gmra.mrb[2].mxu1 %vm794_vm2, %v7925_v41  ;;  %v9185_v41 = vld [vmem:[#allocation84_spill] sm:$0xff] }
 0x341   : > { %6266 = vmatprep.mubr.msk.f32.mxu1 %vm794_vm2, %v7933_v12  ;;  %v9186_v12 = vld [vmem:[#allocation85_spill] sm:$0xff] }
 0x344   : > { %6267 = vmatmul.mubr.msk.f32.gmra.mrb[4].mxu1 %vm794_vm2, %v7941_v13  ;;  %v9187_v13 = vld [vmem:[#allocation86_spill] sm:$0xff] }
 0x345   : > { %6269 = vmatprep.mubr.msk.f32.mxu1 %vm794_vm2, %v7949_v4  ;;  %v9188_v4 = vld [vmem:[#allocation87_spill] sm:$0xff] }
 0x348   : > { %6270 = vmatmul.mubr.msk.f32.gmra.mrb[6].mxu1 %vm794_vm2, %v7957_v42  ;;  %v9189_v42 = vld [vmem:[#allocation88_spill] sm:$0xff] }
 0x349   : > { %6272 = vmatprep.mubr.msk.f32.mxu1 %vm794_vm2, %v7965_v11  ;;  %v4062_v11 = vrot.slane %v8424_v34, 2 }
 0x34c   : > { %6273 = vmatmul.mubr.msk.f32.gmra.mrb[8].mxu1 %vm794_vm2, %v9092_v35  ;;  %v9190_v35 = vld [vmem:[#allocation89_spill] sm:$0xff] }
 0x34d   : > { %6275 = vmatprep.mubr.msk.f32.mxu1 %vm794_vm2, %v9093_v36  ;;  %v4064_v36 = vrot.slane %v8433_v60, 2 }
 0x350   : > { %6276 = vmatmul.mubr.msk.f32.gmra.mrb[10].mxu1 %vm794_vm2, %v9094_v39  ;;  %v9191_v39 = vld [vmem:[#allocation59_spill] sm:$0xff] }
 0x351   : > { %6278 = vmatprep.mubr.msk.f32.mxu1 %vm794_vm2, %v9095_v61  ;;  %v9192_v61 = vld [vmem:[#allocation90_spill] sm:$0xff] }
 0x354   : > { %6279 = vmatmul.mubr.msk.f32.gmra.mrb[12].mxu1 %vm794_vm2, %v9096_v63  ;;  %v9193_v63 = vrot.slane %v9086_v59, 2 }
 0x355   : > { %6281 = vmatprep.mubr.msk.f32.mxu1 %vm794_vm2, %v9097_v2 }
 0x356   : > { %v4063_v2 = vsel %vm1858_vm6, %v9193_v63, %v4062_v11 }
 0x358   : > { %6282 = vmatmul.mubr.msk.f32.gmra.mrb[14].mxu1 %vm794_vm2, %v9098_v46  ;;  %v4066_v46 = vrot.slane %v8602_v5, 2 }
 0x359   : > { %6284 = vmatprep.mubr.msk.f32.mxu1 %vm794_vm2, %v9099_v49  ;;  %v4065_v49 = vsel %vm1858_vm6, %v4062_v11, %v4064_v36 }
 0x35a   : > { %v4067_v34 = vsel %vm1858_vm6, %v4064_v36, %v4066_v46 }
 0x35c   : > { %6285 = vmatmul.mubr.msk.f32.gmra.mrb[16].mxu1 %vm794_vm2, %v9100_v55 }
 0x35d   : > { %6287 = vmatprep.mubr.msk.f32.mxu1 %vm794_vm2, %v9174_v52 }
 0x360   : > { %6288 = vmatmul.mubr.msk.f32.gmra.mrb[18].mxu1 %vm794_vm2, %v9175_v15 }
 0x361   : > { %6290 = vmatprep.mubr.msk.f32.mxu1 %vm794_vm2, %v9176_v50 }
 0x364   : > { %6291 = vmatmul.mubr.msk.f32.gmra.mrb[20].mxu1 %vm794_vm2, %v9177_v28 }
 0x365   : > { %6293 = vmatprep.mubr.msk.f32.mxu1 %vm794_vm2, %v9178_v7 }
 0x368   : > { %6294 = vmatmul.mubr.msk.f32.gmra.mrb[22].mxu1 %vm794_vm2, %v9179_v8 }
 0x369   : > { %6296 = vmatprep.mubr.msk.f32.mxu1 %vm794_vm2, %v9180_v25 }
 0x36c   : > { %6297 = vmatmul.mubr.msk.f32.gmra.mrb[24].mxu1 %vm794_vm2, %v9181_v26 }
 0x36d   : > { %6299 = vmatprep.mubr.msk.f32.mxu1 %vm794_vm2, %v9182_v24 }
 0x370   : > { %6300 = vmatmul.mubr.msk.f32.gmra.mrb[26].mxu1 %vm794_vm2, %v9183_v43 }
 0x371   : > { %6302 = vmatprep.mubr.msk.f32.mxu1 %vm794_vm2, %v9184_v44 }
 0x374   : > { %6303 = vmatmul.mubr.msk.f32.gmra.mrb[28].mxu1 %vm794_vm2, %v9185_v41 }
 0x375   : > { %6305 = vmatprep.mubr.msk.f32.mxu1 %vm794_vm2, %v9186_v12 }
 0x378   : > { %6306 = vmatmul.mubr.msk.f32.gmra.mrb[30].mxu1 %vm794_vm2, %v9187_v13 }
 0x379   : > { %6308 = vmatprep.mubr.msk.f32.mxu1 %vm794_vm2, %v9188_v4 }
 0x37c   : > { %6309 = vmatmul.mubr.msk.f32.gmra.mrb[32].mxu1 %vm794_vm2, %v9189_v42 }
 0x37d   : > { %6311 = vmatprep.mubr.msk.f32.mxu1 %vm794_vm2, %v9190_v35 }
 0x380   : > { %6312 = vmatmul.mubr.msk.f32.gmra.mrb[34].mxu1 %vm794_vm2, %v9191_v39 }
 0x381   : > { %6314 = vmatprep.mubr.msk.f32.mxu1 %vm794_vm2, %v9192_v61 }
 0x384   : > { %6315 = vmatmul.mubr.msk.f32.gmra.mrb[36].mxu1 %vm794_vm2, %v4063_v2 }
 0x385   : > { %6317 = vmatprep.mubr.msk.f32.mxu1 %vm794_vm2, %v4065_v49 }
 0x388   : > { %6318 = vmatmul.mubr.msk.f32.gmra.mrb[38].mxu1 %vm794_vm2, %v4067_v34 }
 0x3aa   : > { %v8740_v55 = vpop.f32.mrb[40].mxu0 }
 0x3ab   : > { %v2490_v56 = vpop.f32.mrb[41].mxu0 }
 0x3ae   : > { %v5865_v19 = vpop.f32.mrb[42].mxu0 }
 0x3af   : > { %v8742_v27 = vpop.f32.mrb[43].mxu0 }
 0x3b2   : > { %v8744_v59 = vpop.f32.mrb[44].mxu0 }
 0x3b3   : > { %v8746_v60 = vpop.f32.mrb[45].mxu0 }
 0x3b6   : > { %v8748_v16 = vpop.f32.mrb[46].mxu0 }
 0x3b7   : > { %v2518_v20 = vpop.f32.mrb[47].mxu0 }
 0x3ba   : > { %v5874_v51 = vpop.f32.mrb[48].mxu0 }
 0x3bb   : > { %v8750_v53 = vpop.f32.mrb[49].mxu0 }
 0x3be   : > { %v8752_v14 = vpop.f32.mrb[50].mxu0 }
 0x3bf   : > { %v8754_v0 = vpop.f32.mrb[51].mxu0 }
 0x3c2   : > { %v8756_v9 = vpop.f32.mrb[52].mxu0 }
 0x3c3   : > { %v2546_v21 = vpop.f32.mrb[53].mxu0 }
 0x3c6   : > { %v5883_v33 = vpop.f32.mrb[54].mxu0 }
 0x3c7   : > { %v8758_v54 = vpop.f32.mrb[55].mxu0 }
 0x3ca   : > { %v8760_v6 = vpop.f32.mrb[56].mxu0 }
 0x3cb   : > { %v8762_v3 = vpop.f32.mrb[57].mxu0 }
 0x3ce   : > { %v8764_v57 = vpop.f32.mrb[58].mxu0 }
 0x3cf   : > { %v2574_v29 = vpop.f32.mrb[59].mxu0 }
 0x3d2   : > { %v5892_v58 = vpop.f32.mrb[60].mxu0 }
 0x3d3   : > { %v8766_v22 = vpop.f32.mrb[61].mxu0 }
 0x3d6   : > { %v8768_v47 = vpop.f32.mrb[62].mxu0 }
 0x3d7   : > { %v8770_v48 = vpop.f32.mrb[63].mxu0 }
 0x3da   : > { %v8772_v62 = vpop.f32.mrb[64].mxu0 }
 0x3db   : > { %v2602_v32 = vpop.f32.mrb[65].mxu0 }
 0x3de   : > { %v5901_v37 = vpop.f32.mrb[66].mxu0 }
 0x3df   : > { %v8774_v5 = vpop.f32.mrb[67].mxu0 }
 0x3e2   : > { %v8776_v38 = vpop.f32.mrb[68].mxu0 }
 0x3e3   : > { %v8778_v40 = vpop.f32.mrb[69].mxu0 }
 0x3e6   : > { %v8780_v18 = vpop.f32.mrb[70].mxu0 }
 0x3e7   : > { %v2630_v45 = vpop.f32.mrb[71].mxu0 }
 0x3ea   : > { %v5910_v10 = vpop.f32.mrb[72].mxu0 }
 0x3eb   : > { %v8782_v31 = vpop.f32.mrb[73].mxu0 }
 0x3ee   : > { %v8784_v17 = vpop.f32.mrb[74].mxu0 }
 0x3ef   : > { %v8786_v30 = vpop.f32.mrb[75].mxu0 }
 0x3f2   : > { %v8788_v1 = vpop.f32.mrb[76].mxu0 }
 0x3f3   : > { %v2658_v23 = vpop.f32.mrb[77].mxu0 }
 0x3f6   : > { %v5919_v52 = vpop.f32.mrb[78].mxu0 }
 0x3f7   : > { %v8790_v15 = vpop.f32.mrb[79].mxu0 }
 0x3fa   : > { %v5930_v50 = vpop.f32.mrb[32].mxu0 }
 0x3fb   : > { %v2791_v28 = vpop.f32.mrb[33].mxu0 }
 0x3fe   : > { %v5933_v7 = vpop.f32.mrb[34].mxu0 }
 0x3ff   : > { %v2801_v8 = vpop.f32.mrb[35].mxu0  ;;  %v6250_v25 = vpop.f32.mrb[40].mxu1 }
 0x400   : > { %v6396_v26 = vadd.f32 %v6250_v25, %v5930_v50  ;;  %v4140_v24 = vpop.f32.mrb[41].mxu1 }
 0x401   : > { %v6397_v43 = vadd.f32 %v4140_v24, %v2791_v28 }
 0x402   : > { %v5936_v44 = vpop.f32.mrb[36].mxu0 }
 0x403   : > { %v6253_v41 = vpop.f32.mrb[42].mxu1  ;;  %4395 = vxpose.xlu1.b32.start [1/16] (narrow) %v6397_v43, 8  ;;  %v2810_v12 = vpop.f32.mrb[37].mxu0 }
 0x404   : > { %v6398_v13 = vadd.f32 %v6253_v41, %v5933_v7  ;;  %v4150_v4 = vpop.f32.mrb[43].mxu1 }
 0x406   : > { %v5939_v42 = vpop.f32.mrb[38].mxu0 }
 0x407   : > { %v6256_v11 = vpop.f32.mrb[44].mxu1  ;;  %4396 = vxpose.xlu1.b32.cont [2/16] (narrow) %v6396_v26, 8  ;;  %v2819_v35 = vpop.f32.mrb[39].mxu0 }
 0x408   : > { %v4159_v36 = vpop.f32.mrb[45].mxu1 }
 0x409   : > { %v6399_v39 = vadd.f32 %v4159_v36, %v2810_v12 }
 0x40b   : > { %v6259_v61 = vpop.f32.mrb[46].mxu1  ;;  %4397 = vxpose.xlu1.b32.cont [3/16] (narrow) %v6398_v13, 8 }
 0x40c   : > { %v6400_v63 = vadd.f32 %v6259_v61, %v5939_v42  ;;  %v4168_v2 = vpop.f32.mrb[47].mxu1 }
 0x40d   : > { %v6401_v46 = vadd.f32 %v4168_v2, %v2819_v35 }
 0x40f   : > { %v6262_v49 = vpop.f32.mrb[0].mxu1  ;;  %4398 = vxpose.xlu1.b32.cont [4/16] (narrow) %v6399_v39, 8 }
 0x410   : > { %v6402_v34 = vadd.f32 %v6262_v49, %v8740_v55  ;;  %v4178_v56 = vpop.f32.mrb[1].mxu1 }
 0x413   : > { %v6265_v19 = vpop.f32.mrb[2].mxu1  ;;  %4399 = vxpose.xlu1.b32.cont [5/16] (narrow) %v6401_v46, 8 }
 0x414   : > { %v4187_v20 = vpop.f32.mrb[3].mxu1 }
 0x415   : > { %v6403_v51 = vadd.f32 %v4187_v20, %v8742_v27 }
 0x417   : > { %v6268_v21 = vpop.f32.mrb[4].mxu1  ;;  %4400 = vxpose.xlu1.b32.cont [6/16] (narrow) %v6400_v63, 8 }
 0x418   : > { %v6404_v33 = vadd.f32 %v6268_v21, %v8744_v59  ;;  %v4196_v29 = vpop.f32.mrb[5].mxu1 }
 0x419   : > { %v6405_v58 = vadd.f32 %v4196_v29, %v8746_v60 }
 0x41b   : > { %v6271_v32 = vpop.f32.mrb[6].mxu1  ;;  %4401 = vxpose.xlu1.b32.cont [7/16] (narrow) %v6402_v34, 8 }
 0x41c   : > { %v6406_v37 = vadd.f32 %v6271_v32, %v8748_v16  ;;  %v4206_v45 = vpop.f32.mrb[7].mxu1 }
 0x41f   : > { %v6274_v10 = vpop.f32.mrb[8].mxu1  ;;  %4402 = vxpose.xlu1.b32.cont [8/16] (narrow) %v6403_v51, 8 }
 0x420   : > { %v4215_v55 = vpop.f32.mrb[9].mxu1 }
 0x421   : > { %v6407_v23 = vadd.f32 %v4215_v55, %v8750_v53 }
 0x423   : > { %v6277_v52 = vpop.f32.mrb[10].mxu1  ;;  %4403 = vxpose.xlu1.b32.cont [9/16] (narrow) %v6405_v58, 8 }
 0x424   : > { %v6408_v27 = vadd.f32 %v6277_v52, %v8752_v14  ;;  %v4224_v50 = vpop.f32.mrb[11].mxu1 }
 0x425   : > { %v6409_v59 = vadd.f32 %v4224_v50, %v8754_v0 }
 0x427   : > { %v6280_v28 = vpop.f32.mrb[12].mxu1  ;;  %4404 = vxpose.xlu1.b32.cont [10/16] (narrow) %v6404_v33, 8 }
 0x428   : > { %v6410_v60 = vadd.f32 %v6280_v28, %v8756_v9  ;;  %v4234_v7 = vpop.f32.mrb[13].mxu1 }
 0x42b   : > { %v6283_v8 = vpop.f32.mrb[14].mxu1  ;;  %4405 = vxpose.xlu1.b32.cont [11/16] (narrow) %v6406_v37, 8 }
 0x42c   : > { %v4243_v16 = vpop.f32.mrb[15].mxu1 }
 0x42d   : > { %v6411_v25 = vadd.f32 %v4243_v16, %v8758_v54 }
 0x42f   : > { %v6286_v26 = vpop.f32.mrb[16].mxu1  ;;  %4406 = vxpose.xlu1.b32.cont [12/16] (narrow) %v6407_v23, 8 }
 0x430   : > { %v6412_v53 = vadd.f32 %v6286_v26, %v8760_v6  ;;  %v4252_v24 = vpop.f32.mrb[17].mxu1 }
 0x431   : > { %v6413_v14 = vadd.f32 %v4252_v24, %v8762_v3 }
 0x433   : > { %v6289_v43 = vpop.f32.mrb[18].mxu1  ;;  %4407 = vxpose.xlu1.b32.cont [13/16] (narrow) %v6409_v59, 8 }
 0x434   : > { %v6414_v0 = vadd.f32 %v6289_v43, %v8764_v57  ;;  %v4262_v44 = vpop.f32.mrb[19].mxu1 }
 0x437   : > { %v6292_v41 = vpop.f32.mrb[20].mxu1  ;;  %4408 = vxpose.xlu1.b32.cont [14/16] (narrow) %v6408_v27, 8 }
 0x438   : > { %v4271_v9 = vpop.f32.mrb[21].mxu1 }
 0x439   : > { %v6415_v12 = vadd.f32 %v4271_v9, %v8766_v22 }
 0x43b   : > { %v6295_v13 = vpop.f32.mrb[22].mxu1  ;;  %4409 = vxpose.xlu1.b32.cont [15/16] (narrow) %v6410_v60, 8 }
 0x43c   : > { %v6416_v54 = vadd.f32 %v6295_v13, %v8768_v47  ;;  %v4280_v4 = vpop.f32.mrb[23].mxu1 }
 0x43d   : > { %v6417_v6 = vadd.f32 %v4280_v4, %v8770_v48 }
 0x43f   : > { %v6298_v42 = vpop.f32.mrb[24].mxu1  ;;  %4410 = vxpose.xlu1.b32.end [16/16] (narrow) %v6411_v25, 8 }
 0x440   : > { %v6418_v3 = vadd.f32 %v6298_v42, %v8772_v62  ;;  %v4290_v11 = vpop.f32.mrb[25].mxu1 }
 0x443   : > { %v6301_v35 = vpop.f32.mrb[26].mxu1  ;;  %4427 = vxpose.xlu1.b32.start [1/16] (narrow) %v6413_v14, 8 }
 0x444   : > { %v4299_v57 = vpop.f32.mrb[27].mxu1 }
 0x445   : > { %v6419_v36 = vadd.f32 %v4299_v57, %v8774_v5 }
 0x447   : > { %v6304_v39 = vpop.f32.mrb[28].mxu1  ;;  %4428 = vxpose.xlu1.b32.cont [2/16] (narrow) %v6412_v53, 8 }
 0x448   : > { %v6420_v22 = vadd.f32 %v6304_v39, %v8776_v38  ;;  %v4308_v61 = vpop.f32.mrb[29].mxu1 }
 0x449   : > { %v6421_v47 = vadd.f32 %v4308_v61, %v8778_v40 }
 0x44b   : > { %v6307_v63 = vpop.f32.mrb[30].mxu1  ;;  %4429 = vxpose.xlu1.b32.cont [3/16] (narrow) %v6414_v0, 8 }
 0x44c   : > { %v6422_v48 = vadd.f32 %v6307_v63, %v8780_v18  ;;  %v4318_v2 = vpop.f32.mrb[31].mxu1 }
 0x44f   : > { %v6310_v46 = vpop.f32.mrb[32].mxu1  ;;  %4430 = vxpose.xlu1.b32.cont [4/16] (narrow) %v6415_v12, 8 }
 0x450   : > { %v4327_v62 = vpop.f32.mrb[33].mxu1 }
 0x451   : > { %v6423_v49 = vadd.f32 %v4327_v62, %v8782_v31 }
 0x453   : > { %v6313_v34 = vpop.f32.mrb[34].mxu1  ;;  %4431 = vxpose.xlu1.b32.cont [5/16] (narrow) %v6417_v6, 8 }
 0x454   : > { %v6424_v5 = vadd.f32 %v6313_v34, %v8784_v17  ;;  %v4336_v56 = vpop.f32.mrb[35].mxu1 }
 0x455   : > { %v6425_v38 = vadd.f32 %v4336_v56, %v8786_v30 }
 0x457   : > { %v6316_v19 = vpop.f32.mrb[36].mxu1  ;;  %4432 = vxpose.xlu1.b32.cont [6/16] (narrow) %v6416_v54, 8 }
 0x458   : > { %v6426_v40 = vadd.f32 %v6316_v19, %v8788_v1  ;;  %v4346_v20 = vpop.f32.mrb[37].mxu1 }
 0x45b   : > { %v6319_v18 = vpop.f32.mrb[38].mxu1  ;;  %4433 = vxpose.xlu1.b32.cont [7/16] (narrow) %v6418_v3, 8 }
 0x45c   : > { %v4355_v51 = vpop.f32.mrb[39].mxu1 }
 0x45d   : > { %v6427_v21 = vadd.f32 %v4355_v51, %v8790_v15 }
 0x45f   : > { %4434 = vxpose.xlu1.b32.cont [8/16] (narrow) %v6419_v36, 8 }
 0x463   : > { %4435 = vxpose.xlu1.b32.cont [9/16] (narrow) %v6421_v47, 8 }
 0x467   : > { %4436 = vxpose.xlu1.b32.cont [10/16] (narrow) %v6420_v22, 8 }
 0x46b   : > { %4437 = vxpose.xlu1.b32.cont [11/16] (narrow) %v6422_v48, 8 }
 0x46f   : > { %4438 = vxpose.xlu1.b32.cont [12/16] (narrow) %v6423_v49, 8 }
 0x473   : > { %4439 = vxpose.xlu1.b32.cont [13/16] (narrow) %v6425_v38, 8 }
 0x477   : > { %4440 = vxpose.xlu1.b32.cont [14/16] (narrow) %v6424_v5, 8 }
 0x47b   : > { %4441 = vxpose.xlu1.b32.cont [15/16] (narrow) %v6426_v40, 8 }
 0x47f   : > { %4442 = vxpose.xlu1.b32.end [16/16] (narrow) %v6427_v21, 8 }
 0x483   : > { %v4411_v31 = vpop.trf.xlu1 }
 0x484   : > { %4459 = vst [vmem:[%s244_s26] sm:$0xff] %v4411_v31 }
 0x4c3   : > { %v4443_v17 = vpop.trf.xlu1 }
 0x4c4   : > { %4460 = vst [vmem:[%s244_s26 + $0x8] sm:$0xff] %v4443_v17 }
 0x4c5   : > { %6855 = shalt.err (!%p6852_p3)
}
 0x4c6   : > { %s6856_s16 = scalar_lea.hbm %s8825_s11, 256  ;;  %s6860_s19 = scalar_lea.hbm %s8871_s6, 512 }
 0x4c7   : > { %p6857_p4 = scmp.ne.s32.totalorder %s8825_s11, %s6856_s16  ;;  %p6861_p9 = scmp.lt.u32.totalorder %s8825_s11, %s8871_s6 }
 0x4c8   : > { %p6862_p10 = scmp.lt.u32.totalorder %s6860_s19, %s6856_s16  ;;  %p6864_p12 = scmp.lt.u32.totalorder %s6856_s16, %s8825_s11 }
 0x4c9   : > { %p6858_p7 = pnand %p6857_p4, %p6981_p5 }
 0x4ca   : > { %p6863_p11 = por %p6862_p10, %p6861_p9 }
 0x4cb   : > { %p6859_p8 = pneg %p6858_p7 }
 0x4cc   : > { %p6865_p13 = por %p6864_p12, %p6863_p11 }
 0x4ce   : > { %p6866_p0 = pnand %p6865_p13, %p6859_p8 }
 0x4d0   : > { %6869 = shalt.err (!%p6866_p0)
}
 0x4d1   : > { %6764 = dma.vmem_to_hbm [thread:$0]  (%p6981_p5), %s8820_s28, 256, %s8825_s11, %s4462_s12  }
 0x4d2 PF: > { %p6770_p1 = scmp.ge.s32.totalorder %s6904_s24, 2  ;;  %s4488_s29 = sand.u32 1, %s6892_s21  }
 0x4d3   : > { %s4489_s9 = scalar_lea.sflag [#allocation4], %s4488_s29 }
 0x4d4   : > { %p6767_p2 = pnand %p6770_p1, %p6985_p6 }
 0x4d6   : > { %6887 = dma.done.wait (!%p6767_p2), %s4489_s9, 256  }
 0x4d7   : > { %6889 = vsyncadd (!%p6767_p2), %s4489_s9, 4294967040  ;;  %p16_p3 = scmp.ge.s32.totalorder %s6968_s27, 4   ;;  %s9194_s21 = smov %s6896_s22 }
 0x4d8   : > { %s9195_s22 = smov %s6900_s23  ;;  %s9196_s23 = smov %s6979_s30 }
 0x4d9   : > { %s9197_s24 = smov %s6968_s27  ;;  %18 = sbr.rel (!%p16_p3) target bundleno = 3 (0x3), region = 89 }
 0x4e0   :  { %4494 = vsyncpa [#allocation4], 1 }
 0x4e1   :  { %4496 = vsyncpa [#allocation4 + $0x1], 1 }

</bundles_post_ra>
